<compile_context>
chip_gen: v7x
topology: tpu7x:2x2x1
jax: 0.10.0
libtpu: 0.0.40
codegen_flags: <defaults>
</compile_context>

<pallas_src>
import jax
import jax.numpy as jnp
from jax.experimental import pallas as pl
from jax.experimental.pallas import tpu as pltpu


# ----------------------------------------------------------------------------
# Fused forward-pass kernel (one batch tile per grid step)
# ----------------------------------------------------------------------------
def _lenet_kernel(x_ref, w1_ref, b1_ref, w2_ref, b2_ref,
                  fw1_ref, fb1_ref, fw2_ref, fb2_ref, fw3_ref, fb3_ref,
                  out_ref, x5a_ref, x5b_ref, fc1_ref):
    f32, bf16 = jnp.float32, jnp.bfloat16
    n = x_ref.shape[0]

    # ---- conv1 (1->6, 5x5 VALID): row-gathered im2col + ONE band matmul ------
    #   x5a[n*28 + oh, di*32 + iw] = x[n, oh+di, iw]
    #   W1[di*32 + iw, ow*6 + oc]  = w1[oc, 0, di, iw-ow]  (0 elsewhere)
    for di in range(5):
        x5a_ref[:, di * 32:(di + 1) * 32] = (
            x_ref[:, di:di + 28, :].reshape(n * 28, 32).astype(bf16))
    h1 = jnp.dot(x5a_ref[...], w1_ref[...], preferred_element_type=f32)
    h1 = jnp.maximum(h1 + b1_ref[...], 0.0)                       # (n*28, 168)

    # ---- pool1 (2x2 max): vertical row-pair max + horizontal lane-shift max --
    h1 = h1.reshape(n * 14, 2, 168)
    v1 = jnp.maximum(h1[:, 0, :], h1[:, 1, :])                    # (n*14, 168)
    # even width-groups (lanes 2q*6 .. 2q*6+5) now hold the pooled values; the
    # odd-group compaction is folded into w2_ref (zero rows there).
    p1 = jnp.maximum(v1[:, 0:162], v1[:, 6:168]).astype(bf16)     # (n*14, 162)
    p1 = p1.reshape(n, 14, 162)

    # ---- conv2 (6->16, 5x5 VALID): im2col over uncompacted pool1 + ONE matmul
    #   x5b[n*10 + oh2, di*162 + l] = p1[n, oh2+di, l]
    for di in range(5):
        x5b_ref[:, di * 162:(di + 1) * 162] = (
            p1[:, di:di + 10, :].reshape(n * 10, 162))
    h2 = jnp.dot(x5b_ref[...], w2_ref[...], preferred_element_type=f32)
    h2 = jnp.maximum(h2 + b2_ref[...], 0.0)                       # (n*10, 160)

    # ---- pool2 (2x2 max) -> flatten; lane compaction folded into fc1 weight --
    h2 = h2.reshape(n * 5, 2, 160)
    v2 = jnp.maximum(h2[:, 0, :], h2[:, 1, :])                    # (n*5, 160)
    p2 = jnp.maximum(v2[:, 0:144], v2[:, 16:160]).astype(bf16)    # (n*5, 144)
    p2 = p2.reshape(n, 5, 144)
    for h in range(5):
        fc1_ref[:, h * 144:(h + 1) * 144] = p2[:, h, :]           # (n, 720)

    # ---- fc1 -> relu -> fc2 -> relu -> fc3 (output padded to 128 lanes) ------
    y = jnp.dot(fc1_ref[...], fw1_ref[...], preferred_element_type=f32) + fb1_ref[...]
    y = jnp.dot(jnp.maximum(y, 0.0).astype(bf16), fw2_ref[...],
                preferred_element_type=f32) + fb2_ref[...]
    y = jnp.dot(jnp.maximum(y, 0.0).astype(bf16), fw3_ref[...],
                preferred_element_type=f32) + fb3_ref[...]
    out_ref[...] = y.astype(out_ref.dtype)


# ----------------------------------------------------------------------------
# One-time host-side weight re-layout (tiny tensors, done once, outside jit)
# ----------------------------------------------------------------------------
def prepare_params(p):
    f32, bf16 = jnp.float32, jnp.bfloat16
    dj = jnp.arange(5)

    # conv1 band matrix: W1[di*32+iw, ow*6+oc] = w1[oc,0,di,iw-ow] (0 <= iw-ow < 5)
    w1t = jnp.transpose(p["w1"][:, 0], (1, 2, 0)).astype(f32)            # (5,5,6) [di,dj,oc]
    sel1 = (jnp.arange(32)[:, None, None]
            == jnp.arange(28)[None, :, None] + dj[None, None, :]).astype(f32)
    W1 = jnp.einsum("ioj,djc->dioc", sel1, w1t).reshape(160, 168).astype(bf16)
    b1 = jnp.tile(p["b1"].astype(f32), 28).reshape(1, 168)

    # conv2 band matrix over the UNCOMPACTED pool1 rows (162 lanes = 27 groups x 6 ch):
    # W2[di*162 + iwu*6 + ic, ow2*16 + oc] = w2[oc,ic,di,iwu//2-ow2] for even iwu, else 0
    w2t = jnp.transpose(p["w2"], (2, 3, 1, 0)).astype(f32)               # (5,5,6,16) [di,dj,ic,oc]
    sel2 = (jnp.arange(27)[:, None, None]
            == 2 * (jnp.arange(10)[None, :, None] + dj[None, None, :])).astype(f32)
    W2 = jnp.einsum("uoj,djce->ducoe", sel2, w2t).reshape(810, 160).astype(bf16)
    b2 = jnp.tile(p["b2"].astype(f32), 10).reshape(1, 160)

    # fc1 over the UNCOMPACTED pool2 rows (144 lanes = 9 groups x 16 ch),
    # regrouped from PyTorch's (c,h,w) flatten to the kernel's (h, w, c) order.
    fw1r = p["fw1"].reshape(120, 16, 5, 5).astype(f32)                   # [o,c,h,w]
    sel3 = (jnp.arange(9)[:, None] == 2 * jnp.arange(5)[None, :]).astype(f32)
    FW1 = jnp.einsum("uw,ochw->huco", sel3, fw1r).reshape(720, 120).astype(bf16)
    fb1 = p["fb1"].reshape(1, 120).astype(f32)

    FW2 = p["fw2"].T.astype(bf16)                                        # (120,84)
    fb2 = p["fb2"].reshape(1, 84).astype(f32)
    FW3 = jnp.zeros((84, 128), f32).at[:, :10].set(p["fw3"].T).astype(bf16)
    fb3 = jnp.zeros((1, 128), f32).at[0, :10].set(p["fb3"].astype(f32))
    return (W1, b1, W2, b2, FW1, fb1, FW2, fb2, FW3, fb3)


# ----------------------------------------------------------------------------
# Wrapper: batch-tiled grid, weights VMEM-resident, single pallas_call
# ----------------------------------------------------------------------------
def net_forward(x_nchw, prep, block_n=32):
    N = x_nchw.shape[0]
    f32 = jnp.float32
    x = x_nchw.reshape(N, 32, 32).astype(f32)     # drop C=1; W=32 sits on lanes
    nt = min(block_n, N)
    grid = (pl.cdiv(N, nt),)
    weights = prep

    def wspec(a):
        return pl.BlockSpec(a.shape, lambda i: (0,) * a.ndim)

    out = pl.pallas_call(
        _lenet_kernel,
        out_shape=jax.ShapeDtypeStruct((N, 128), f32),
        grid=grid,
        in_specs=[pl.BlockSpec((nt, 32, 32), lambda i: (i, 0, 0))]
                 + [wspec(a) for a in weights],
        out_specs=pl.BlockSpec((nt, 128), lambda i: (i, 0)),
        scratch_shapes=[
            pltpu.VMEM((nt * 28, 160), jnp.bfloat16),   # conv1 im2col
            pltpu.VMEM((nt * 10, 810), jnp.bfloat16),   # conv2 im2col
            pltpu.VMEM((nt, 720), jnp.bfloat16),        # fc1 input
        ],
        compiler_params=pltpu.CompilerParams(
            dimension_semantics=("parallel",),          # v7x: shard tiles over 2 TCs
            vmem_limit_bytes=32 * 1024 * 1024),
    )(x, *weights)
    return out[:, :10]


# ----------------------------------------------------------------------------
# Pure-JAX reference (f32, HIGHEST precision) for correctness check
# ----------------------------------------------------------------------------
def ref_forward(x, p):
    hi = jax.lax.Precision.HIGHEST

    def conv(x, w, b):
        y = jax.lax.conv_general_dilated(
            x, w, (1, 1), "VALID",
            dimension_numbers=("NCHW", "OIHW", "NCHW"), precision=hi)
        return y + b.reshape(1, -1, 1, 1)

    def pool(x):
        return jax.lax.reduce_window(
            x, -jnp.inf, jax.lax.max, (1, 1, 2, 2), (1, 1, 2, 2), "VALID")

    y = pool(jnp.maximum(conv(x, p["w1"], p["b1"]), 0.0))
    y = pool(jnp.maximum(conv(y, p["w2"], p["b2"]), 0.0))
    y = y.reshape(y.shape[0], -1)
    y = jnp.maximum(jnp.dot(y, p["fw1"].T, precision=hi) + p["fb1"], 0.0)
    y = jnp.maximum(jnp.dot(y, p["fw2"].T, precision=hi) + p["fb2"], 0.0)
    return jnp.dot(y, p["fw3"].T, precision=hi) + p["fb3"]


# ----------------------------------------------------------------------------
if __name__ == "__main__":
    key = jax.random.PRNGKey(0)
    ks = jax.random.split(key, 11)
    f32 = jnp.float32

    params = {
        "w1": 0.1 * jax.random.normal(ks[0], (6, 1, 5, 5), f32),
        "b1": 0.1 * jax.random.normal(ks[1], (6,), f32),
        "w2": 0.1 * jax.random.normal(ks[2], (16, 6, 5, 5), f32),
        "b2": 0.1 * jax.random.normal(ks[3], (16,), f32),
        "fw1": 0.05 * jax.random.normal(ks[4], (120, 400), f32),
        "fb1": 0.05 * jax.random.normal(ks[5], (120,), f32),
        "fw2": 0.05 * jax.random.normal(ks[6], (84, 120), f32),
        "fb2": 0.05 * jax.random.normal(ks[7], (84,), f32),
        "fw3": 0.05 * jax.random.normal(ks[8], (10, 84), f32),
        "fb3": 0.05 * jax.random.normal(ks[9], (10,), f32),
    }

    x = jax.random.normal(ks[10], (2, 1, 32, 32), f32)   # NCHW, LeNet needs 32x32

    prep = prepare_params(params)                        # one-time weight relayout
    fwd = jax.jit(net_forward)
    out = jax.block_until_ready(fwd(x, prep))
    assert out.shape == (2, 10) and out.dtype == jnp.float32

    ref = jax.block_until_ready(ref_forward(x, params))
    # bf16 MXU inputs with f32 accumulation -> ~3 significant digits vs f32 ref.
    assert jnp.allclose(out, ref, rtol=3e-2, atol=3e-2), (out, ref)

    print("KERNEL_OK")
</pallas_src>

<mosaic_0001>
module attributes {stable_mosaic.version = 11 : i64} {
  func.func @_lenet_kernel(%arg0: i32, %arg1: memref<2x32x32xf32, #tpu.memory_space<vmem>>, %arg2: memref<160x168xbf16, #tpu.memory_space<vmem>>, %arg3: memref<1x168xf32, #tpu.memory_space<vmem>>, %arg4: memref<810x160xbf16, #tpu.memory_space<vmem>>, %arg5: memref<1x160xf32, #tpu.memory_space<vmem>>, %arg6: memref<720x120xbf16, #tpu.memory_space<vmem>>, %arg7: memref<1x120xf32, #tpu.memory_space<vmem>>, %arg8: memref<120x84xbf16, #tpu.memory_space<vmem>>, %arg9: memref<1x84xf32, #tpu.memory_space<vmem>>, %arg10: memref<84x128xbf16, #tpu.memory_space<vmem>>, %arg11: memref<1x128xf32, #tpu.memory_space<vmem>>, %arg12: memref<2x128xf32, #tpu.memory_space<vmem>>, %arg13: memref<56x160xbf16, #tpu.memory_space<vmem>>, %arg14: memref<20x810xbf16, #tpu.memory_space<vmem>>, %arg15: memref<2x720xbf16, #tpu.memory_space<vmem>>) attributes {dimension_semantics = [#tpu.dimension_semantics<parallel>], iteration_bounds = array<i64: 1>, scalar_prefetch = 0 : i64, scratch_operands = 3 : i64, tpu.core_type = #tpu.core_type<tc>, window_params = [{transform_indices = @transform_0, window_bounds = array<i64: 2, 32, 32>}, {pipeline_mode = #tpu.pipeline_mode<synchronous>, transform_indices = @transform_1, window_bounds = array<i64: 160, 168>}, {pipeline_mode = #tpu.pipeline_mode<synchronous>, transform_indices = @transform_2, window_bounds = array<i64: 1, 168>}, {pipeline_mode = #tpu.pipeline_mode<synchronous>, transform_indices = @transform_3, window_bounds = array<i64: 810, 160>}, {pipeline_mode = #tpu.pipeline_mode<synchronous>, transform_indices = @transform_4, window_bounds = array<i64: 1, 160>}, {pipeline_mode = #tpu.pipeline_mode<synchronous>, transform_indices = @transform_5, window_bounds = array<i64: 720, 120>}, {pipeline_mode = #tpu.pipeline_mode<synchronous>, transform_indices = @transform_6, window_bounds = array<i64: 1, 120>}, {pipeline_mode = #tpu.pipeline_mode<synchronous>, transform_indices = @transform_7, window_bounds = array<i64: 120, 84>}, {pipeline_mode = #tpu.pipeline_mode<synchronous>, transform_indices = @transform_8, window_bounds = array<i64: 1, 84>}, {pipeline_mode = #tpu.pipeline_mode<synchronous>, transform_indices = @transform_9, window_bounds = array<i64: 84, 128>}, {pipeline_mode = #tpu.pipeline_mode<synchronous>, transform_indices = @transform_10, window_bounds = array<i64: 1, 128>}, {transform_indices = @transform_11, window_bounds = array<i64: 2, 128>}]} {
    %c0 = arith.constant 0 : index
    %c0_0 = arith.constant 0 : index
    %c0_1 = arith.constant 0 : index
    %0 = vector.load %arg1[%c0, %c0_0, %c0_1] : memref<2x32x32xf32, #tpu.memory_space<vmem>>, vector<2x28x32xf32>
    %1 = vector.shape_cast %0 : vector<2x28x32xf32> to vector<56x32xf32>
    %2 = arith.truncf %1 : vector<56x32xf32> to vector<56x32xbf16>
    %c0_2 = arith.constant 0 : index
    %c0_3 = arith.constant 0 : index
    %3 = vector.load %arg13[%c0_2, %c0_3] : memref<56x160xbf16, #tpu.memory_space<vmem>>, vector<56x32xbf16>
    tpu.vector_store %arg13[%c0_2, %c0_3], %2 {strides = array<i32>} : memref<56x160xbf16, #tpu.memory_space<vmem>>, vector<56x32xbf16>,
    %c0_4 = arith.constant 0 : index
    %c1 = arith.constant 1 : index
    %c0_5 = arith.constant 0 : index
    %4 = vector.load %arg1[%c0_4, %c1, %c0_5] : memref<2x32x32xf32, #tpu.memory_space<vmem>>, vector<2x28x32xf32>
    %5 = vector.shape_cast %4 : vector<2x28x32xf32> to vector<56x32xf32>
    %6 = arith.truncf %5 : vector<56x32xf32> to vector<56x32xbf16>
    %c0_6 = arith.constant 0 : index
    %c32 = arith.constant 32 : index
    %7 = vector.load %arg13[%c0_6, %c32] : memref<56x160xbf16, #tpu.memory_space<vmem>>, vector<56x32xbf16>
    tpu.vector_store %arg13[%c0_6, %c32], %6 {strides = array<i32>} : memref<56x160xbf16, #tpu.memory_space<vmem>>, vector<56x32xbf16>,
    %c0_7 = arith.constant 0 : index
    %c2 = arith.constant 2 : index
    %c0_8 = arith.constant 0 : index
    %8 = vector.load %arg1[%c0_7, %c2, %c0_8] : memref<2x32x32xf32, #tpu.memory_space<vmem>>, vector<2x28x32xf32>
    %9 = vector.shape_cast %8 : vector<2x28x32xf32> to vector<56x32xf32>
    %10 = arith.truncf %9 : vector<56x32xf32> to vector<56x32xbf16>
    %c0_9 = arith.constant 0 : index
    %c64 = arith.constant 64 : index
    %11 = vector.load %arg13[%c0_9, %c64] : memref<56x160xbf16, #tpu.memory_space<vmem>>, vector<56x32xbf16>
    tpu.vector_store %arg13[%c0_9, %c64], %10 {strides = array<i32>} : memref<56x160xbf16, #tpu.memory_space<vmem>>, vector<56x32xbf16>,
    %c0_10 = arith.constant 0 : index
    %c3 = arith.constant 3 : index
    %c0_11 = arith.constant 0 : index
    %12 = vector.load %arg1[%c0_10, %c3, %c0_11] : memref<2x32x32xf32, #tpu.memory_space<vmem>>, vector<2x28x32xf32>
    %13 = vector.shape_cast %12 : vector<2x28x32xf32> to vector<56x32xf32>
    %14 = arith.truncf %13 : vector<56x32xf32> to vector<56x32xbf16>
    %c0_12 = arith.constant 0 : index
    %c96 = arith.constant 96 : index
    %15 = vector.load %arg13[%c0_12, %c96] : memref<56x160xbf16, #tpu.memory_space<vmem>>, vector<56x32xbf16>
    tpu.vector_store %arg13[%c0_12, %c96], %14 {strides = array<i32>} : memref<56x160xbf16, #tpu.memory_space<vmem>>, vector<56x32xbf16>,
    %c0_13 = arith.constant 0 : index
    %c4 = arith.constant 4 : index
    %c0_14 = arith.constant 0 : index
    %16 = vector.load %arg1[%c0_13, %c4, %c0_14] : memref<2x32x32xf32, #tpu.memory_space<vmem>>, vector<2x28x32xf32>
    %17 = vector.shape_cast %16 : vector<2x28x32xf32> to vector<56x32xf32>
    %18 = arith.truncf %17 : vector<56x32xf32> to vector<56x32xbf16>
    %c0_15 = arith.constant 0 : index
    %c128 = arith.constant 128 : index
    %19 = vector.load %arg13[%c0_15, %c128] : memref<56x160xbf16, #tpu.memory_space<vmem>>, vector<56x32xbf16>
    tpu.vector_store %arg13[%c0_15, %c128], %18 {strides = array<i32>} : memref<56x160xbf16, #tpu.memory_space<vmem>>, vector<56x32xbf16>,
    %c0_16 = arith.constant 0 : index
    %c0_17 = arith.constant 0 : index
    %20 = vector.load %arg13[%c0_16, %c0_17] : memref<56x160xbf16, #tpu.memory_space<vmem>>, vector<56x160xbf16>
    %c0_18 = arith.constant 0 : index
    %c0_19 = arith.constant 0 : index
    %21 = vector.load %arg2[%c0_18, %c0_19] : memref<160x168xbf16, #tpu.memory_space<vmem>>, vector<160x168xbf16>
    %cst = arith.constant dense<0.000000e+00> : vector<56x168xf32>
    %22 = tpu.matmul %20, %21, %cst {dimension_numbers = #tpu.dot_dimension_numbers<[1], [0], [0], [1], [0, 0, 1, 1], [], []>} : vector<56x160xbf16>, vector<160x168xbf16>, vector<56x168xf32> -> vector<56x168xf32>
    %c0_20 = arith.constant 0 : index
    %c0_21 = arith.constant 0 : index
    %23 = vector.load %arg3[%c0_20, %c0_21] : memref<1x168xf32, #tpu.memory_space<vmem>>, vector<1x168xf32>
    %24 = vector.broadcast %23 : vector<1x168xf32> to vector<56x168xf32>
    %25 = arith.addf %22, %24 : vector<56x168xf32>
    %cst_22 = arith.constant 0.000000e+00 : f32
    %26 = vector.broadcast %cst_22 : f32 to vector<56x168xf32>
    %27 = arith.maximumf %25, %26 : vector<56x168xf32>
    %28 = vector.shape_cast %27 : vector<56x168xf32> to vector<28x2x168xf32>
    %29 = vector.extract_strided_slice %28 {offsets = [0, 0, 0], sizes = [28, 1, 168], strides = [1, 1, 1]} : vector<28x2x168xf32> to vector<28x1x168xf32>
    %30 = vector.shape_cast %29 : vector<28x1x168xf32> to vector<28x168xf32>
    %31 = vector.extract_strided_slice %28 {offsets = [0, 1, 0], sizes = [28, 1, 168], strides = [1, 1, 1]} : vector<28x2x168xf32> to vector<28x1x168xf32>
    %32 = vector.shape_cast %31 : vector<28x1x168xf32> to vector<28x168xf32>
    %33 = arith.maximumf %30, %32 : vector<28x168xf32>
    %34 = vector.extract_strided_slice %33 {offsets = [0, 0], sizes = [28, 162], strides = [1, 1]} : vector<28x168xf32> to vector<28x162xf32>
    %35 = vector.extract_strided_slice %33 {offsets = [0, 6], sizes = [28, 162], strides = [1, 1]} : vector<28x168xf32> to vector<28x162xf32>
    %36 = arith.maximumf %34, %35 : vector<28x162xf32>
    %37 = arith.truncf %36 : vector<28x162xf32> to vector<28x162xbf16>
    %38 = vector.shape_cast %37 : vector<28x162xbf16> to vector<2x14x162xbf16>
    %39 = vector.extract_strided_slice %38 {offsets = [0, 0, 0], sizes = [2, 10, 162], strides = [1, 1, 1]} : vector<2x14x162xbf16> to vector<2x10x162xbf16>
    %40 = vector.shape_cast %39 : vector<2x10x162xbf16> to vector<20x162xbf16>
    %c0_23 = arith.constant 0 : index
    %c0_24 = arith.constant 0 : index
    %41 = vector.load %arg14[%c0_23, %c0_24] : memref<20x810xbf16, #tpu.memory_space<vmem>>, vector<20x162xbf16>
    tpu.vector_store %arg14[%c0_23, %c0_24], %40 {strides = array<i32>} : memref<20x810xbf16, #tpu.memory_space<vmem>>, vector<20x162xbf16>,
    %42 = vector.extract_strided_slice %38 {offsets = [0, 1, 0], sizes = [2, 10, 162], strides = [1, 1, 1]} : vector<2x14x162xbf16> to vector<2x10x162xbf16>
    %43 = vector.shape_cast %42 : vector<2x10x162xbf16> to vector<20x162xbf16>
    %c0_25 = arith.constant 0 : index
    %c162 = arith.constant 162 : index
    %44 = vector.load %arg14[%c0_25, %c162] : memref<20x810xbf16, #tpu.memory_space<vmem>>, vector<20x162xbf16>
    tpu.vector_store %arg14[%c0_25, %c162], %43 {strides = array<i32>} : memref<20x810xbf16, #tpu.memory_space<vmem>>, vector<20x162xbf16>,
    %45 = vector.extract_strided_slice %38 {offsets = [0, 2, 0], sizes = [2, 10, 162], strides = [1, 1, 1]} : vector<2x14x162xbf16> to vector<2x10x162xbf16>
    %46 = vector.shape_cast %45 : vector<2x10x162xbf16> to vector<20x162xbf16>
    %c0_26 = arith.constant 0 : index
    %c324 = arith.constant 324 : index
    %47 = vector.load %arg14[%c0_26, %c324] : memref<20x810xbf16, #tpu.memory_space<vmem>>, vector<20x162xbf16>
    tpu.vector_store %arg14[%c0_26, %c324], %46 {strides = array<i32>} : memref<20x810xbf16, #tpu.memory_space<vmem>>, vector<20x162xbf16>,
    %48 = vector.extract_strided_slice %38 {offsets = [0, 3, 0], sizes = [2, 10, 162], strides = [1, 1, 1]} : vector<2x14x162xbf16> to vector<2x10x162xbf16>
    %49 = vector.shape_cast %48 : vector<2x10x162xbf16> to vector<20x162xbf16>
    %c0_27 = arith.constant 0 : index
    %c486 = arith.constant 486 : index
    %50 = vector.load %arg14[%c0_27, %c486] : memref<20x810xbf16, #tpu.memory_space<vmem>>, vector<20x162xbf16>
    tpu.vector_store %arg14[%c0_27, %c486], %49 {strides = array<i32>} : memref<20x810xbf16, #tpu.memory_space<vmem>>, vector<20x162xbf16>,
    %51 = vector.extract_strided_slice %38 {offsets = [0, 4, 0], sizes = [2, 10, 162], strides = [1, 1, 1]} : vector<2x14x162xbf16> to vector<2x10x162xbf16>
    %52 = vector.shape_cast %51 : vector<2x10x162xbf16> to vector<20x162xbf16>
    %c0_28 = arith.constant 0 : index
    %c648 = arith.constant 648 : index
    %53 = vector.load %arg14[%c0_28, %c648] : memref<20x810xbf16, #tpu.memory_space<vmem>>, vector<20x162xbf16>
    tpu.vector_store %arg14[%c0_28, %c648], %52 {strides = array<i32>} : memref<20x810xbf16, #tpu.memory_space<vmem>>, vector<20x162xbf16>,
    %c0_29 = arith.constant 0 : index
    %c0_30 = arith.constant 0 : index
    %54 = vector.load %arg14[%c0_29, %c0_30] : memref<20x810xbf16, #tpu.memory_space<vmem>>, vector<20x810xbf16>
    %c0_31 = arith.constant 0 : index
    %c0_32 = arith.constant 0 : index
    %55 = vector.load %arg4[%c0_31, %c0_32] : memref<810x160xbf16, #tpu.memory_space<vmem>>, vector<810x160xbf16>
    %cst_33 = arith.constant dense<0.000000e+00> : vector<20x160xf32>
    %56 = tpu.matmul %54, %55, %cst_33 {dimension_numbers = #tpu.dot_dimension_numbers<[1], [0], [0], [1], [0, 0, 1, 1], [], []>} : vector<20x810xbf16>, vector<810x160xbf16>, vector<20x160xf32> -> vector<20x160xf32>
    %c0_34 = arith.constant 0 : index
    %c0_35 = arith.constant 0 : index
    %57 = vector.load %arg5[%c0_34, %c0_35] : memref<1x160xf32, #tpu.memory_space<vmem>>, vector<1x160xf32>
    %58 = vector.broadcast %57 : vector<1x160xf32> to vector<20x160xf32>
    %59 = arith.addf %56, %58 : vector<20x160xf32>
    %cst_36 = arith.constant 0.000000e+00 : f32
    %60 = vector.broadcast %cst_36 : f32 to vector<20x160xf32>
    %61 = arith.maximumf %59, %60 : vector<20x160xf32>
    %62 = vector.shape_cast %61 : vector<20x160xf32> to vector<10x2x160xf32>
    %63 = vector.extract_strided_slice %62 {offsets = [0, 0, 0], sizes = [10, 1, 160], strides = [1, 1, 1]} : vector<10x2x160xf32> to vector<10x1x160xf32>
    %64 = vector.shape_cast %63 : vector<10x1x160xf32> to vector<10x160xf32>
    %65 = vector.extract_strided_slice %62 {offsets = [0, 1, 0], sizes = [10, 1, 160], strides = [1, 1, 1]} : vector<10x2x160xf32> to vector<10x1x160xf32>
    %66 = vector.shape_cast %65 : vector<10x1x160xf32> to vector<10x160xf32>
    %67 = arith.maximumf %64, %66 : vector<10x160xf32>
    %68 = vector.extract_strided_slice %67 {offsets = [0, 0], sizes = [10, 144], strides = [1, 1]} : vector<10x160xf32> to vector<10x144xf32>
    %69 = vector.extract_strided_slice %67 {offsets = [0, 16], sizes = [10, 144], strides = [1, 1]} : vector<10x160xf32> to vector<10x144xf32>
    %70 = arith.maximumf %68, %69 : vector<10x144xf32>
    %71 = arith.truncf %70 : vector<10x144xf32> to vector<10x144xbf16>
    %72 = vector.shape_cast %71 : vector<10x144xbf16> to vector<2x5x144xbf16>
    %73 = vector.extract_strided_slice %72 {offsets = [0, 0, 0], sizes = [2, 1, 144], strides = [1, 1, 1]} : vector<2x5x144xbf16> to vector<2x1x144xbf16>
    %74 = vector.shape_cast %73 : vector<2x1x144xbf16> to vector<2x144xbf16>
    %c0_37 = arith.constant 0 : index
    %c0_38 = arith.constant 0 : index
    %75 = vector.load %arg15[%c0_37, %c0_38] : memref<2x720xbf16, #tpu.memory_space<vmem>>, vector<2x144xbf16>
    tpu.vector_store %arg15[%c0_37, %c0_38], %74 {strides = array<i32>} : memref<2x720xbf16, #tpu.memory_space<vmem>>, vector<2x144xbf16>,
    %76 = vector.extract_strided_slice %72 {offsets = [0, 1, 0], sizes = [2, 1, 144], strides = [1, 1, 1]} : vector<2x5x144xbf16> to vector<2x1x144xbf16>
    %77 = vector.shape_cast %76 : vector<2x1x144xbf16> to vector<2x144xbf16>
    %c0_39 = arith.constant 0 : index
    %c144 = arith.constant 144 : index
    %78 = vector.load %arg15[%c0_39, %c144] : memref<2x720xbf16, #tpu.memory_space<vmem>>, vector<2x144xbf16>
    tpu.vector_store %arg15[%c0_39, %c144], %77 {strides = array<i32>} : memref<2x720xbf16, #tpu.memory_space<vmem>>, vector<2x144xbf16>,
    %79 = vector.extract_strided_slice %72 {offsets = [0, 2, 0], sizes = [2, 1, 144], strides = [1, 1, 1]} : vector<2x5x144xbf16> to vector<2x1x144xbf16>
    %80 = vector.shape_cast %79 : vector<2x1x144xbf16> to vector<2x144xbf16>
    %c0_40 = arith.constant 0 : index
    %c288 = arith.constant 288 : index
    %81 = vector.load %arg15[%c0_40, %c288] : memref<2x720xbf16, #tpu.memory_space<vmem>>, vector<2x144xbf16>
    tpu.vector_store %arg15[%c0_40, %c288], %80 {strides = array<i32>} : memref<2x720xbf16, #tpu.memory_space<vmem>>, vector<2x144xbf16>,
    %82 = vector.extract_strided_slice %72 {offsets = [0, 3, 0], sizes = [2, 1, 144], strides = [1, 1, 1]} : vector<2x5x144xbf16> to vector<2x1x144xbf16>
    %83 = vector.shape_cast %82 : vector<2x1x144xbf16> to vector<2x144xbf16>
    %c0_41 = arith.constant 0 : index
    %c432 = arith.constant 432 : index
    %84 = vector.load %arg15[%c0_41, %c432] : memref<2x720xbf16, #tpu.memory_space<vmem>>, vector<2x144xbf16>
    tpu.vector_store %arg15[%c0_41, %c432], %83 {strides = array<i32>} : memref<2x720xbf16, #tpu.memory_space<vmem>>, vector<2x144xbf16>,
    %85 = vector.extract_strided_slice %72 {offsets = [0, 4, 0], sizes = [2, 1, 144], strides = [1, 1, 1]} : vector<2x5x144xbf16> to vector<2x1x144xbf16>
    %86 = vector.shape_cast %85 : vector<2x1x144xbf16> to vector<2x144xbf16>
    %c0_42 = arith.constant 0 : index
    %c576 = arith.constant 576 : index
    %87 = vector.load %arg15[%c0_42, %c576] : memref<2x720xbf16, #tpu.memory_space<vmem>>, vector<2x144xbf16>
    tpu.vector_store %arg15[%c0_42, %c576], %86 {strides = array<i32>} : memref<2x720xbf16, #tpu.memory_space<vmem>>, vector<2x144xbf16>,
    %c0_43 = arith.constant 0 : index
    %c0_44 = arith.constant 0 : index
    %88 = vector.load %arg15[%c0_43, %c0_44] : memref<2x720xbf16, #tpu.memory_space<vmem>>, vector<2x720xbf16>
    %c0_45 = arith.constant 0 : index
    %c0_46 = arith.constant 0 : index
    %89 = vector.load %arg6[%c0_45, %c0_46] : memref<720x120xbf16, #tpu.memory_space<vmem>>, vector<720x120xbf16>
    %cst_47 = arith.constant dense<0.000000e+00> : vector<2x120xf32>
    %90 = tpu.matmul %88, %89, %cst_47 {dimension_numbers = #tpu.dot_dimension_numbers<[1], [0], [0], [1], [0, 0, 1, 1], [], []>} : vector<2x720xbf16>, vector<720x120xbf16>, vector<2x120xf32> -> vector<2x120xf32>
    %c0_48 = arith.constant 0 : index
    %c0_49 = arith.constant 0 : index
    %91 = vector.load %arg7[%c0_48, %c0_49] : memref<1x120xf32, #tpu.memory_space<vmem>>, vector<1x120xf32>
    %92 = vector.broadcast %91 : vector<1x120xf32> to vector<2x120xf32>
    %93 = arith.addf %90, %92 : vector<2x120xf32>
    %cst_50 = arith.constant 0.000000e+00 : f32
    %94 = vector.broadcast %cst_50 : f32 to vector<2x120xf32>
    %95 = arith.maximumf %93, %94 : vector<2x120xf32>
    %96 = arith.truncf %95 : vector<2x120xf32> to vector<2x120xbf16>
    %c0_51 = arith.constant 0 : index
    %c0_52 = arith.constant 0 : index
    %97 = vector.load %arg8[%c0_51, %c0_52] : memref<120x84xbf16, #tpu.memory_space<vmem>>, vector<120x84xbf16>
    %cst_53 = arith.constant dense<0.000000e+00> : vector<2x84xf32>
    %98 = tpu.matmul %96, %97, %cst_53 {dimension_numbers = #tpu.dot_dimension_numbers<[1], [0], [0], [1], [0, 0, 1, 1], [], []>} : vector<2x120xbf16>, vector<120x84xbf16>, vector<2x84xf32> -> vector<2x84xf32>
    %c0_54 = arith.constant 0 : index
    %c0_55 = arith.constant 0 : index
    %99 = vector.load %arg9[%c0_54, %c0_55] : memref<1x84xf32, #tpu.memory_space<vmem>>, vector<1x84xf32>
    %100 = vector.broadcast %99 : vector<1x84xf32> to vector<2x84xf32>
    %101 = arith.addf %98, %100 : vector<2x84xf32>
    %cst_56 = arith.constant 0.000000e+00 : f32
    %102 = vector.broadcast %cst_56 : f32 to vector<2x84xf32>
    %103 = arith.maximumf %101, %102 : vector<2x84xf32>
    %104 = arith.truncf %103 : vector<2x84xf32> to vector<2x84xbf16>
    %c0_57 = arith.constant 0 : index
    %c0_58 = arith.constant 0 : index
    %105 = vector.load %arg10[%c0_57, %c0_58] : memref<84x128xbf16, #tpu.memory_space<vmem>>, vector<84x128xbf16>
    %cst_59 = arith.constant dense<0.000000e+00> : vector<2x128xf32>
    %106 = tpu.matmul %104, %105, %cst_59 {dimension_numbers = #tpu.dot_dimension_numbers<[1], [0], [0], [1], [0, 0, 1, 1], [], []>} : vector<2x84xbf16>, vector<84x128xbf16>, vector<2x128xf32> -> vector<2x128xf32>
    %c0_60 = arith.constant 0 : index
    %c0_61 = arith.constant 0 : index
    %107 = vector.load %arg11[%c0_60, %c0_61] : memref<1x128xf32, #tpu.memory_space<vmem>>, vector<1x128xf32>
    %108 = vector.broadcast %107 : vector<1x128xf32> to vector<2x128xf32>
    %109 = arith.addf %106, %108 : vector<2x128xf32>
    %c0_62 = arith.constant 0 : index
    %c0_63 = arith.constant 0 : index
    %110 = vector.load %arg12[%c0_62, %c0_63] : memref<2x128xf32, #tpu.memory_space<vmem>>, vector<2x128xf32>
    tpu.vector_store %arg12[%c0_62, %c0_63], %109 {strides = array<i32>} : memref<2x128xf32, #tpu.memory_space<vmem>>, vector<2x128xf32>,
    return
  }
  func.func @transform_0(%arg0: i32) -> (i32, i32, i32) {
    %c0_i32 = arith.constant 0 : i32
    %c0_i32_0 = arith.constant 0 : i32
    %c0_i32_1 = arith.constant 0 : i32
    return %arg0, %c0_i32, %c0_i32_0 : i32, i32, i32
  }
  func.func @transform_1(%arg0: i32) -> (i32, i32) {
    %c0_i32 = arith.constant 0 : i32
    %c0_i32_0 = arith.constant 0 : i32
    %c0_i32_1 = arith.constant 0 : i32
    return %c0_i32, %c0_i32_0 : i32, i32
  }
  func.func @transform_2(%arg0: i32) -> (i32, i32) {
    %c0_i32 = arith.constant 0 : i32
    %c0_i32_0 = arith.constant 0 : i32
    %c0_i32_1 = arith.constant 0 : i32
    return %c0_i32, %c0_i32_0 : i32, i32
  }
  func.func @transform_3(%arg0: i32) -> (i32, i32) {
    %c0_i32 = arith.constant 0 : i32
    %c0_i32_0 = arith.constant 0 : i32
    %c0_i32_1 = arith.constant 0 : i32
    return %c0_i32, %c0_i32_0 : i32, i32
  }
  func.func @transform_4(%arg0: i32) -> (i32, i32) {
    %c0_i32 = arith.constant 0 : i32
    %c0_i32_0 = arith.constant 0 : i32
    %c0_i32_1 = arith.constant 0 : i32
    return %c0_i32, %c0_i32_0 : i32, i32
  }
  func.func @transform_5(%arg0: i32) -> (i32, i32) {
    %c0_i32 = arith.constant 0 : i32
    %c0_i32_0 = arith.constant 0 : i32
    %c0_i32_1 = arith.constant 0 : i32
    return %c0_i32, %c0_i32_0 : i32, i32
  }
  func.func @transform_6(%arg0: i32) -> (i32, i32) {
    %c0_i32 = arith.constant 0 : i32
    %c0_i32_0 = arith.constant 0 : i32
    %c0_i32_1 = arith.constant 0 : i32
    return %c0_i32, %c0_i32_0 : i32, i32
  }
  func.func @transform_7(%arg0: i32) -> (i32, i32) {
    %c0_i32 = arith.constant 0 : i32
    %c0_i32_0 = arith.constant 0 : i32
    %c0_i32_1 = arith.constant 0 : i32
    return %c0_i32, %c0_i32_0 : i32, i32
  }
  func.func @transform_8(%arg0: i32) -> (i32, i32) {
    %c0_i32 = arith.constant 0 : i32
    %c0_i32_0 = arith.constant 0 : i32
    %c0_i32_1 = arith.constant 0 : i32
    return %c0_i32, %c0_i32_0 : i32, i32
  }
  func.func @transform_9(%arg0: i32) -> (i32, i32) {
    %c0_i32 = arith.constant 0 : i32
    %c0_i32_0 = arith.constant 0 : i32
    %c0_i32_1 = arith.constant 0 : i32
    return %c0_i32, %c0_i32_0 : i32, i32
  }
  func.func @transform_10(%arg0: i32) -> (i32, i32) {
    %c0_i32 = arith.constant 0 : i32
    %c0_i32_0 = arith.constant 0 : i32
    %c0_i32_1 = arith.constant 0 : i32
    return %c0_i32, %c0_i32_0 : i32, i32
  }
  func.func @transform_11(%arg0: i32) -> (i32, i32) {
    %c0_i32 = arith.constant 0 : i32
    %c0_i32_0 = arith.constant 0 : i32
    return %arg0, %c0_i32 : i32, i32
  }
}

</mosaic_0001>

<bundles_post_ra>
// kernel: net_forward.1
= control target key start
LH: loop header
LB: loop body
LE: loop exit
PB: predicated region body
PF: predicated region fallthrough
CT: control target
= control target key end

     0   :  { %s5639_s16 = smov 64   ;;  %s5640_s17 = smov 32   ;;  %vm105_vm0 = vcmask 257024   ;;  %s7670_s0 = inlined_call_operand.vmem [shape: f32[2,32,32], index: 0, kind: input, shape index: {}]   ;;  %s7671_s1 = inlined_call_operand.vmem [shape: bf16[160,168], index: 1, kind: input, shape index: {}]   ;;  %s7672_s2 = inlined_call_operand.vmem [shape: f32[1,168], index: 2, kind: input, shape index: {}]   ;;  %s7673_s3 = inlined_call_operand.vmem [shape: bf16[810,160], index: 3, kind: input, shape index: {}]   ;;  %s7674_s4 = inlined_call_operand.vmem [shape: f32[1,160], index: 4, kind: input, shape index: {}]   ;;  %s7675_s5 = inlined_call_operand.vmem [shape: bf16[720,120], index: 5, kind: input, shape index: {}]   ;;  %s7676_s6 = inlined_call_operand.vmem [shape: f32[1,120], index: 6, kind: input, shape index: {}]   ;;  %s7677_s7 = inlined_call_operand.vmem [shape: bf16[120,84], index: 7, kind: input, shape index: {}]   ;;  %s7678_s8 = inlined_call_operand.vmem [shape: f32[1,84], index: 8, kind: input, shape index: {}]   ;;  %s7679_s9 = inlined_call_operand.vmem [shape: bf16[84,128], index: 9, kind: input, shape index: {}]   ;;  %s7680_s10 = inlined_call_operand.vmem [shape: f32[1,128], index: 10, kind: input, shape index: {}]   ;;  %s7681_s11 = inlined_call_operand.hbm [shape: f32[2,128], index: 11, kind: output, shape index: {}]  }
   0x1   :  { %v200_v0 = vld [vmem:[%s7670_s0 + $0x2] sm:$0xff]  ;;  %v201_v2 = vld [vmem:[%s7670_s0 + $0xa] sm:$0xff]  ;;  %v116_v21 = vld [vmem:[%s7670_s0 + $0x19] sm:$0xf]  ;;  %s5641_s14 = smov 96  }
   0x2   :  { %v113_v1 = vld [vmem:[%s7670_s0 + $0x1] sm:$0xff]  ;;  %v216_v3 = vcombine.high %v200_v0, %v200_v0  ;;  %v217_v5 = vcombine.high %v201_v2, %v201_v2  ;;  %v114_v6 = vld [vmem:[%s7670_s0 + $0x9] sm:$0xff]  ;;  %v115_v16 = vld [vmem:[%s7670_s0 + $0x11] sm:$0xff] }
   0x3   :  { %v129_v4 = vcombine.high %v113_v1, %v113_v1  ;;  %v288_v7 = vld [vmem:[%s7670_s0 + $0xb] sm:$0xff]  ;;  %v287_v8 = vld [vmem:[%s7670_s0 + $0x3] sm:$0xff]  ;;  %v130_v9 = vcombine.high %v114_v6, %v114_v6  ;;  %v131_v25 = vcombine.high %v115_v16, %v115_v16  ;;  %v289_v27 = vld [vmem:[%s7670_s0 + $0x13] sm:$0xff] }
   0x4   :  { %v304_v10 = vcombine.high %v288_v7, %v288_v7  ;;  %v303_v11 = vcombine.high %v287_v8, %v287_v8  ;;  %v222_v12 = vcombine.low %v200_v0, %v216_v3  ;;  %v223_v14 = vcombine.low %v201_v2, %v217_v5  ;;  %v117_v22 = vld [vmem:[%s7670_s0 + $0x21] sm:$0xff]  ;;  %v202_v26 = vld [vmem:[%s7670_s0 + $0x12] sm:$0xff]  ;;  %v118_v28 = vld [vmem:[%s7670_s0 + $0x29] sm:$0xff] }
   0x5   :  { %v135_v13 = vcombine.low %v113_v1, %v129_v4  ;;  %v136_v15 = vcombine.low %v114_v6, %v130_v9  ;;  %v203_v29 = vld [vmem:[%s7670_s0 + $0x1a] sm:$0xf]  ;;  %v204_v30 = vld [vmem:[%s7670_s0 + $0x22] sm:$0xff]  ;;  %v138_v36 = vcombine.low %v116_v21, %v117_v22  ;;  %v205_v37 = vld [vmem:[%s7670_s0 + $0x2a] sm:$0xff]  ;;  %v137_v40 = vcombine.low %v115_v16, %v131_v25 }
   0x6   :  { %v5041_v17 = vpack.c.bf16 %v222_v12, %v222_v12  ;;  %v310_v19 = vcombine.low %v288_v7, %v304_v10  ;;  %v309_v20 = vcombine.low %v287_v8, %v303_v11  ;;  %v5042_v23 = vpack.c.bf16 %v223_v14, %v223_v14  ;;  %v290_v31 = vld [vmem:[%s7670_s0 + $0x1b] sm:$0xf]  ;;  %v5767_v32 = vld [vmem:[%s7670_s0 + $0x23] sm:$0xff]  ;;  %v5786_v43 = vld [vmem:[%s7670_s0 + $0x31] sm:$0xff] }
   0x7   :  { %v5034_v18 = vpack.c.bf16 %v135_v13, %v135_v13  ;;  %v5035_v24 = vpack.c.bf16 %v136_v15, %v136_v15  ;;  %v5340_v33 = vld [vmem:[%s7671_s1 + $0x4] ss:$8 sps:$4 sm:$0xff]   ;;  %v5342_v34 = vld [vmem:[%s7671_s1] ss:$8 sps:$4 sm:$0xff]   ;;  %v5343_v38 = vld [vmem:[%s7671_s1 + $0x14] ss:$8 sps:$4 sm:$0xff]   ;;  %v218_v41 = vcombine.high %v202_v26, %v202_v26  ;;  %v305_v42 = vcombine.high %v289_v27, %v289_v27 }
   0x8   :  { %258 = vrot.lane.b32.xlu1 %v5041_v17, %s5639_s16  ;;  %v5049_v35 = vpack.c.bf16 %v310_v19, %v310_v19  ;;  %v5048_v39 = vpack.c.bf16 %v309_v20, %v309_v20  ;;  %v133_v44 = vcombine.high %v118_v28, %v118_v28  ;;  %v132_v45 = vcombine.high %v117_v22, %v117_v22  ;;  %v5791_v46 = vld [vmem:[%s7670_s0 + $0x32] sm:$0xff]  ;;  %v5346_v52 = vld [vmem:[%s7671_s1 + $0x24] ss:$8 sps:$4 sm:$0xff]   ;;  %v5348_v63 = vld [vmem:[%s7671_s1 + $0x20] ss:$8 sps:$4 sm:$0xff]  }
   0x9   :  { %171 = vrot.lane.b32.xlu0 %v5034_v18, %s5640_s17  ;;  %631 = vmatprep.subr.bf16.mxu0 %v5340_v33  ;;  %v220_v47 = vcombine.high %v205_v37, %v205_v37  ;;  %v5796_v48 = vld [vmem:[%s7670_s0 + $0x2b] sm:$0xff]  ;;  %v225_v50 = vcombine.low %v203_v29, %v204_v30  ;;  %v5802_v51 = vcombine.low %v290_v31, %v5767_v32  ;;  %v40_v60 = vld [vmem:[%s7670_s0] sm:$0xff]  ;;  %v5832_v3 = vld [vmem:[%s7670_s0 + $0x33] sm:$0xff] }
   0xa   :  { %632 = vmatpush1.bf16.msra.mxu0 %v5342_v34  ;;  %v5345_v49 = vld [vmem:[%s7671_s1 + $0x10] ss:$8 sps:$4 sm:$0xff]   ;;  %v5037_v53 = vpack.c.bf16 %v138_v36, %v138_v36  ;;  %v5036_v54 = vpack.c.bf16 %v137_v40, %v137_v40  ;;  %v224_v55 = vcombine.low %v202_v26, %v218_v41  ;;  %v5809_v56 = vcombine.low %v289_v27, %v305_v42  ;;  %v5349_v4 = vld [vmem:[%s7671_s1 + $0x34] ss:$8 sps:$4 sm:$0xff]   ;;  %v41_v5 = vld [vmem:[%s7670_s0 + $0x8] sm:$0xff] }
   0xb   :  { %633 = vmatprep.subr.bf16.mxu0 %v5343_v38  ;;  %v5812_v57 = vcombine.low %v133_v44, %v5786_v43  ;;  %v5814_v58 = vcombine.low %v132_v45, %v118_v28  ;;  %v219_v59 = vcombine.high %v204_v30, %v204_v30  ;;  %v5820_v61 = vcombine.low %v220_v47, %v5791_v46  ;;  %v5351_v13 = vld [vmem:[%s7671_s1 + $0x30] ss:$8 sps:$4 sm:$0xff]   ;;  %v5352_v17 = vld [vmem:[%s7671_s1 + $0x44] ss:$8 sps:$4 sm:$0xff]   ;;  %v5354_v30 = vld [vmem:[%s7671_s1 + $0x40] ss:$8 sps:$4 sm:$0xff]  }
   0xc   :  { %260 = vrot.lane.b32.xlu1 %v5042_v23, %s5639_s16  ;;  %v307_v62 = vcombine.high %v5796_v48, %v5796_v48  ;;  %v56_v0 = vcombine.high %v40_v60, %v40_v60  ;;  %v5044_v1 = vpack.c.bf16 %v225_v50, %v225_v50  ;;  %v5051_v2 = vpack.c.bf16 %v5802_v51, %v5802_v51  ;;  %v43_v14 = vld [vmem:[%s7670_s0 + $0x18] sm:$0xf]  ;;  %v44_v20 = vld [vmem:[%s7670_s0 + $0x20] sm:$0xff]  ;;  %v42_v21 = vld [vmem:[%s7670_s0 + $0x10] sm:$0xff] }
   0xd   :  { %173 = vrot.lane.b32.xlu0 %v5035_v24, %s5640_s17  ;;  %v5043_v6 = vpack.c.bf16 %v224_v55, %v224_v55  ;;  %v57_v8 = vcombine.high %v41_v5, %v41_v5  ;;  %v5050_v9 = vpack.c.bf16 %v5809_v56, %v5809_v56  ;;  %v5039_v10 = vpack.c.bf16 %v5812_v57, %v5812_v57  ;;  %v5875_v23 = vld [vmem:[%s7671_s1 + $0x50] sm:$0xff]  ;;  %v5880_v24 = vld [vmem:[%s7671_s1 + $0x58] sm:$0xff]  ;;  %v374_v27 = vld [vmem:[%s7670_s0 + $0x4] sm:$0xff] }
   0xe   :  { %634 = vmatpush1.bf16.msra.mxu0 %v5345_v49  ;;  %v62_v7 = vcombine.low %v40_v60, %v56_v0  ;;  %v5038_v11 = vpack.c.bf16 %v5814_v58, %v5814_v58  ;;  %v5848_v12 = vcombine.low %v219_v59, %v205_v37  ;;  %v5046_v15 = vpack.c.bf16 %v5820_v61, %v5820_v61  ;;  %v45_v34 = vld [vmem:[%s7670_s0 + $0x28] sm:$0xff]  ;;  %v46_v38 = vld [vmem:[%s7670_s0 + $0x30] sm:$0xff]  ;;  %v377_v41 = vld [vmem:[%s7670_s0 + $0x1c] sm:$0xf] }
   0xf   :  { %635 = vmatprep.subr.bf16.mxu0 %v5346_v52  ;;  %v5859_v16 = vcombine.low %v307_v62, %v5832_v3  ;;  %v63_v19 = vcombine.low %v41_v5, %v57_v8  ;;  %v306_v22 = vcombine.high %v5767_v32, %v5767_v32  ;;  %v65_v25 = vcombine.low %v43_v14, %v44_v20  ;;  %v375_v32 = vld [vmem:[%s7670_s0 + $0xc] sm:$0xff]  ;;  %v376_v40 = vld [vmem:[%s7670_s0 + $0x14] sm:$0xff]  ;;  %v378_v49 = vld [vmem:[%s7670_s0 + $0x24] sm:$0xff] }
  0x10   :  { %347 = vrot.lane.b32.xlu1 %v5049_v35, %s5641_s14  ;;  %v5027_v18 = vpack.c.bf16 %v62_v7, %v62_v7  ;;  %v58_v26 = vcombine.high %v42_v21, %v42_v21  ;;  %v59_v28 = vcombine.high %v44_v20, %v44_v20  ;;  %v134_v29 = vcombine.high %v5786_v43, %v5786_v43  ;;  %v5355_v42 = vld [vmem:[%s7671_s1 + $0x54] ss:$8 sps:$4 sm:$0xff]   ;;  %v379_v52 = vld [vmem:[%s7670_s0 + $0x2c] sm:$0xff]  ;;  %v47_v0 = vld [vmem:[%s7670_s0 + $0x38] sm:$0xf] }
  0x11   :  { %345 = vrot.lane.b32.xlu0 %v5048_v39, %s5641_s14  ;;  %v5028_v31 = vpack.c.bf16 %v63_v19, %v63_v19  ;;  %v390_v33 = vcombine.high %v374_v27, %v374_v27  ;;  %v5030_v35 = vpack.c.bf16 %v65_v25, %v65_v25  ;;  %v391_v37 = vcombine.high %v375_v32, %v375_v32  ;;  %v380_v59 = vld [vmem:[%s7670_s0 + $0x34] sm:$0xff]  ;;  %v5358_v51 = vld [vmem:[%s7671_s1 + $0x64] ss:$8 sps:$4 sm:$0xff]  }
  0x12   :  { %636 = vmatpush1.bf16.msra.mxu0 %v5348_v63  ;;  %106 = vst.msk [vmem:[#allocation2] sm:$0xf] %vm105_vm0, %v5027_v18  ;;  %v64_v36 = vcombine.low %v42_v21, %v58_v26  ;;  %v60_v39 = vcombine.high %v45_v34, %v45_v34  ;;  %v4753_v44 = vcombine.low %v5875_v23, %v5880_v24  ;;  %v120_v19 = vld [vmem:[%s7670_s0 + $0x39] sm:$0xf]  ;;  %v467_v24 = vld [vmem:[%s7671_s1 + $0x70] sm:$0xff]  ;;  %v470_v61 = vld [vmem:[%s7671_s1 + $0x88] sm:$0xff] }
  0x13   :  { %637 = vmatprep.subr.bf16.mxu0 %v5349_v4  ;;  %107 = vst.msk [vmem:[#allocation2 + $0x8] sm:$0xf] %vm105_vm0, %v5028_v31  ;;  %v396_v45 = vcombine.low %v374_v27, %v390_v33  ;;  %v66_v47 = vcombine.low %v59_v28, %v45_v34  ;;  %v392_v50 = vcombine.high %v376_v40, %v376_v40  ;;  %109 = vst.msk [vmem:[#allocation2 + $0x18] sm:$0xf] %vm105_vm0, %v5030_v35  ;;  %v466_v4 = vld [vmem:[%s7671_s1 + $0x68] sm:$0xff]  ;;  %v468_v25 = vld [vmem:[%s7671_s1 + $0x78] sm:$0xff] }
  0x14   :  { %177 = vrot.lane.b32.xlu1 %v5037_v53, %s5640_s17  ;;  %v5029_v53 = vpack.c.bf16 %v64_v36, %v64_v36  ;;  %v67_v55 = vcombine.low %v60_v39, %v46_v38  ;;  %v399_v56 = vcombine.low %v377_v41, %v378_v49  ;;  %v61_v7 = vcombine.high %v46_v38, %v46_v38  ;;  %v207_v20 = vld [vmem:[%s7670_s0 + $0x3a] sm:$0xf]  ;;  %v5363_v43 = vld [vmem:[%s7671_s1 + $0x84] ss:$8 sps:$4 sm:$0xff]   ;;  %v471_v36 = vld [vmem:[%s7671_s1 + $0x90] sm:$0xff] }
  0x15   :  { %175 = vrot.lane.b32.xlu0 %v5036_v54, %s5640_s17  ;;  %v397_v54 = vcombine.low %v375_v32, %v391_v37  ;;  %v5055_v60 = vpack.c.bf16 %v396_v45, %v396_v45  ;;  %v5031_v62 = vpack.c.bf16 %v66_v47, %v66_v47  ;;  %v398_v63 = vcombine.low %v376_v40, %v392_v50  ;;  %v5361_v57 = vld [vmem:[%s7671_s1 + $0x74] ss:$8 sps:$4 sm:$0xff]  }
  0x16   :  { %638 = vmatpush1.bf16.msra.mxu0 %v5351_v13  ;;  %108 = vst.msk [vmem:[#allocation2 + $0x10] sm:$0xf] %vm105_vm0, %v5029_v53  ;;  %v5032_v5 = vpack.c.bf16 %v67_v55, %v67_v55  ;;  %v394_v13 = vcombine.high %v379_v52, %v379_v52  ;;  %v395_v14 = vcombine.high %v380_v59, %v380_v59  ;;  %v472_v37 = vld [vmem:[%s7671_s1 + $0x98] sm:$0xff] }
  0x17   :  { %639 = vmatprep.subr.bf16.mxu0 %v5352_v17  ;;  %439 = vst.msk [vmem:[#allocation2 + $0x4] sm:$0xf] %vm105_vm0, %v5055_v60  ;;  %110 = vst.msk [vmem:[#allocation2 + $0x20] sm:$0xf] %vm105_vm0, %v5031_v62  ;;  %v5057_v8 = vpack.c.bf16 %v398_v63, %v398_v63  ;;  %v5045_v17 = vpack.c.bf16 %v5848_v12, %v5848_v12  ;;  %v313_v18 = vcombine.low %v306_v22, %v5796_v48  ;;  %v381_v48 = vld [vmem:[%s7670_s0 + $0x3c] sm:$0xf] }
  0x18   :  { %264 = vrot.lane.b32.xlu1 %v5044_v1, %s5639_s16  ;;  %v465_v1 = vld [vmem:[%s7671_s1 + $0x60] sm:$0xff]  ;;  %v221_v21 = vcombine.high %v5791_v46, %v5791_v46  ;;  %111 = vst.msk [vmem:[#allocation2 + $0x28] sm:$0xf] %vm105_vm0, %v5032_v5  ;;  %v68_v12 = vcombine.low %v61_v7, %v47_v0  ;;  %v401_v22 = vcombine.low %v394_v13, %v380_v59  ;;  %v5367_v38 = vld [vmem:[%s7671_s1 + $0x94] ss:$8 sps:$4 sm:$0xff]  }
  0x19   :  { %262 = vrot.lane.b32.xlu0 %v5043_v6, %s5639_s16  ;;  %v5058_v6 = vpack.c.bf16 %v399_v56, %v399_v56  ;;  %441 = vst.msk [vmem:[#allocation2 + $0x14] sm:$0xf] %vm105_vm0, %v5057_v8  ;;  %v402_v23 = vcombine.low %v395_v14, %v381_v48  ;;  %v4755_v58 = vcombine.low %v465_v1, %v466_v4 }
  0x1a   :  { %640 = vmatpush1.bf16.msra.mxu0 %v5354_v30  ;;  %v5060_v26 = vpack.c.bf16 %v401_v22, %v401_v22  ;;  %v5053_v28 = vpack.c.bf16 %v5859_v16, %v5859_v16  ;;  %v294_v30 = vld [vmem:[%s7670_s0 + $0x3b] sm:$0xf]  ;;  %v308_v31 = vcombine.high %v5832_v3, %v5832_v3  ;;  %v5052_v32 = vpack.c.bf16 %v313_v18, %v313_v18  ;;  %v469_v3 = vld [vmem:[%s7671_s1 + $0x80] sm:$0xff] }
  0x1b   :  { %641 = vmatprep.subr.bf16.mxu0 %v5355_v42  ;;  %442 = vst.msk [vmem:[#allocation2 + $0x1c] sm:$0xf] %vm105_vm0, %v5058_v6  ;;  %v5061_v27 = vpack.c.bf16 %v402_v23, %v402_v23  ;;  %v141_v16 = vcombine.low %v134_v29, %v120_v19  ;;  %v228_v33 = vcombine.low %v221_v21, %v207_v20 }
  0x1c   :  { %351 = vrot.lane.b32.xlu1 %v5051_v2, %s5641_s14  ;;  %v5056_v2 = vpack.c.bf16 %v397_v54, %v397_v54  ;;  %444 = vst.msk [vmem:[#allocation2 + $0x2c] sm:$0xf] %vm105_vm0, %v5060_v26  ;;  %v315_v35 = vcombine.low %v308_v31, %v294_v30  ;;  %v4759_v39 = vcombine.low %v469_v3, %v470_v61 }
  0x1d   :  { %349 = vrot.lane.b32.xlu0 %v5050_v9, %s5641_s14  ;;  %v393_v9 = vcombine.high %v378_v49, %v378_v49  ;;  %445 = vst.msk [vmem:[#allocation2 + $0x34] sm:$0xf] %vm105_vm0, %v5061_v27  ;;  %v5040_v29 = vpack.c.bf16 %v141_v16, %v141_v16  ;;  %v5047_v34 = vpack.c.bf16 %v228_v33, %v228_v33 }
  0x1e   :  { %440 = vst.msk [vmem:[#allocation2 + $0xc] sm:$0xf] %vm105_vm0, %v5056_v2  ;;  %642 = vmatpush1.bf16.msra.mxu0 %v4753_v44  ;;  %v5054_v40 = vpack.c.bf16 %v315_v35, %v315_v35  ;;  %v4761_v41 = vcombine.low %v471_v36, %v472_v37 }
  0x1f   :  { %v400_v46 = vcombine.low %v393_v9, %v379_v52  ;;  %643 = vmatprep.subr.bf16.mxu0 %v5358_v51 }
  0x20   :  { %181 = vrot.lane.b32.xlu1 %v5039_v10, %s5640_s17  ;;  %v5033_v10 = vpack.c.bf16 %v68_v12, %v68_v12 }
  0x21   :  { %179 = vrot.lane.b32.xlu0 %v5038_v11, %s5640_s17  ;;  %v5059_v11 = vpack.c.bf16 %v400_v46, %v400_v46 }
  0x22   :  { %112 = vst.msk [vmem:[#allocation2 + $0x30] sm:$0xf] %vm105_vm0, %v5033_v10  ;;  %644 = vmatpush1.bf16.msra.mxu0 %v4755_v58 }
  0x23   :  { %443 = vst.msk [vmem:[#allocation2 + $0x24] sm:$0xf] %vm105_vm0, %v5059_v11  ;;  %645 = vmatprep.subr.bf16.mxu0 %v5361_v57 }
  0x24   :  { %268 = vrot.lane.b32.xlu1 %v5046_v15, %s5639_s16  ;;  %v4757_v15 = vcombine.low %v467_v24, %v468_v25 }
  0x25   :  { %266 = vrot.lane.b32.xlu0 %v5045_v17, %s5639_s16 }
  0x26   :  { %646 = vmatpush1.bf16.msra.mxu0 %v4757_v15 }
  0x27   :  { %647 = vmatprep.subr.bf16.mxu0 %v5363_v43 }
  0x28   :  { %355 = vrot.lane.b32.xlu1 %v5053_v28, %s5641_s14 }
  0x29   :  { %353 = vrot.lane.b32.xlu0 %v5052_v32, %s5641_s14 }
  0x2a   :  { %648 = vmatpush1.bf16.msra.mxu0 %v4759_v39 }
  0x2b   :  { %649 = vmatprep.subr.bf16.mxu0 %v5367_v38 }
  0x2c   :  { %270 = vrot.lane.b32.xlu1 %v5047_v34, %s5639_s16 }
  0x2d   :  { %183 = vrot.lane.b32.xlu0 %v5040_v29, %s5640_s17 }
  0x2e   :  { %650 = vmatpush1.bf16.msra.mxu0 %v4761_v41 }
  0x31   :  { %357 = vrot.lane.b32.xlu0 %v5054_v40, %s5641_s14 }
  0x32   :  { %16 = vsyncpa [#allocation6], 0  ;;  %vm192_vm1 = vcmask 519424   ;;  %vm279_vm2 = vcmask 781824   ;;  %vm366_vm3 = vcmask 1044224   ;;  %vm7711_vm4 = vcmask 261120  }
  0x33   :  { %v5373_v59 = vld [vmem:[#allocation2 + $0x4] ss:$8 sps:$4 sm:$0xff]   ;;  %v5377_v5 = vld [vmem:[#allocation2 + $0x14] ss:$8 sps:$4 sm:$0xff]   ;;  %v475_v12 = vlaneseq  ;;  %v473_v22 = vld [vmem:[%s7672_s2] sm:$0x3] }
  0x34   :  { %4763 = vmatprep.mubr.msk.bf16.mxu0 %vm7711_vm4, %v5373_v59  ;;  %v5380_v17 = vld [vmem:[#allocation2 + $0x24] ss:$8 sps:$4 sm:$0xff]   ;;  %v5642_v24 = vmov 1983009808   ;;  %s5643_s2 = smov 122   ;;  %vm1108_vm5 = vcmask 998400  }
  0x35   :  { %v6046_v48 = vshrl.u32 %v475_v12, 7  ;;  %v733_v25 = vunpack.c.l.s4 %v5642_v24  ;;  %vm1698_vm6 = vcmask 1041409   ;;  %vm1701_vm7 = vcmask 1042434   ;;  %s5644_s29 = smov 34   ;;  %s5645_s24 = smov 68  }
  0x36   :  { %vm1707_vm8 = vcmask 1044484   ;;  %vm1704_vm9 = vcmask 1043459   ;;  %vm1710_vm10 = vcmask 1045509   ;;  %vm1713_vm11 = vcmask 1046534   ;;  %s5646_s25 = smov 102   ;;  %s5647_s22 = smov 8  }
  0x37   :  { %7712 = vst [vmem:[#allocation8_spill] sm:$0xff] %v6046_v48  ;;  %v6049_v46 = vsub.s32 0, %v6046_v48  ;;  %v7682_v23 = vsub.s32 1, %v6046_v48  ;;  %v734_v11 = vunpack.c.0.s8 %v733_v25  ;;  %vm1716_vm12 = vcmask 1047559   ;;  %s5653_s30 = smov 48   ;;  %s5656_s28 = smov [#allocation5]  }
  0x38   :  { %vm7710_vm13 = vcmask 1043456   ;;  %vm1779_vm14 = vcmask 277508   ;;  %vm7709_vm15 = vcmask 1041408  }
  0x39   :  { %7713 = vst [vmem:[#allocation9_spill] sm:$0xff] %v6049_v46  ;;  %v6056_v57 = vrot.slane %v473_v22, %v6049_v46  ;;  %v6060_v10 = vrot.slane %v473_v22, %v7682_v23  ;;  %v6066_v3 = vsub.s32 %v734_v11, %v6046_v48  ;;  %vm6839_vm0 = vmor %vm1779_vm14, %vm7710_vm13  ;;  %vm1889_vm14 = vcmask 556036  }
  0x3a   :  { %vm1991_vm13 = vcmask 556032  }
  0x3b   :  { %7714 = vst [vmem:[#allocation10_spill] sm:$0xff] %v6066_v3 }
  0x7a   :  { %v259_v42 = vpop.permute.xlu1 %258 }
  0x7b   :  { %v172_v44 = vpop.permute.xlu0 %171 }
  0x7c   :  { %193 = vst.msk [vmem:[#allocation2] sm:$0xf] %vm192_vm1, %v172_v44 }
  0x7d   :  { %280 = vst.msk [vmem:[#allocation2] sm:$0xf] %vm279_vm2, %v259_v42 }
  0x7e   :  { %v261_v45 = vpop.permute.xlu1 %260 }
  0x7f   :  { %v174_v47 = vpop.permute.xlu0 %173 }
  0x80   :  { %194 = vst.msk [vmem:[#allocation2 + $0x8] sm:$0xf] %vm192_vm1, %v174_v47 }
  0x81   :  { %281 = vst.msk [vmem:[#allocation2 + $0x8] sm:$0xf] %vm279_vm2, %v261_v45 }
  0x82   :  { %v348_v49 = vpop.permute.xlu1 %347 }
  0x83   :  { %v346_v50 = vpop.permute.xlu0 %345  ;;  %368 = vst.msk [vmem:[#allocation2 + $0x8] sm:$0xf] %vm366_vm3, %v348_v49 }
  0x84   :  { %367 = vst.msk [vmem:[#allocation2] sm:$0xf] %vm366_vm3, %v346_v50 }
  0x86   :  { %v178_v52 = vpop.permute.xlu1 %177 }
  0x87   :  { %v176_v53 = vpop.permute.xlu0 %175  ;;  %196 = vst.msk [vmem:[#allocation2 + $0x18] sm:$0xf] %vm192_vm1, %v178_v52 }
  0x88   :  { %195 = vst.msk [vmem:[#allocation2 + $0x10] sm:$0xf] %vm192_vm1, %v176_v53 }
  0x8a   :  { %v265_v54 = vpop.permute.xlu1 %264 }
  0x8b   :  { %v263_v55 = vpop.permute.xlu0 %262  ;;  %v5371_v56 = vld [vmem:[#allocation2] ss:$8 sps:$4 sm:$0xff]   ;;  %283 = vst.msk [vmem:[#allocation2 + $0x18] sm:$0xf] %vm279_vm2, %v265_v54 }
  0x8c   :  { %282 = vst.msk [vmem:[#allocation2 + $0x10] sm:$0xf] %vm279_vm2, %v263_v55  ;;  %664 = vmatmul.mubr.bf16.vlgmr.msra.gmra.mrb[0].mxu0 %v5371_v56 }
  0x8d   :  { %4764 = vmatprep.mubr.msk.bf16.mxu0 %vm7711_vm4, %v5377_v5 }
  0x8e   :  { %v352_v60 = vpop.permute.xlu1 %351 }
  0x8f   :  { %v350_v62 = vpop.permute.xlu0 %349  ;;  %370 = vst.msk [vmem:[#allocation2 + $0x18] sm:$0xf] %vm366_vm3, %v352_v60 }
  0x90   :  { %369 = vst.msk [vmem:[#allocation2 + $0x10] sm:$0xf] %vm366_vm3, %v350_v62 }
  0x92   :  { %v182_v63 = vpop.permute.xlu1 %181 }
  0x93   :  { %v180_v0 = vpop.permute.xlu0 %179  ;;  %198 = vst.msk [vmem:[#allocation2 + $0x28] sm:$0xf] %vm192_vm1, %v182_v63 }
  0x94   :  { %197 = vst.msk [vmem:[#allocation2 + $0x20] sm:$0xf] %vm192_vm1, %v180_v0 }
  0x96   :  { %v269_v1 = vpop.permute.xlu1 %268  ;;  %v449_v2 = vld [vmem:[#allocation2 + $0x18] sm:$0xff] }
  0x97   :  { %v267_v4 = vpop.permute.xlu0 %266  ;;  %v448_v51 = vld [vmem:[#allocation2 + $0x10] sm:$0xff]  ;;  %285 = vst.msk [vmem:[#allocation2 + $0x28] sm:$0xf] %vm279_vm2, %v269_v1 }
  0x98   :  { %284 = vst.msk [vmem:[#allocation2 + $0x20] sm:$0xf] %vm279_vm2, %v267_v4  ;;  %v4737_v6 = vcombine.low %v448_v51, %v449_v2 }
  0x9a   :  { %674 = vmatmul.mubr.bf16.gmra.mrb[4].mxu0 %v4737_v6  ;;  %v356_v7 = vpop.permute.xlu1 %355 }
  0x9b   :  { %v354_v8 = vpop.permute.xlu0 %353  ;;  %372 = vst.msk [vmem:[#allocation2 + $0x28] sm:$0xf] %vm366_vm3, %v356_v7  ;;  %4765 = vmatprep.mubr.msk.bf16.mxu0 %vm7711_vm4, %v5380_v17 }
  0x9c   :  { %371 = vst.msk [vmem:[#allocation2 + $0x20] sm:$0xf] %vm366_vm3, %v354_v8 }
  0x9e   :  { %v271_v13 = vpop.permute.xlu1 %270 }
  0x9f   :  { %v184_v9 = vpop.permute.xlu0 %183 }
  0xa0   :  { %199 = vst.msk [vmem:[#allocation2 + $0x30] sm:$0xf] %vm192_vm1, %v184_v9  ;;  %vm1784_vm1 = vcmask 275460  }
  0xa1   :  { %286 = vst.msk [vmem:[#allocation2 + $0x30] sm:$0xf] %vm279_vm2, %v271_v13  ;;  %vm1785_vm2 = vmor %vm1784_vm1, %vm7709_vm15  ;;  %vm1999_vm15 = vcmask 834564  }
  0xa3   :  { %v358_v14 = vpop.permute.xlu0 %357  ;;  %v5382_v18 = vld [vmem:[#allocation2 + $0x20] ss:$8 sps:$4 sm:$0xff]  }
  0xa4   :  { %373 = vst.msk [vmem:[#allocation2 + $0x30] sm:$0xf] %vm366_vm3, %v358_v14  ;;  %684 = vmatmul.mubr.bf16.gmra.mrb[8].mxu0 %v5382_v18  ;;  %vm1888_vm3 = vcmask 1043728  }
  0xa5   :  { %vm6922_vm1 = vmor %vm1889_vm14, %vm1888_vm3  ;;  %vm1894_vm3 = vcmask 553988   ;;  %vm1998_vm14 = vcmask 1044000  }
  0xab   :  { %v452_v19 = vld [vmem:[#allocation2 + $0x30] sm:$0xff] }
  0xac   :  { %v4742_v20 = vcombine.high %v452_v19, %v452_v19  ;;  %v4741_v21 = vcombine.low %v452_v19, %v452_v19 }
  0xae   :  { %4766 = vmatprep.mubr.msk.bf16.mxu0 %vm7711_vm4, %v4742_v20  ;;  %vm2115_vm4 = vcmask 60416  }
  0xaf   :  { %694 = vmatmul.mubr.bf16.gmra.mrb[12].mxu0 %v4741_v21 }
 0x15f   :  { %v665_v58 = vpop.f32.mrb[0].mxu0 }
 0x160   :  { %v666_v26 = vadd.f32 %v665_v58, %v6056_v57  ;;  %v667_v27 = vpop.f32.mrb[1].mxu0 }
 0x161   :  { %v668_v28 = vadd.f32 %v667_v27, %v6060_v10  ;;  %v669_v30 = vpop.f32.mrb[2].mxu0 }
 0x162   :  { %v702_v31 = vmax.f32 %v666_v26, 0.0  ;;  %v670_v32 = vadd.f32 %v669_v30, %v6056_v57  ;;  %v671_v16 = vpop.f32.mrb[3].mxu0 }
 0x163   :  { %v703_v33 = vmax.f32 %v668_v28, 0.0  ;;  %v672_v61 = vadd.f32 %v671_v16, %v6060_v10 }
 0x164   :  { %v704_v43 = vmax.f32 %v670_v32, 0.0 }
 0x165   :  { %v730_v15 = vcombine.low %v702_v31, %v703_v33  ;;  %v731_v29 = vcombine.high %v702_v31, %v703_v33  ;;  %v705_v34 = vmax.f32 %v672_v61, 0.0 }
 0x167   :  { %v6070_v35 = vrot.slane %v730_v15, %v6066_v3  ;;  %v748_v36 = vcombine.low %v704_v43, %v705_v34  ;;  %v749_v37 = vcombine.high %v704_v43, %v705_v34  ;;  %v745_v47 = vrot.slane %v731_v29, %v6066_v3 }
 0x169   :  { %v756_v38 = vrot.slane %v748_v36, %v6066_v3  ;;  %v746_v39 = vcombine.high %v6070_v35, %v6070_v35  ;;  %v4769_v51 = vrot.slane %v745_v47, 9  ;;  %v747_v7 = vcombine.high %v745_v47, %v745_v47 }
 0x16a   :  { %v763_v33 = vrot.slane %v749_v37, %v6066_v3 }
 0x16b   :  { %v4768_v44 = vrot.slane %v746_v39, 9  ;;  %v4771_v45 = vrot.slane %v756_v38, 9  ;;  %v6099_v17 = vmax.f32 %v745_v47, %v4769_v51  ;;  %v4770_v20 = vrot.slane %v747_v7, 9 }
 0x16c   :  { %v764_v43 = vcombine.high %v756_v38, %v756_v38  ;;  %v765_v37 = vcombine.high %v763_v33, %v763_v33  ;;  %v4773_v51 = vrot.slane %v763_v33, 9 }
 0x16d   :  { %v675_v40 = vpop.f32.mrb[4].mxu0  ;;  %v6079_v55 = vmax.f32 %v746_v39, %v4768_v44  ;;  %v6081_v56 = vmax.f32 %v756_v38, %v4771_v45  ;;  %v6115_v32 = vmax.f32 %v747_v7, %v4770_v20 }
 0x16e   :  { %v676_v41 = vadd.f32 %v675_v40, %v6056_v57  ;;  %v677_v42 = vpop.f32.mrb[5].mxu0  ;;  %v4772_v47 = vrot.slane %v764_v43, 9 }
 0x16f   :  { %v678_v49 = vadd.f32 %v677_v42, %v6060_v10  ;;  %v679_v50 = vpop.f32.mrb[6].mxu0  ;;  %v5234_v63 = vpack.i.bf16 %v6081_v56, %v6079_v55 }
 0x170   :  { %v706_v52 = vmax.f32 %v676_v41, 0.0  ;;  %v680_v53 = vadd.f32 %v679_v50, %v6056_v57  ;;  %v681_v54 = vpop.f32.mrb[7].mxu0 }
 0x171   :  { %v707_v59 = vmax.f32 %v678_v49, 0.0  ;;  %v682_v60 = vadd.f32 %v681_v54, %v6060_v10  ;;  %5235 = vrot.lane.b32.xlu1 %v5234_v63, %s5643_s2 }
 0x172   :  { %v708_v62 = vmax.f32 %v680_v53, 0.0 }
 0x173   :  { %v766_v0 = vcombine.low %v706_v52, %v707_v59  ;;  %v767_v1 = vcombine.high %v706_v52, %v707_v59  ;;  %v709_v4 = vmax.f32 %v682_v60, 0.0 }
 0x175   :  { %v6088_v2 = vrot.slane %v767_v1, %v6066_v3  ;;  %v6090_v5 = vcombine.low %v708_v62, %v709_v4  ;;  %v785_v6 = vcombine.high %v708_v62, %v709_v4  ;;  %v6097_v13 = vrot.slane %v766_v0, %v6066_v3 }
 0x177   :  { %v6093_v8 = vrot.slane %v785_v6, %v6066_v3  ;;  %v4777_v9 = vrot.slane %v6088_v2, 9  ;;  %v685_v14 = vpop.f32.mrb[8].mxu0  ;;  %v782_v28 = vcombine.high %v6097_v13, %v6097_v13 }
 0x178   :  { %v686_v21 = vadd.f32 %v685_v14, %v6056_v57  ;;  %v687_v12 = vpop.f32.mrb[9].mxu0  ;;  %v6133_v14 = vmax.f32 %v764_v43, %v4772_v47 }
 0x179   :  { %v6102_v18 = vmax.f32 %v6088_v2, %v4777_v9  ;;  %v801_v19 = vcombine.high %v6093_v8, %v6093_v8  ;;  %v688_v22 = vadd.f32 %v687_v12, %v6060_v10  ;;  %v689_v24 = vpop.f32.mrb[10].mxu0  ;;  %v4776_v39 = vrot.slane %v782_v28, 9 }
 0x17a   :  { %v710_v11 = vmax.f32 %v686_v21, 0.0  ;;  %v690_v26 = vadd.f32 %v689_v24, %v6056_v57  ;;  %v691_v27 = vpop.f32.mrb[11].mxu0 }
 0x17b   :  { %v5239_v25 = vpack.i.bf16 %v6102_v18, %v6099_v17  ;;  %v4782_v58 = vrot.slane %v801_v19, 9  ;;  %v711_v30 = vmax.f32 %v688_v22, 0.0  ;;  %v692_v31 = vadd.f32 %v691_v27, %v6060_v10 }
 0x17c   :  { %v712_v61 = vmax.f32 %v690_v26, 0.0  ;;  %v6129_v1 = vmax.f32 %v782_v28, %v4776_v39  ;;  %v4775_v26 = vrot.slane %v6097_v13, 9  ;;  %v4767_v39 = vrot.slane %v6070_v35, 9 }
 0x17d   :  { %5240 = vrot.lane.b32.xlu1 %v5239_v25, %s5643_s2  ;;  %v6117_v16 = vmax.f32 %v801_v19, %v4782_v58  ;;  %v802_v15 = vcombine.low %v710_v11, %v711_v30  ;;  %v803_v29 = vcombine.high %v710_v11, %v711_v30  ;;  %v713_v34 = vmax.f32 %v692_v31, 0.0 }
 0x17e   :  { %v4774_v25 = vrot.slane %v765_v37, 9  ;;  %v6143_v58 = vrot.slane %v6090_v5, %v6066_v3  ;;  %v6146_v11 = vmax.f32 %v763_v33, %v4773_v51  ;;  %v783_v33 = vcombine.high %v6088_v2, %v6088_v2  ;;  %v5391_v51 = vld [vmem:[%s7673_s3 + $0x24] ss:$8 sps:$4 sm:$0xff]  }
 0x17f   :  { %v5244_v36 = vpack.i.bf16 %v6117_v16, %v6115_v32  ;;  %v810_v40 = vrot.slane %v802_v15, %v6066_v3  ;;  %v817_v41 = vrot.slane %v803_v29, %v6066_v3  ;;  %v820_v42 = vcombine.low %v712_v61, %v713_v34 }
 0x180   :  { %v821_v44 = vcombine.high %v712_v61, %v713_v34  ;;  %v6161_v15 = vmax.f32 %v765_v37, %v4774_v25  ;;  %v4781_v29 = vrot.slane %v6093_v8, 9  ;;  %v4779_v47 = vrot.slane %v6143_v58, 9 }
 0x181   :  { %5245 = vrot.lane.b32.xlu0 %v5244_v36, %s5643_s2  ;;  %v828_v38 = vrot.slane %v820_v42, %v6066_v3  ;;  %v4783_v53 = vrot.slane %v810_v40, 9  ;;  %v818_v59 = vcombine.high %v810_v40, %v810_v40  ;;  %v4785_v60 = vrot.slane %v817_v41, 9 }
 0x182   :  { %v695_v45 = vpop.f32.mrb[12].mxu0  ;;  %v835_v49 = vrot.slane %v821_v44, %v6066_v3  ;;  %v819_v62 = vcombine.high %v817_v41, %v817_v41  ;;  %v6166_v36 = vmax.f32 %v6097_v13, %v4775_v26  ;;  %v6180_v13 = vmax.f32 %v6093_v8, %v4781_v29 }
 0x183   :  { %v696_v50 = vadd.f32 %v695_v45, %v6056_v57  ;;  %v697_v52 = vpop.f32.mrb[13].mxu0  ;;  %v6131_v4 = vmax.f32 %v810_v40, %v4783_v53  ;;  %v4784_v9 = vrot.slane %v818_v59, 9  ;;  %v4787_v20 = vrot.slane %v828_v38, 9 }
 0x184   :  { %v698_v54 = vadd.f32 %v697_v52, %v6060_v10  ;;  %v699_v63 = vpop.f32.mrb[14].mxu0  ;;  %v4786_v57 = vrot.slane %v819_v62, 9  ;;  %v6137_v10 = vmax.f32 %v817_v41, %v4785_v60  ;;  %v837_v21 = vcombine.high %v835_v49, %v835_v49  ;;  %v5385_v60 = vld [vmem:[%s7673_s3 + $0x4] ss:$8 sps:$4 sm:$0xff]  }
 0x185   :  { %v714_v0 = vmax.f32 %v696_v50, 0.0  ;;  %v700_v6 = vpop.f32.mrb[15].mxu0  ;;  %v5249_v19 = vpack.i.bf16 %v6131_v4, %v6129_v1  ;;  %v6139_v24 = vmax.f32 %v818_v59, %v4784_v9  ;;  %v4789_v31 = vrot.slane %v835_v49, 9  ;;  %v5388_v63 = vld [vmem:[%s7673_s3 + $0x14] ss:$8 sps:$4 sm:$0xff]   ;;  %2942 = vmatprep.subr.bf16.mxu1 %v5385_v60 }
 0x186   :  { %v715_v7 = vmax.f32 %v698_v54, 0.0  ;;  %v6152_v30 = vmax.f32 %v819_v62, %v4786_v57  ;;  %v5254_v61 = vpack.i.bf16 %v6137_v10, %v6146_v11  ;;  %v6156_v43 = vmax.f32 %v828_v38, %v4787_v20  ;;  %v5387_v62 = vld [vmem:[%s7673_s3] ss:$8 sps:$4 sm:$0xff]  }
 0x187   :  { %5250 = vrot.lane.b32.xlu0 %v5249_v19, %s5643_s2  ;;  %v5259_v28 = vpack.i.bf16 %v6139_v24, %v6133_v14  ;;  %v4790_v5 = vrot.slane %v837_v21, 9  ;;  %v836_v34 = vcombine.high %v828_v38, %v828_v38  ;;  %v6171_v41 = vmax.f32 %v835_v49, %v4789_v31  ;;  %2943 = vmatpush1.bf16.msra.mxu1 %v5387_v62  ;;  %v5394_v19 = vld [vmem:[%s7673_s3 + $0x34] ss:$8 sps:$4 sm:$0xff]  }
 0x188   :  { %v838_v12 = vcombine.low %v714_v0, %v715_v7  ;;  %v839_v22 = vcombine.high %v714_v0, %v715_v7  ;;  %v5264_v40 = vpack.i.bf16 %v6152_v30, %v6161_v15  ;;  %v5269_v42 = vpack.i.bf16 %v6156_v43, %v6166_v36  ;;  %v5390_v0 = vld [vmem:[%s7673_s3 + $0x10] ss:$8 sps:$4 sm:$0xff]   ;;  %2944 = vmatprep.subr.bf16.mxu1 %v5388_v63  ;;  %v5393_v7 = vld [vmem:[%s7673_s3 + $0x20] ss:$8 sps:$4 sm:$0xff]  }
 0x189   :  { %5260 = vrot.lane.b32.xlu1 %v5259_v28, %s5643_s2  ;;  %v6175_v44 = vmax.f32 %v837_v21, %v4790_v5  ;;  %v4778_v45 = vrot.slane %v783_v33, 9  ;;  %v4788_v37 = vrot.slane %v836_v34, 9  ;;  %v6184_v38 = vmax.f32 %v6070_v35, %v4767_v39  ;;  %v5396_v28 = vld [vmem:[%s7673_s3 + $0x30] ss:$8 sps:$4 sm:$0xff]  }
 0x18a   :  { %v846_v27 = vrot.slane %v838_v12, %v6066_v3  ;;  %v5274_v49 = vpack.i.bf16 %v6180_v13, %v6171_v41  ;;  %v6195_v54 = vmax.f32 %v6143_v58, %v4779_v47  ;;  %v853_v20 = vrot.slane %v839_v22, %v6066_v3  ;;  %v5397_v22 = vld [vmem:[%s7673_s3 + $0x44] ss:$8 sps:$4 sm:$0xff]   ;;  %v5402_v63 = vld [vmem:[%s7673_s3 + $0x50] ss:$8 sps:$4 sm:$0xff]  }
 0x18b   :  { %5255 = vrot.lane.b32.xlu0 %v5254_v61, %s5643_s2  ;;  %v5279_v52 = vpack.i.bf16 %v6184_v38, %v6175_v44  ;;  %v6192_v53 = vmax.f32 %v783_v33, %v4778_v45  ;;  %v6198_v8 = vmax.f32 %v836_v34, %v4788_v37  ;;  %2945 = vmatpush1.bf16.msra.mxu1 %v5390_v0  ;;  %v6230_v26 = vsub.s32 2, %v6046_v48 }
 0x18c   :  { %v4791_v2 = vrot.slane %v846_v27, 9  ;;  %2946 = vmatprep.subr.bf16.mxu1 %v5391_v51  ;;  %v854_v25 = vcombine.high %v846_v27, %v846_v27  ;;  %v800_v33 = vcombine.high %v6143_v58, %v6143_v58  ;;  %v4793_v34 = vrot.slane %v853_v20, 9  ;;  %v5400_v58 = vld [vmem:[%s7673_s3 + $0x54] ss:$8 sps:$4 sm:$0xff]  }
 0x18d   :  { %5265 = vrot.lane.b32.xlu1 %v5264_v40, %s5643_s2  ;;  %v5289_v59 = vpack.i.bf16 %v6195_v54, %v6192_v53  ;;  %7715 = vst [vmem:[#allocation11_spill] sm:$0xff] %v6230_v26  ;;  %v855_v39 = vcombine.high %v853_v20, %v853_v20 }
 0x18e   :  { %v6188_v50 = vmax.f32 %v846_v27, %v4791_v2  ;;  %v4792_v29 = vrot.slane %v854_v25, 9  ;;  %v6258_v60 = vmax.f32 %v853_v20, %v4793_v34 }
 0x18f   :  { %5270 = vrot.lane.b32.xlu0 %v5269_v42, %s5643_s2  ;;  %2947 = vmatpush1.bf16.msra.mxu1 %v5393_v7  ;;  %v4794_v62 = vrot.slane %v855_v39, 9 }
 0x190   :  { %v5284_v35 = vpack.i.bf16 %v6188_v50, %v6198_v8  ;;  %2948 = vmatprep.subr.bf16.mxu1 %v5394_v19  ;;  %7717 = vst [vmem:[#allocation13_spill] sm:$0xff] %v6258_v60 }
 0x191   :  { %5275 = vrot.lane.b32.xlu1 %v5274_v49, %s5643_s2 }
 0x193   :  { %5280 = vrot.lane.b32.xlu0 %v5279_v52, %s5643_s2  ;;  %2949 = vmatpush1.bf16.msra.mxu1 %v5396_v28  ;;  %v4780_v52 = vrot.slane %v800_v33, 9 }
 0x194   :  { %2950 = vmatprep.subr.bf16.mxu1 %v5397_v22 }
 0x195   :  { %5285 = vrot.lane.b32.xlu1 %v5284_v35, %s5643_s2 }
 0x197   :  { %5290 = vrot.lane.b32.xlu0 %v5289_v59, %s5643_s2  ;;  %v6256_v59 = vmax.f32 %v854_v25, %v4792_v29 }
 0x199   :  { %7716 = vst [vmem:[#allocation12_spill] sm:$0xff] %v6256_v59 }
 0x1e3   :  { %v5236_v6 = vpop.permute.xlu1 %5235 }
 0x1e4   :  { %v5238_v9 = vunpack.i.h.bf16 %v5236_v6  ;;  %v5237_v57 = vunpack.i.l.bf16 %v5236_v6 }
 0x1e6   :  { %v1084_v21 = vrot.slane %v5238_v9, 2  ;;  %v1081_v12 = vrot.slane %v5237_v57, 2 }
 0x1e8   :  { %v1113_v31 = vsel %vm1108_vm5, %v5238_v9, %v1084_v21  ;;  %v1110_v61 = vsel %vm1108_vm5, %v5237_v57, %v1081_v12  ;;  %v5403_v57 = vld [vmem:[%s7673_s3 + $0x64] ss:$8 sps:$4 sm:$0xff]   ;;  %v6268_v21 = vmax.f32 %v800_v33, %v4780_v52  ;;  %v5405_v33 = vld [vmem:[%s7673_s3 + $0x60] ss:$8 sps:$4 sm:$0xff]  }
 0x1e9   :  { %v1169_v5 = vmax.f32 %v6081_v56, %v1113_v31  ;;  %v1166_v27 = vmax.f32 %v6079_v55, %v1110_v61  ;;  %v5399_v56 = vld [vmem:[%s7673_s3 + $0x40] ss:$8 sps:$4 sm:$0xff]  }
 0x1ea   :  { %2951 = vmatpush1.bf16.msra.mxu1 %v5399_v56  ;;  %7718 = vst [vmem:[#allocation14_spill] sm:$0xff] %v6268_v21 }
 0x1eb   :  { %v1256_v40 = vrot.slane %v1169_v5, %v6049_v46  ;;  %v1260_v2 = vrot.slane %v1169_v5, %v6230_v26  ;;  %v1232_v42 = vrot.slane %v1166_v27, %v6049_v46  ;;  %v1236_v45 = vrot.slane %v1166_v27, %v6230_v26  ;;  %2952 = vmatprep.subr.bf16.mxu1 %v5400_v58 }
 0x1ed   :  { %v6254_v47 = vpack.c.bf16 %v1236_v45, %v1232_v42  ;;  %v5066_v35 = vpack.c.bf16 %v1260_v2, %v1256_v40  ;;  %v6291_v40 = vmax.f32 %v855_v39, %v4794_v62 }
 0x1ee   :  { %2953 = vmatpush1.bf16.msra.mxu1 %v5402_v63  ;;  %v5408_v63 = vld [vmem:[%s7673_s3 + $0x70] ss:$8 sps:$4 sm:$0xff]  }
 0x1ef   :  { %v5241_v55 = vpop.permute.xlu1 %5240  ;;  %v7684_v0 = vunpack.c.l.b16 %v6254_v47  ;;  %v7683_v51 = vunpack.c.h.b16 %v6254_v47  ;;  %v6270_v12 = vunpack.c.l.b16 %v5066_v35  ;;  %v6272_v25 = vunpack.c.h.b16 %v5066_v35  ;;  %7720 = vst [vmem:[#allocation16_spill] sm:$0xff] %v6291_v40  ;;  %2954 = vmatprep.subr.bf16.mxu1 %v5403_v57 }
 0x1f0   :  { %v5243_v37 = vunpack.i.h.bf16 %v5241_v55  ;;  %v5242_v49 = vunpack.i.l.bf16 %v5241_v55 }
 0x1f1   :  { %7719 = vst [vmem:[#allocation15_spill] sm:$0xff] %v6272_v25  ;;  %v6283_v29 = vrot.slane %v7684_v0, 7  ;;  %v6287_v34 = vrot.slane %v7683_v51, 7 }
 0x1f2   :  { %v1090_v6 = vrot.slane %v5243_v37, 2  ;;  %v1082_v7 = vrot.slane %v5242_v49, 2  ;;  %2955 = vmatpush1.bf16.msra.mxu1 %v5405_v33 }
 0x1f3   :  { %v5246_v9 = vpop.permute.xlu0 %5245 }
 0x1f4   :  { %v5248_v19 = vunpack.i.h.bf16 %v5246_v9  ;;  %v5247_v20 = vunpack.i.l.bf16 %v5246_v9  ;;  %v1119_v28 = vsel %vm1108_vm5, %v5243_v37, %v1090_v6  ;;  %v1111_v31 = vsel %vm1108_vm5, %v5242_v49, %v1082_v7  ;;  %v5417_v37 = vld [vmem:[%s7673_s3 + $0xa0] ss:$8 sps:$4 sm:$0xff]  }
 0x1f5   :  { %v1175_v61 = vmax.f32 %v6102_v18, %v1119_v28  ;;  %v1167_v22 = vmax.f32 %v6099_v17, %v1111_v31  ;;  %v5406_v17 = vld [vmem:[%s7673_s3 + $0x74] ss:$8 sps:$4 sm:$0xff]  }
 0x1f6   :  { %v1095_v5 = vrot.slane %v5248_v19, 2  ;;  %v1083_v27 = vrot.slane %v5247_v20, 2  ;;  %2956 = vmatprep.subr.bf16.mxu1 %v5406_v17 }
 0x1f7   :  { %v1304_v2 = vrot.slane %v1175_v61, %v6049_v46  ;;  %v1308_v42 = vrot.slane %v1175_v61, %v6230_v26  ;;  %v1240_v45 = vrot.slane %v1167_v22, %v6049_v46  ;;  %v1244_v56 = vrot.slane %v1167_v22, %v6230_v26  ;;  %2957 = vmatpush1.bf16.msra.mxu1 %v5408_v63 }
 0x1f8   :  { %v1124_v55 = vsel %vm1108_vm5, %v5248_v19, %v1095_v5  ;;  %v1112_v58 = vsel %vm1108_vm5, %v5247_v20, %v1083_v27 }
 0x1f9   :  { %v5082_v49 = vpack.c.bf16 %v1308_v42, %v1304_v2  ;;  %v5064_v52 = vpack.c.bf16 %v1244_v56, %v1240_v45  ;;  %v1180_v35 = vmax.f32 %v6117_v16, %v1124_v55  ;;  %v1168_v62 = vmax.f32 %v6115_v32, %v1112_v58  ;;  %v5409_v16 = vld [vmem:[%s7673_s3 + $0x84] ss:$8 sps:$4 sm:$0xff]   ;;  %v5251_v27 = vpop.permute.xlu0 %5250  ;;  %v5411_v42 = vld [vmem:[%s7673_s3 + $0x80] ss:$8 sps:$4 sm:$0xff]  }
 0x1fa   :  { %2958 = vmatprep.subr.bf16.mxu1 %v5409_v16  ;;  %v5252_v63 = vunpack.i.l.bf16 %v5251_v27  ;;  %v5414_v16 = vld [vmem:[%s7673_s3 + $0x90] ss:$8 sps:$4 sm:$0xff]  }
 0x1fb   :  { %v6316_v19 = vunpack.c.l.b16 %v5082_v49  ;;  %v6318_v32 = vunpack.c.h.b16 %v5082_v49  ;;  %v6320_v20 = vunpack.c.l.b16 %v5064_v52  ;;  %v6322_v28 = vunpack.c.h.b16 %v5064_v52  ;;  %v5261_v2 = vpop.permute.xlu1 %5260  ;;  %2959 = vmatpush1.bf16.msra.mxu1 %v5411_v42 }
 0x1fc   :  { %v1344_v31 = vrot.slane %v1180_v35, %v6049_v46  ;;  %v1348_v61 = vrot.slane %v1180_v35, %v6230_v26  ;;  %v1248_v22 = vrot.slane %v1168_v62, %v6049_v46  ;;  %v1252_v5 = vrot.slane %v1168_v62, %v6230_v26  ;;  %v5412_v35 = vld [vmem:[%s7673_s3 + $0x94] ss:$8 sps:$4 sm:$0xff]  }
 0x1fd   :  { %v5253_v62 = vunpack.i.h.bf16 %v5251_v27  ;;  %v5263_v23 = vunpack.i.h.bf16 %v5261_v2  ;;  %v5262_v57 = vunpack.i.l.bf16 %v5261_v2  ;;  %v1089_v7 = vrot.slane %v5252_v63, 2  ;;  %2960 = vmatprep.subr.bf16.mxu1 %v5412_v35  ;;  %v5415_v2 = vld [vmem:[%s7673_s3 + $0xa4] ss:$8 sps:$4 sm:$0xff]   ;;  %v5256_v51 = vpop.permute.xlu0 %5255 }
 0x1fe   :  { %v5073_v49 = vpack.c.bf16 %v1348_v61, %v1344_v31  ;;  %v5065_v52 = vpack.c.bf16 %v1252_v5, %v1248_v22 }
 0x1ff   :  { %v1096_v55 = vrot.slane %v5253_v62, 2  ;;  %v1097_v6 = vrot.slane %v5263_v23, 2  ;;  %v1085_v31 = vrot.slane %v5262_v57, 2  ;;  %v5266_v39 = vpop.permute.xlu1 %5265  ;;  %v1118_v61 = vsel %vm1108_vm5, %v5252_v63, %v1089_v7  ;;  %2961 = vmatpush1.bf16.msra.mxu1 %v5414_v16 }
 0x200   :  { %v1679_v9 = vunpack.c.l.b16 %v5073_v49  ;;  %v1680_v18 = vunpack.c.h.b16 %v5073_v49  ;;  %v6340_v45 = vunpack.c.l.b16 %v5065_v52  ;;  %v6342_v56 = vunpack.c.h.b16 %v5065_v52  ;;  %2962 = vmatprep.subr.bf16.mxu1 %v5415_v2 }
 0x201   :  { %v1125_v22 = vsel %vm1108_vm5, %v5253_v62, %v1096_v55  ;;  %v1126_v35 = vsel %vm1108_vm5, %v5263_v23, %v1097_v6  ;;  %v1114_v0 = vsel %vm1108_vm5, %v5262_v57, %v1085_v31  ;;  %v5258_v55 = vunpack.i.h.bf16 %v5256_v51  ;;  %v5418_v23 = vld [vmem:[%s7673_s3 + $0xb4] ss:$8 sps:$4 sm:$0xff]  }
 0x202   :  { %v6349_v5 = vrot.slane %v1679_v9, 5  ;;  %v6351_v27 = vrot.slane %v1680_v18, 5  ;;  %v6356_v49 = vrot.slane %v1679_v9, 6  ;;  %v6358_v42 = vrot.slane %v1680_v18, 6 }
 0x203   :  { %v1181_v17 = vmax.f32 %v6131_v4, %v1125_v22  ;;  %v1174_v9 = vmax.f32 %v6129_v1, %v1118_v61  ;;  %v1182_v18 = vmax.f32 %v6139_v24, %v1126_v35  ;;  %v1170_v52 = vmax.f32 %v6133_v14, %v1114_v0  ;;  %2963 = vmatpush1.bf16.msra.mxu1 %v5417_v37 }
 0x204   :  { %7721 = vst [vmem:[#allocation17_spill] sm:$0xff] %v6349_v5  ;;  %7722 = vst [vmem:[#allocation18_spill] sm:$0xff] %v6351_v27  ;;  %v5257_v62 = vunpack.i.l.bf16 %v5256_v51  ;;  %v5268_v7 = vunpack.i.h.bf16 %v5266_v39  ;;  %v5267_v63 = vunpack.i.l.bf16 %v5266_v39  ;;  %v1098_v61 = vrot.slane %v5258_v55, 2  ;;  %2964 = vmatprep.subr.bf16.mxu1 %v5418_v23 }
 0x205   :  { %v1352_v1 = vrot.slane %v1181_v17, %v6049_v46  ;;  %v1356_v4 = vrot.slane %v1181_v17, %v6230_v26  ;;  %v1296_v14 = vrot.slane %v1174_v9, %v6049_v46  ;;  %v1300_v24 = vrot.slane %v1174_v9, %v6230_v26  ;;  %v5420_v17 = vld [vmem:[%s7673_s3 + $0xb0] ss:$8 sps:$4 sm:$0xff]  }
 0x206   :  { %v1360_v0 = vrot.slane %v1182_v18, %v6049_v46  ;;  %v1364_v6 = vrot.slane %v1182_v18, %v6230_v26  ;;  %v1264_v51 = vrot.slane %v1170_v52, %v6049_v46  ;;  %v1268_v39 = vrot.slane %v1170_v52, %v6230_v26  ;;  %v5421_v18 = vld [vmem:[%s7673_s3 + $0xc4] ss:$8 sps:$4 sm:$0xff]  }
 0x207   :  { %v5074_v31 = vpack.c.bf16 %v1356_v4, %v1352_v1  ;;  %v5071_v16 = vpack.c.bf16 %v1300_v24, %v1296_v14  ;;  %v1086_v35 = vrot.slane %v5257_v62, 2  ;;  %v1099_v9 = vrot.slane %v5268_v7, 2  ;;  %2965 = vmatpush1.bf16.msra.mxu1 %v5420_v17 }
 0x208   :  { %v5075_v22 = vpack.c.bf16 %v1364_v6, %v1360_v0  ;;  %v5067_v2 = vpack.c.bf16 %v1268_v39, %v1264_v51  ;;  %v1087_v37 = vrot.slane %v5267_v63, 2  ;;  %v1127_v58 = vsel %vm1108_vm5, %v5258_v55, %v1098_v61  ;;  %2966 = vmatprep.subr.bf16.mxu1 %v5421_v18 }
 0x209   :  { %v6391_v52 = vunpack.c.l.b16 %v5074_v31  ;;  %v6393_v57 = vunpack.c.h.b16 %v5074_v31  ;;  %v6395_v1 = vunpack.c.l.b16 %v5071_v16  ;;  %v6397_v4 = vunpack.c.h.b16 %v5071_v16  ;;  %v5271_v31 = vpop.permute.xlu0 %5270  ;;  %v5423_v16 = vld [vmem:[%s7673_s3 + $0xc0] ss:$8 sps:$4 sm:$0xff]  }
 0x20a   :  { %v6399_v14 = vunpack.c.l.b16 %v5075_v22  ;;  %v6401_v24 = vunpack.c.h.b16 %v5075_v22  ;;  %v6403_v0 = vunpack.c.l.b16 %v5067_v2  ;;  %v6408_v39 = vunpack.c.h.b16 %v5067_v2  ;;  %v5276_v22 = vpop.permute.xlu1 %5275 }
 0x20b   :  { %v1115_v23 = vsel %vm1108_vm5, %v5257_v62, %v1086_v35  ;;  %v1183_v6 = vmax.f32 %v6137_v10, %v1127_v58  ;;  %v1128_v51 = vsel %vm1108_vm5, %v5268_v7, %v1099_v9  ;;  %v1116_v17 = vsel %vm1108_vm5, %v5267_v63, %v1087_v37  ;;  %2967 = vmatpush1.bf16.msra.mxu1 %v5423_v16 }
 0x20c   :  { %7723 = vst [vmem:[#allocation19_spill] sm:$0xff] %v6408_v39  ;;  %v1171_v2 = vmax.f32 %v6146_v11, %v1115_v23  ;;  %v1184_v3 = vmax.f32 %v6152_v30, %v1128_v51  ;;  %v1172_v48 = vmax.f32 %v6161_v15, %v1116_v17  ;;  %v5273_v33 = vunpack.i.h.bf16 %v5271_v31 }
 0x20d   :  { %v5272_v27 = vunpack.i.l.bf16 %v5271_v31  ;;  %v1368_v55 = vrot.slane %v1183_v6, %v6049_v46  ;;  %v1372_v62 = vrot.slane %v1183_v6, %v6230_v26  ;;  %v1732_v6 = vrot.slane %v6395_v1, 7 }
 0x20e   :  { %v1272_v61 = vrot.slane %v1171_v2, %v6049_v46  ;;  %v1276_v10 = vrot.slane %v1171_v2, %v6230_v26  ;;  %v1376_v11 = vrot.slane %v1184_v3, %v6049_v46  ;;  %v1380_v58 = vrot.slane %v1184_v3, %v6230_v26  ;;  %v5281_v2 = vpop.permute.xlu0 %5280 }
 0x20f   :  { %v1280_v30 = vrot.slane %v1172_v48, %v6049_v46  ;;  %v1284_v15 = vrot.slane %v1172_v48, %v6230_v26  ;;  %v5076_v7 = vpack.c.bf16 %v1372_v62, %v1368_v55  ;;  %v1100_v35 = vrot.slane %v5273_v33, 2 }
 0x210   :  { %v5068_v63 = vpack.c.bf16 %v1276_v10, %v1272_v61  ;;  %v1088_v9 = vrot.slane %v5272_v27, 2  ;;  %v5077_v37 = vpack.c.bf16 %v1380_v58, %v1376_v11  ;;  %v1746_v3 = vrot.slane %v6397_v4, 7  ;;  %v5286_v61 = vpop.permute.xlu1 %5285 }
 0x211   :  { %v5069_v23 = vpack.c.bf16 %v1284_v15, %v1280_v30  ;;  %v6433_v51 = vunpack.c.l.b16 %v5076_v7  ;;  %v6435_v31 = vunpack.c.h.b16 %v5076_v7  ;;  %v1129_v10 = vsel %vm1108_vm5, %v5273_v33, %v1100_v35 }
 0x212   :  { %v6437_v16 = vunpack.c.l.b16 %v5068_v63  ;;  %v6440_v48 = vunpack.c.h.b16 %v5068_v63  ;;  %v6442_v17 = vunpack.c.l.b16 %v5077_v37  ;;  %v6444_v55 = vunpack.c.h.b16 %v5077_v37 }
 0x213   :  { %v6446_v62 = vunpack.c.l.b16 %v5069_v23  ;;  %v1117_v11 = vsel %vm1108_vm5, %v5272_v27, %v1088_v9  ;;  %v5278_v58 = vunpack.i.h.bf16 %v5276_v22  ;;  %v5277_v30 = vunpack.i.l.bf16 %v5276_v22 }
 0x214   :  { %7724 = vst [vmem:[#allocation20_spill] sm:$0xff] %v6440_v48  ;;  %v1185_v15 = vmax.f32 %v6156_v43, %v1129_v10  ;;  %v1173_v7 = vmax.f32 %v6166_v36, %v1117_v11  ;;  %v5283_v63 = vunpack.i.h.bf16 %v5281_v2  ;;  %v5282_v18 = vunpack.i.l.bf16 %v5281_v2 }
 0x215   :  { %v1094_v5 = vrot.slane %v5278_v58, 2  ;;  %v1102_v59 = vrot.slane %v5277_v30, 2  ;;  %v5288_v37 = vunpack.i.h.bf16 %v5286_v61  ;;  %v5287_v60 = vunpack.i.l.bf16 %v5286_v61 }
 0x216   :  { %v1384_v40 = vrot.slane %v1185_v15, %v6049_v46  ;;  %v1388_v21 = vrot.slane %v1185_v15, %v6230_v26  ;;  %v1288_v33 = vrot.slane %v1173_v7, %v6049_v46  ;;  %v1292_v27 = vrot.slane %v1173_v7, %v6230_v26 }
 0x217   :  { %v1123_v22 = vsel %vm1108_vm5, %v5278_v58, %v1094_v5  ;;  %v1131_v43 = vsel %vm1108_vm5, %v5277_v30, %v1102_v59  ;;  %v1080_v35 = vrot.slane %v5283_v63, 2  ;;  %v1103_v36 = vrot.slane %v5282_v18, 2 }
 0x218   :  { %v5078_v9 = vpack.c.bf16 %v1388_v21, %v1384_v40  ;;  %v5070_v2 = vpack.c.bf16 %v1292_v27, %v1288_v33  ;;  %v1179_v10 = vmax.f32 %v6180_v13, %v1123_v22  ;;  %v1187_v61 = vmax.f32 %v6171_v41, %v1131_v43 }
 0x219   :  { %v1109_v11 = vsel %vm1108_vm5, %v5283_v63, %v1080_v35  ;;  %v1132_v15 = vsel %vm1108_vm5, %v5282_v18, %v1103_v36  ;;  %v1104_v25 = vrot.slane %v5288_v37, 2  ;;  %v1101_v48 = vrot.slane %v5287_v60, 2 }
 0x21a   :  { %v6462_v39 = vunpack.c.h.b16 %v5069_v23  ;;  %v6464_v7 = vunpack.c.l.b16 %v5078_v9  ;;  %v6466_v5 = vunpack.c.l.b16 %v5070_v2  ;;  %v6468_v59 = vunpack.c.h.b16 %v5070_v2  ;;  %v5291_v2 = vpop.permute.xlu0 %5290 }
 0x21b   :  { %v1336_v21 = vrot.slane %v1179_v10, %v6049_v46  ;;  %v1340_v13 = vrot.slane %v1179_v10, %v6230_v26  ;;  %v1400_v41 = vrot.slane %v1187_v61, %v6049_v46  ;;  %v1404_v40 = vrot.slane %v1187_v61, %v6230_v26 }
 0x21c   :  { %v6474_v18 = vunpack.c.h.b16 %v5078_v9  ;;  %v1733_v23 = vsel %vm1698_vm6, %v1732_v6, %v6466_v5  ;;  %v1165_v58 = vmax.f32 %v6184_v38, %v1109_v11  ;;  %v1188_v30 = vmax.f32 %v6175_v44, %v1132_v15 }
 0x21d   :  { %v5072_v63 = vpack.c.bf16 %v1340_v13, %v1336_v21  ;;  %v5080_v33 = vpack.c.bf16 %v1404_v40, %v1400_v41  ;;  %v1133_v27 = vsel %vm1108_vm5, %v5288_v37, %v1104_v25  ;;  %v1130_v22 = vsel %vm1108_vm5, %v5287_v60, %v1101_v48 }
 0x21e   :  { %v1224_v43 = vrot.slane %v1165_v58, %v6049_v46  ;;  %v1228_v35 = vrot.slane %v1165_v58, %v6230_v26  ;;  %v1408_v36 = vrot.slane %v1188_v30, %v6049_v46  ;;  %v1412_v9 = vrot.slane %v1188_v30, %v6230_v26 }
 0x21f   :  { %v1747_v38 = vsel %vm1698_vm6, %v1746_v3, %v6468_v59  ;;  %v1677_v6 = vunpack.c.l.b16 %v5072_v63  ;;  %v1678_v44 = vunpack.c.h.b16 %v5072_v63  ;;  %v6488_v10 = vunpack.c.l.b16 %v5080_v33 }
 0x220   :  { %v5062_v25 = vpack.c.bf16 %v1228_v35, %v1224_v43  ;;  %v5081_v37 = vpack.c.bf16 %v1412_v9, %v1408_v36  ;;  %v1189_v60 = vmax.f32 %v6188_v50, %v1133_v27  ;;  %v1186_v48 = vmax.f32 %v6198_v8, %v1130_v22 }
 0x221   :  { %v1734_v61 = vrot.slane %v1677_v6, 6  ;;  %v1748_v11 = vrot.slane %v1678_v44, 6  ;;  %v6492_v15 = vunpack.c.h.b16 %v5080_v33  ;;  %v5293_v21 = vunpack.i.h.bf16 %v5291_v2 }
 0x222   :  { %v1657_v3 = vunpack.c.l.b16 %v5062_v25  ;;  %v1658_v13 = vunpack.c.h.b16 %v5062_v25  ;;  %v6494_v41 = vunpack.c.l.b16 %v5081_v37  ;;  %v5292_v40 = vunpack.i.l.bf16 %v5291_v2 }
 0x223   :  { %v6497_v58 = vsel %vm1701_vm7, %v1734_v61, %v1733_v23  ;;  %v6499_v50 = vunpack.c.h.b16 %v5081_v37  ;;  %v1416_v8 = vrot.slane %v1189_v60, %v6049_v46  ;;  %v1420_v30 = vrot.slane %v1189_v60, %v6230_v26 }
 0x224   :  { %v6504_v63 = vsel %vm1701_vm7, %v1748_v11, %v1747_v38  ;;  %v1719_v33 = vsel %vm1698_vm6, %v6287_v34, %v1658_v13  ;;  %v1392_v27 = vrot.slane %v1186_v48, %v6049_v46  ;;  %v1396_v22 = vrot.slane %v1186_v48, %v6230_v26 }
 0x225   :  { %v6512_v23 = vsel %vm1698_vm6, %v6283_v29, %v1657_v3  ;;  %v7725_v43 = vrot.slane %v6322_v28, 6  ;;  %v5083_v36 = vpack.c.bf16 %v1420_v30, %v1416_v8  ;;  %v1092_v9 = vrot.slane %v5293_v21, 2 }
 0x226   :  { %v5079_v2 = vpack.c.bf16 %v1396_v22, %v1392_v27  ;;  %v1091_v38 = vrot.slane %v5292_v40, 2  ;;  %v7727_v34 = vrot.slane %v6316_v19, 7  ;;  %v1835_v44 = vrot.slane %v6399_v14, 4 }
 0x227   :  { %v6517_v35 = vsel %vm1701_vm7, %v7725_v43, %v1719_v33  ;;  %v6524_v25 = vunpack.c.l.b16 %v5083_v36  ;;  %v6526_v29 = vunpack.c.h.b16 %v5083_v36  ;;  %v1121_v37 = vsel %vm1108_vm5, %v5293_v21, %v1092_v9 }
 0x228   :  { %7726 = vst [vmem:[#allocation21_spill] sm:$0xff] %v6517_v35  ;;  %v1830_v6 = vsel %vm1698_vm6, %v7727_v34, %v6395_v1  ;;  %v6531_v48 = vunpack.c.l.b16 %v5079_v2  ;;  %v6533_v61 = vunpack.c.h.b16 %v5079_v2  ;;  %v1177_v11 = vmax.f32 %v6195_v54, %v1121_v37 }
 0x229   :  { %7728 = vst [vmem:[#allocation22_spill] sm:$0xff] %v6526_v29  ;;  %v1832_v60 = vsel %vm1701_vm7, %v6356_v49, %v1830_v6  ;;  %v1120_v3 = vsel %vm1108_vm5, %v5292_v40, %v1091_v38  ;;  %v7729_v8 = vrot.slane %v6391_v52, 5  ;;  %v1837_v33 = vrot.slane %v6433_v51, 3 }
 0x22a   :  { %v1176_v13 = vmax.f32 %v6192_v53, %v1120_v3  ;;  %v1839_v21 = vrot.slane %v6442_v17, 2  ;;  %v1320_v49 = vrot.slane %v1177_v11, %v6049_v46  ;;  %v1324_v27 = vrot.slane %v1177_v11, %v6230_v26 }
 0x22b   :  { %v1834_v30 = vsel %vm1704_vm9, %v7729_v8, %v1832_v60  ;;  %v1841_v54 = vrot.slane %v6464_v7, 1  ;;  %v7730_v36 = vrot.slane %v6318_v32, 7  ;;  %v1849_v6 = vrot.slane %v6401_v24, 4 }
 0x22c   :  { %v1836_v22 = vsel %vm1707_vm8, %v1835_v44, %v1834_v30  ;;  %v1312_v40 = vrot.slane %v1176_v13, %v6049_v46  ;;  %v1316_v53 = vrot.slane %v1176_v13, %v6230_v26  ;;  %v6554_v2 = vpack.c.bf16 %v1324_v27, %v1320_v49  ;;  %v7740_v26 = vld [vmem:[#allocation15_spill] sm:$0xff] }
 0x22d   :  { %v1838_v43 = vsel %vm1710_vm10, %v1837_v33, %v1836_v22  ;;  %v1844_v9 = vsel %vm1698_vm6, %v7730_v36, %v6397_v4  ;;  %v7732_v60 = vrot.slane %v6393_v57, 5  ;;  %v1851_v3 = vrot.slane %v6435_v31, 3 }
 0x22e   :  { %7731 = vst [vmem:[#allocation23_spill] sm:$0xff] %v6554_v2  ;;  %v1840_v38 = vsel %vm1713_vm11, %v1839_v21, %v1838_v43  ;;  %v1846_v34 = vsel %vm1701_vm7, %v6358_v42, %v1844_v9  ;;  %v5084_v44 = vpack.c.bf16 %v1316_v53, %v1312_v40  ;;  %v7700_v13 = vunpack.c.l.b16 %v6554_v2 }
 0x22f   :  { %v1842_v37 = vsel %vm1716_vm12, %v1841_v54, %v1840_v38  ;;  %v1848_v11 = vsel %vm1704_vm9, %v7732_v60, %v1846_v34  ;;  %v7699_v8 = vunpack.c.h.b16 %v6554_v2  ;;  %v1853_v33 = vrot.slane %v6444_v55, 2 }
 0x230   :  { %v1850_v30 = vsel %vm1707_vm8, %v1849_v6, %v1848_v11  ;;  %v6569_v42 = vunpack.c.l.b16 %v5084_v44  ;;  %v6571_v21 = vunpack.c.h.b16 %v5084_v44  ;;  %v1855_v27 = vrot.slane %v6474_v18, 1 }
 0x231   :  { %v1852_v49 = vsel %vm1710_vm10, %v1851_v3, %v1850_v30  ;;  %v2049_v22 = vrot.slane %v7700_v13, 7  ;;  %v2063_v54 = vrot.slane %v7699_v8, 7  ;;  %v7733_v53 = vunpack.c.l.b16 %v6254_v47 }
 0x232   :  { %v1854_v40 = vsel %vm1713_vm11, %v1853_v33, %v1852_v49  ;;  %v7734_v43 = vrot.slane %v6320_v20, 7  ;;  %v1803_v6 = vrot.slane %v6340_v45, 6  ;;  %v1807_v3 = vrot.slane %v6403_v0, 4 }
 0x233   :  { %v1856_v34 = vsel %vm1716_vm12, %v1855_v27, %v1854_v40  ;;  %v6591_v44 = vsel %vm1698_vm6, %v2049_v22, %v6569_v42  ;;  %v6595_v60 = vsel %vm1698_vm6, %v2063_v54, %v6571_v21  ;;  %v1809_v33 = vrot.slane %v6437_v16, 3 }
 0x234   :  { %v1802_v36 = vsel %vm1698_vm6, %v7734_v43, %v7733_v53  ;;  %v1870_v11 = vpack.c.b16 %v1856_v34, %v1842_v37  ;;  %v1811_v49 = vrot.slane %v6446_v62, 2  ;;  %v1813_v27 = vrot.slane %v6466_v5, 1 }
 0x235   :  { %v1804_v30 = vsel %vm1701_vm7, %v1803_v6, %v1802_v36  ;;  %v7735_v22 = vrot.slane %v6270_v12, 5  ;;  %v7736_v54 = vunpack.c.h.b16 %v6254_v47  ;;  %v7737_v37 = vrot.slane %v6322_v28, 7  ;;  %v7738_v36 = vld [vmem:[#allocation19_spill] sm:$0xff]  ;;  %v5424_v6 = vld [vmem:[%s7673_s3 + $0xd4] ss:$8 sps:$4 sm:$0xff]  }
 0x236   :  { %1874 = vrot.lane.b32.xlu0 %v1870_v11, %s5644_s29  ;;  %v1817_v43 = vrot.slane %v6342_v56, 6  ;;  %v1821_v34 = vrot.slane %v7738_v36, 4  ;;  %v5426_v11 = vld [vmem:[%s7673_s3 + $0xd0] ss:$8 sps:$4 sm:$0xff]   ;;  %v1825_v8 = vrot.slane %v6462_v39, 2  ;;  %v1857_v38 = vrot.slane %v6488_v10, 7  ;;  %2968 = vmatprep.subr.bf16.mxu1 %v5424_v6 }
 0x237   :  { %v1806_v40 = vsel %vm1704_vm9, %v7735_v22, %v1804_v30  ;;  %v1816_v53 = vsel %vm1698_vm6, %v7737_v37, %v7736_v54  ;;  %v7739_v22 = vld [vmem:[#allocation20_spill] sm:$0xff]  ;;  %v1827_v54 = vrot.slane %v6468_v59, 1  ;;  %v1859_v9 = vrot.slane %v6494_v41, 6  ;;  %2969 = vmatpush1.bf16.msra.mxu1 %v5426_v11 }
 0x238   :  { %v1808_v30 = vsel %vm1707_vm8, %v1807_v3, %v1806_v40  ;;  %v1823_v47 = vrot.slane %v7739_v22, 3  ;;  %v1818_v13 = vsel %vm1701_vm7, %v1817_v43, %v1816_v53  ;;  %v7741_v46 = vrot.slane %v7740_v26, 5  ;;  %v7742_v43 = vld [vmem:[#allocation14_spill] sm:$0xff] }
 0x239   :  { %v1810_v37 = vsel %vm1710_vm10, %v1809_v33, %v1808_v30  ;;  %v1861_v40 = vrot.slane %v6524_v25, 5  ;;  %v1863_v35 = vrot.slane %v6492_v15, 7  ;;  %v1858_v6 = vsel %vm1698_vm6, %v1857_v38, %v6531_v48 }
 0x23a   :  { %v1812_v2 = vsel %vm1713_vm11, %v1811_v49, %v1810_v37  ;;  %v1820_v3 = vsel %vm1704_vm9, %v7741_v46, %v1818_v13  ;;  %1050 = vrot.lane.b32.xlu0 %v7742_v43, %s5643_s2  ;;  %v1865_v49 = vrot.slane %v6499_v50, 6  ;;  %v1860_v46 = vsel %vm1701_vm7, %v1859_v9, %v1858_v6 }
 0x23b   :  { %v1814_v33 = vsel %vm1716_vm12, %v1813_v27, %v1812_v2  ;;  %v1822_v53 = vsel %vm1707_vm8, %v1821_v34, %v1820_v3  ;;  %v1864_v13 = vsel %vm1698_vm6, %v1863_v35, %v6533_v61  ;;  %v1867_v11 = vrot.slane %v6526_v29, 5 }
 0x23c   :  { %v1824_v30 = vsel %vm1710_vm10, %v1823_v47, %v1822_v53  ;;  %v1862_v27 = vsel %vm1704_vm9, %v1861_v40, %v1860_v46  ;;  %v1866_v34 = vsel %vm1701_vm7, %v1865_v49, %v1864_v13  ;;  %v7743_v38 = vrot.slane %v6340_v45, 7  ;;  %v7745_v40 = vld [vmem:[#allocation16_spill] sm:$0xff] }
 0x23d   :  { %v1826_v2 = vsel %vm1713_vm11, %v1825_v8, %v1824_v30  ;;  %v1868_v9 = vsel %vm1704_vm9, %v1867_v11, %v1866_v34  ;;  %v7744_v3 = vrot.slane %v6270_v12, 6  ;;  %v1915_v53 = vrot.slane %v6403_v0, 5 }
 0x23e   :  { %v1912_v37 = vsel %vm1698_vm6, %v7743_v38, %v6320_v20  ;;  %v1828_v47 = vsel %vm1716_vm12, %v1827_v54, %v1826_v2  ;;  %1078 = vrot.lane.b32.xlu0 %v7745_v40, %s5643_s2  ;;  %v1871_v6 = vpack.c.b16 %v1868_v9, %v1862_v27  ;;  %v1917_v49 = vrot.slane %v6437_v16, 4 }
 0x23f   :  { %v1914_v35 = vsel %vm1701_vm7, %v7744_v3, %v1912_v37  ;;  %v1869_v8 = vpack.c.b16 %v1828_v47, %v1814_v33  ;;  %v1919_v30 = vrot.slane %v6446_v62, 3  ;;  %v1921_v54 = vrot.slane %v6466_v5, 2 }
 0x240   :  { %v1916_v46 = vsel %vm1704_vm9, %v1915_v53, %v1914_v35  ;;  %v1923_v13 = vrot.slane %v6395_v1, 1  ;;  %v7746_v11 = vrot.slane %v6342_v56, 7  ;;  %v7747_v27 = vrot.slane %v7740_v26, 6 }
 0x241   :  { %1872 = vrot.lane.b32.xlu1 %v1869_v8, %s5644_s29  ;;  %v1918_v33 = vsel %vm1707_vm8, %v1917_v49, %v1916_v46  ;;  %v1929_v38 = vrot.slane %v7738_v36, 5  ;;  %v1931_v37 = vrot.slane %v7739_v22, 4  ;;  %v1933_v9 = vrot.slane %v6462_v39, 3 }
 0x242   :  { %v1926_v2 = vsel %vm1698_vm6, %v7746_v11, %v6322_v28  ;;  %v1920_v47 = vsel %vm1710_vm10, %v1919_v30, %v1918_v33  ;;  %v1935_v3 = vrot.slane %v6468_v59, 2  ;;  %v1937_v28 = vrot.slane %v6397_v4, 1  ;;  %v5427_v30 = vld [vmem:[%s7673_s3 + $0xe4] ss:$8 sps:$4 sm:$0xff]   ;;  %v5429_v11 = vld [vmem:[%s7673_s3 + $0xe0] ss:$8 sps:$4 sm:$0xff]  }
 0x243   :  { %v1928_v34 = vsel %vm1701_vm7, %v7747_v27, %v1926_v2  ;;  %v1922_v35 = vsel %vm1713_vm11, %v1921_v54, %v1920_v47  ;;  %v7748_v8 = vrot.slane %v6569_v42, 7  ;;  %v1943_v46 = vrot.slane %v6399_v14, 5  ;;  %v7750_v47 = vld [vmem:[#allocation13_spill] sm:$0xff]  ;;  %2970 = vmatprep.subr.bf16.mxu1 %v5427_v30 }
 0x244   :  { %v1930_v53 = vsel %vm1704_vm9, %v1929_v38, %v1928_v34  ;;  %v1924_v2 = vsel %vm1716_vm12, %v1923_v13, %v1922_v35  ;;  %v7749_v33 = vrot.slane %v6391_v52, 6  ;;  %v1945_v34 = vrot.slane %v6433_v51, 4  ;;  %v5430_v38 = vld [vmem:[%s7673_s3 + $0xf4] ss:$8 sps:$4 sm:$0xff]   ;;  %2971 = vmatpush1.bf16.msra.mxu1 %v5429_v11 }
 0x245   :  { %v1940_v49 = vsel %vm1698_vm6, %v7748_v8, %v6316_v19  ;;  %v1932_v54 = vsel %vm1707_vm8, %v1931_v37, %v1930_v53  ;;  %v7751_v8 = vld [vmem:[#allocation12_spill] sm:$0xff]  ;;  %v1947_v37 = vrot.slane %v6442_v17, 3  ;;  %v1949_v35 = vrot.slane %v6464_v7, 2  ;;  %2972 = vmatprep.subr.bf16.mxu1 %v5430_v38 }
 0x246   :  { %v1942_v27 = vsel %vm1701_vm7, %v7749_v33, %v1940_v49  ;;  %v7752_v40 = vpack.i.bf16 %v7750_v47, %v7751_v8  ;;  %v1934_v29 = vsel %vm1710_vm10, %v1933_v9, %v1932_v54  ;;  %v1951_v33 = vrot.slane %v6531_v48, 1  ;;  %v5432_v9 = vld [vmem:[%s7673_s3 + $0xf0] ss:$8 sps:$4 sm:$0xff]  }
 0x247   :  { %v1944_v13 = vsel %vm1704_vm9, %v1943_v46, %v1942_v27  ;;  %v1936_v53 = vsel %vm1713_vm11, %v1935_v3, %v1934_v29  ;;  %v7753_v43 = vrot.slane %v6571_v21, 7  ;;  %v7754_v29 = vrot.slane %v6393_v57, 6 }
 0x248   :  { %5295 = vrot.lane.b32.xlu1 %v7752_v40, %s5643_s2  ;;  %v1946_v49 = vsel %vm1707_vm8, %v1945_v34, %v1944_v13  ;;  %v1938_v46 = vsel %vm1716_vm12, %v1937_v28, %v1936_v53  ;;  %v1957_v54 = vrot.slane %v6401_v24, 5  ;;  %v1959_v34 = vrot.slane %v6435_v31, 4  ;;  %2973 = vmatpush1.bf16.msra.mxu1 %v5432_v9 }
 0x249   :  { %v1954_v40 = vsel %vm1698_vm6, %v7753_v43, %v6318_v32  ;;  %v1948_v30 = vsel %vm1710_vm10, %v1947_v37, %v1946_v49  ;;  %v5435_v43 = vld [vmem:[%s7673_s3 + $0x104] ss:$8 sps:$4 sm:$0xff]   ;;  %v1979_v11 = vpack.c.b16 %v1938_v46, %v1924_v2  ;;  %v1961_v28 = vrot.slane %v6444_v55, 3 }
 0x24a   :  { %v1956_v3 = vsel %vm1701_vm7, %v7754_v29, %v1954_v40  ;;  %v1950_v27 = vsel %vm1713_vm11, %v1949_v35, %v1948_v30  ;;  %v1963_v53 = vrot.slane %v6474_v18, 2  ;;  %v1965_v38 = vrot.slane %v6533_v61, 1  ;;  %2993 = vmatprep.subr.bf16.mxu1 %v5435_v43 }
 0x24b   :  { %v1952_v13 = vsel %vm1716_vm12, %v1951_v33, %v1950_v27  ;;  %v1958_v37 = vsel %vm1704_vm9, %v1957_v54, %v1956_v3  ;;  %v7755_v2 = vrot.slane %v6270_v12, 7  ;;  %v2023_v40 = vrot.slane %v6403_v0, 6 }
 0x24c   :  { %1876 = vrot.lane.b32.xlu1 %v1871_v6, %s5644_s29  ;;  %v1960_v49 = vsel %vm1707_vm8, %v1959_v34, %v1958_v37  ;;  %v2025_v46 = vrot.slane %v6437_v16, 5  ;;  %v2027_v33 = vrot.slane %v6446_v62, 4  ;;  %v2029_v30 = vrot.slane %v6466_v5, 3  ;;  %s4692_s29 = sshll.u32 %s5656_s28, 4  ;;  %s4693_s29 = int_to_ptr.vmem [resolvable:$true] %s4692_s29 }
 0x24d   :  { %v2022_v35 = vsel %vm1698_vm6, %v7755_v2, %v6340_v45  ;;  %v1962_v6 = vsel %vm1710_vm10, %v1961_v28, %v1960_v49  ;;  %v2031_v29 = vrot.slane %v6395_v1, 2  ;;  %v2033_v27 = vrot.slane %v6316_v19, 1  ;;  %p5620_p1 = scmp.lt.s32.totalorder %s4693_s29, %s4693_s29 }
 0x24e   :  { %v1964_v3 = vsel %vm1713_vm11, %v1963_v53, %v1962_v6  ;;  %v2024_v54 = vsel %vm1701_vm7, %v2023_v40, %v2022_v35  ;;  %v7756_v34 = vrot.slane %v7740_v26, 7  ;;  %v2037_v43 = vrot.slane %v7738_v36, 6 }
 0x24f   :  { %v1966_v28 = vsel %vm1716_vm12, %v1965_v38, %v1964_v3  ;;  %v2026_v37 = vsel %vm1704_vm9, %v2025_v46, %v2024_v54  ;;  %v2039_v53 = vrot.slane %v7739_v22, 5  ;;  %v2041_v35 = vrot.slane %v6462_v39, 4 }
 0x250   :  { %v2036_v9 = vsel %vm1698_vm6, %v7756_v34, %v6342_v56  ;;  %1982 = vrot.lane.b32.xlu1 %v1979_v11, %s5645_s24  ;;  %v1980_v49 = vpack.c.b16 %v1966_v28, %v1952_v13  ;;  %v2028_v2 = vsel %vm1707_vm8, %v2027_v33, %v2026_v37  ;;  %v2043_v40 = vrot.slane %v6468_v59, 3 }
 0x251   :  { %v2030_v6 = vsel %vm1710_vm10, %v2029_v30, %v2028_v2  ;;  %v2038_v34 = vsel %vm1701_vm7, %v2037_v43, %v2036_v9  ;;  %v2045_v11 = vrot.slane %v6397_v4, 2  ;;  %v2047_v38 = vrot.slane %v6318_v32, 1 }
 0x252   :  { %1984 = vrot.lane.b32.xlu0 %v1980_v49, %s5645_s24  ;;  %v2032_v46 = vsel %vm1713_vm11, %v2031_v29, %v2030_v6  ;;  %v2040_v13 = vsel %vm1704_vm9, %v2039_v53, %v2038_v34  ;;  %v2051_v33 = vrot.slane %v6399_v14, 6  ;;  %v2053_v3 = vrot.slane %v6433_v51, 5 }
 0x253   :  { %v2034_v54 = vsel %vm1716_vm12, %v2033_v27, %v2032_v46  ;;  %v2042_v30 = vsel %vm1707_vm8, %v2041_v35, %v2040_v13  ;;  %v2055_v9 = vrot.slane %v6442_v17, 4  ;;  %v2057_v28 = vrot.slane %v6464_v7, 3 }
 0x254   :  { %v2044_v37 = vsel %vm1710_vm10, %v2043_v40, %v2042_v30  ;;  %v2052_v43 = vsel %vm1701_vm7, %v2051_v33, %v6591_v44  ;;  %v2059_v29 = vrot.slane %v6531_v48, 2  ;;  %v2061_v53 = vrot.slane %v6488_v10, 1 }
 0x255   :  { %v2046_v49 = vsel %vm1713_vm11, %v2045_v11, %v2044_v37  ;;  %v2054_v27 = vsel %vm1704_vm9, %v2053_v3, %v2052_v43  ;;  %v2065_v2 = vrot.slane %v6401_v24, 6  ;;  %v2067_v35 = vrot.slane %v6435_v31, 5 }
 0x256   :  { %v2048_v6 = vsel %vm1716_vm12, %v2047_v38, %v2046_v49  ;;  %v2056_v40 = vsel %vm1707_vm8, %v2055_v9, %v2054_v27  ;;  %v2069_v44 = vrot.slane %v6444_v55, 4  ;;  %v2071_v34 = vrot.slane %v6474_v18, 3  ;;  %v7757_v9 = vld [vmem:[#allocation17_spill] sm:$0xff] }
 0x257   :  { %v2089_v46 = vpack.c.b16 %v2048_v6, %v2034_v54  ;;  %v2058_v13 = vsel %vm1710_vm10, %v2057_v28, %v2056_v40  ;;  %v2066_v11 = vsel %vm1701_vm7, %v2065_v2, %v6595_v60  ;;  %v2073_v33 = vrot.slane %v6533_v61, 2 }
 0x258   :  { %v2060_v3 = vsel %vm1713_vm11, %v2059_v29, %v2058_v13  ;;  %v2068_v30 = vsel %vm1704_vm9, %v2067_v35, %v2066_v11  ;;  %v2075_v38 = vrot.slane %v6492_v15, 1  ;;  %v1737_v37 = vsel %vm1704_vm9, %v7757_v9, %v6497_v58  ;;  %v7759_v58 = vld [vmem:[#allocation18_spill] sm:$0xff] }
 0x259   :  { %2092 = vrot.lane.b32.xlu1 %v2089_v46, %s5646_s25  ;;  %v2062_v54 = vsel %vm1716_vm12, %v2061_v53, %v2060_v3  ;;  %v2070_v28 = vsel %vm1707_vm8, %v2069_v44, %v2068_v30  ;;  %v7758_v60 = vrot.slane %v6391_v52, 4  ;;  %v1740_v29 = vrot.slane %v6399_v14, 3  ;;  %v7762_v30 = vld [vmem:[#allocation21_spill] sm:$0xff] }
 0x25a   :  { %v2072_v49 = vsel %vm1710_vm10, %v2071_v34, %v2070_v28  ;;  %v1742_v27 = vrot.slane %v6433_v51, 2  ;;  %v1744_v2 = vrot.slane %v6442_v17, 1  ;;  %v1751_v35 = vsel %vm1704_vm9, %v7759_v58, %v6504_v63 }
 0x25b   :  { %v1739_v43 = vsel %vm1707_vm8, %v7758_v60, %v1737_v37  ;;  %v2074_v53 = vsel %vm1713_vm11, %v2073_v33, %v2072_v49  ;;  %v7760_v52 = vrot.slane %v6393_v57, 4  ;;  %v1754_v14 = vrot.slane %v6401_v24, 3 }
 0x25c   :  { %v1741_v6 = vsel %vm1710_vm10, %v1740_v29, %v1739_v43  ;;  %v7761_v44 = vrot.slane %v6320_v20, 6  ;;  %v2076_v46 = vsel %vm1716_vm12, %v2075_v38, %v2074_v53  ;;  %v1756_v63 = vrot.slane %v6435_v31, 2 }
 0x25d   :  { %v1753_v40 = vsel %vm1707_vm8, %v7760_v52, %v1751_v35  ;;  %v1743_v13 = vsel %vm1713_vm11, %v1742_v27, %v1741_v6  ;;  %v2090_v11 = vpack.c.b16 %v2076_v46, %v2062_v54  ;;  %v1758_v3 = vrot.slane %v6444_v55, 1 }
 0x25e   :  { %v1702_v34 = vsel %vm1701_vm7, %v7761_v44, %v6512_v23  ;;  %v1745_v33 = vsel %vm1716_vm12, %v1744_v2, %v1743_v13  ;;  %v1755_v57 = vsel %vm1710_vm10, %v1754_v14, %v1753_v40  ;;  %v1703_v24 = vrot.slane %v6340_v45, 5 }
 0x25f   :  { %v1757_v20 = vsel %vm1713_vm11, %v1756_v63, %v1755_v57  ;;  %v1709_v23 = vrot.slane %v6403_v0, 3  ;;  %v7763_v38 = vrot.slane %v6342_v56, 5  ;;  %2094 = vrot.lane.b32.xlu0 %v2090_v11, %s5646_s25  ;;  %v1712_v45 = vrot.slane %v6437_v16, 2 }
 0x260   :  { %v1759_v37 = vsel %vm1716_vm12, %v1758_v3, %v1757_v20  ;;  %v7766_v28 = vrot.slane %v7740_v26, 4  ;;  %v1726_v56 = vrot.slane %v7738_v36, 3  ;;  %v1715_v29 = vrot.slane %v6446_v62, 1 }
 0x261   :  { %v1723_v9 = vsel %vm1704_vm9, %v7763_v38, %v7762_v30  ;;  %v1773_v43 = vpack.c.b16 %v1759_v37, %v1745_v33  ;;  %v1728_v49 = vrot.slane %v7739_v22, 2  ;;  %v1705_v27 = vsel %vm1704_vm9, %v1703_v24, %v1702_v34 }
 0x262   :  { %v1725_v60 = vsel %vm1707_vm8, %v7766_v28, %v1723_v9  ;;  %v1730_v58 = vrot.slane %v6462_v39, 1  ;;  %v7767_v35 = vrot.slane %v6270_v12, 4  ;;  %v1760_v6 = vrot.slane %v6531_v48, 7 }
 0x263   :  { %v1727_v2 = vsel %vm1710_vm10, %v1726_v56, %v1725_v60  ;;  %1782 = vst.msk [vmem:[#allocation3 + $0x1c] sm:$0xff] %vm6839_vm0, %v1773_v43  ;;  %v1762_v14 = vrot.slane %v6488_v10, 6  ;;  %v1764_v44 = vrot.slane %v6494_v41, 5  ;;  %v1766_v63 = vrot.slane %v6533_v61, 7 }
 0x264   :  { %v1708_v53 = vsel %vm1707_vm8, %v7767_v35, %v1705_v27  ;;  %v1729_v52 = vsel %vm1713_vm11, %v1728_v49, %v1727_v2  ;;  %v1761_v13 = vsel %vm1698_vm6, %v1760_v6, %v6464_v7  ;;  %v1768_v57 = vrot.slane %v6492_v15, 6 }
 0x265   :  { %v1711_v40 = vsel %vm1710_vm10, %v1709_v23, %v1708_v53  ;;  %v1731_v34 = vsel %vm1716_vm12, %v1730_v58, %v1729_v52  ;;  %v1763_v33 = vsel %vm1701_vm7, %v1762_v14, %v1761_v13  ;;  %v1767_v20 = vsel %vm1698_vm6, %v1766_v63, %v6474_v18 }
 0x266   :  { %v1714_v46 = vsel %vm1713_vm11, %v1712_v45, %v1711_v40  ;;  %v1765_v24 = vsel %vm1704_vm9, %v1764_v44, %v1763_v33  ;;  %v1770_v23 = vrot.slane %v6499_v50, 5  ;;  %v1769_v30 = vsel %vm1701_vm7, %v1768_v57, %v1767_v20  ;;  %v7770_v57 = vld [vmem:[#allocation14_spill] sm:$0xff] }
 0x267   :  { %v1717_v11 = vsel %vm1716_vm12, %v1715_v29, %v1714_v46  ;;  %v1967_v37 = vrot.slane %v6494_v41, 7  ;;  %v1973_v45 = vrot.slane %v6499_v50, 7  ;;  %v2139_v60 = vrot.slane %v6403_v0, 7  ;;  %v7771_v20 = vld [vmem:[#allocation22_spill] sm:$0xff] }
 0x268   :  { %v1772_v3 = vpack.c.b16 %v1731_v34, %v1717_v11  ;;  %v1771_v38 = vsel %vm1704_vm9, %v1770_v23, %v1769_v30  ;;  %v2141_v56 = vrot.slane %v6437_v16, 6  ;;  %v2143_v43 = vrot.slane %v6446_v62, 5 }
 0x269   :  { %v1774_v9 = vpack.c.b16 %v1771_v38, %v1765_v24  ;;  %v1968_v28 = vsel %vm1698_vm6, %v1967_v37, %v6488_v10  ;;  %v1974_v54 = vsel %vm1698_vm6, %v1973_v45, %v6492_v15  ;;  %v2140_v29 = vsel %vm1698_vm6, %v2139_v60, %v6270_v12 }
 0x26a   :  { %1781 = vst.msk [vmem:[#allocation3] sm:$0xff] %vm6839_vm0, %v1772_v3  ;;  %v2145_v49 = vrot.slane %v6466_v5, 4  ;;  %v2142_v27 = vsel %vm1701_vm7, %v2141_v56, %v2140_v29  ;;  %v2147_v2 = vrot.slane %v6395_v1, 3  ;;  %v2151_v58 = vrot.slane %v6569_v42, 1  ;;  %v7772_v56 = vld [vmem:[#allocation9_spill] sm:$0xff]  ;;  %v7773_v29 = vld [vmem:[#allocation11_spill] sm:$0xff] }
 0x26b   :  { %1786 = vst.msk [vmem:[#allocation3 + $0x38] sm:$0x33] %vm1785_vm2, %v1774_v9  ;;  %v2144_v0 = vsel %vm1704_vm9, %v2143_v43, %v2142_v27  ;;  %v2153_v16 = vrot.slane %v7738_v36, 7  ;;  %v2155_v35 = vrot.slane %v7739_v22, 6  ;;  %v2157_v53 = vrot.slane %v6462_v39, 5 }
 0x26c   :  { %v2146_v62 = vsel %vm1707_vm8, %v2145_v49, %v2144_v0  ;;  %v2149_v12 = vrot.slane %v6316_v19, 2  ;;  %v2159_v5 = vrot.slane %v6468_v59, 4  ;;  %v2161_v22 = vrot.slane %v6397_v4, 3 }
 0x26d   :  { %v2148_v6 = vsel %vm1710_vm10, %v2147_v2, %v2146_v62  ;;  %v2154_v1 = vsel %vm1698_vm6, %v2153_v16, %v7740_v26  ;;  %v2165_v19 = vrot.slane %v6571_v21, 1  ;;  %v2163_v40 = vrot.slane %v6318_v32, 2 }
 0x26e   :  { %v2150_v42 = vsel %vm1713_vm11, %v2149_v12, %v2148_v6  ;;  %v2156_v52 = vsel %vm1701_vm7, %v2155_v35, %v2154_v1  ;;  %vm1881_vm0 = vcmask 277504   ;;  %v1969_v33 = vrot.slane %v6524_v25, 6 }
 0x26f   :  { %v6908_v36 = vsel %vm1716_vm12, %v2151_v58, %v2150_v42  ;;  %v2158_v39 = vsel %vm1704_vm9, %v2157_v53, %v2156_v52  ;;  %v1975_v23 = vrot.slane %v7771_v20, 6  ;;  %v2077_v30 = vrot.slane %v6524_v25, 7 }
 0x270   :  { %v2160_v59 = vsel %vm1707_vm8, %v2159_v5, %v2158_v39  ;;  %v2169_v38 = vrot.slane %v6433_v51, 6  ;;  %v2083_v37 = vrot.slane %v7771_v20, 7  ;;  %v2183_v60 = vrot.slane %v6435_v31, 6  ;;  %v7774_v51 = vld [vmem:[#allocation16_spill] sm:$0xff] }
 0x271   :  { %v2162_v14 = vsel %vm1710_vm10, %v2161_v22, %v2160_v59  ;;  %vm1893_vm2 = vcmask 1041680   ;;  %v6941_v58 = vsel %vm1701_vm7, %v1969_v33, %v1968_v28  ;;  %v6945_v35 = vsel %vm1701_vm7, %v1975_v23, %v1974_v54 }
 0x272   :  { %v2164_v26 = vsel %vm1713_vm11, %v2163_v40, %v2162_v14  ;;  %v6949_v31 = vsel %vm1698_vm6, %v2077_v30, %v6494_v41  ;;  %v6954_v62 = vsel %vm1698_vm6, %v2083_v37, %v6499_v50  ;;  %v2171_v28 = vrot.slane %v6442_v17, 5 }
 0x273   :  { %v6918_v44 = vsel %vm1716_vm12, %v2165_v19, %v2164_v26  ;;  %v2173_v12 = vrot.slane %v6464_v7, 4  ;;  %v2175_v22 = vrot.slane %v6531_v48, 3  ;;  %v2177_v19 = vrot.slane %v6488_v10, 2 }
 0x274   :  { %v2207_v34 = vpack.c.b16 %v6918_v44, %v6908_v36  ;;  %v2179_v40 = vrot.slane %v6494_v41, 1  ;;  %v2187_v21 = vrot.slane %v6474_v18, 4  ;;  %v2191_v33 = vrot.slane %v6492_v15, 2  ;;  %v5433_v15 = vld [vmem:[%s7673_s3 + $0x100] ss:$8 sps:$4 sm:$0xff]  }
 0x275   :  { %v5456_v36 = vld [vmem:[%s7673_s3 + $0x150] ss:$8 sps:$4 sm:$0xff]   ;;  %v5461_v44 = vld [vmem:[%s7673_s3 + $0x164] ss:$8 sps:$4 sm:$0xff]  }
 0x2a8   :  { %v1875_v4 = vpop.permute.xlu0 %1874 }
 0x2a9   :  { %v1879_v46 = vrot.slane %v1875_v4, 4 }
 0x2ab   :  { %v1883_v32 = vsel %vm1881_vm0, %v1879_v46, %v1875_v4  ;;  %v2185_v4 = vrot.slane %v6444_v55, 5  ;;  %v7775_v46 = vld [vmem:[#allocation23_spill] sm:$0xff] }
 0x2ac   :  { %1892 = vst.msk [vmem:[#allocation3 + $0x20] sm:$0xff] %vm6922_vm1, %v1883_v32  ;;  %v1051_v13 = vpop.permute.xlu0 %1050  ;;  %v7776_v32 = vunpack.c.l.b16 %v7775_v46  ;;  %v7777_v48 = vunpack.c.h.b16 %v7775_v46 }
 0x2ad   :  { %v1093_v63 = vrot.slane %v1051_v13, 2 }
 0x2af   :  { %v1122_v11 = vsel %vm1108_vm5, %v1051_v13, %v1093_v63 }
 0x2b0   :  { %v1178_v3 = vmax.f32 %v7770_v57, %v1122_v11  ;;  %v1079_v24 = vpop.permute.xlu0 %1078  ;;  %v2189_v11 = vrot.slane %v6533_v61, 3 }
 0x2b1   :  { %v1107_v9 = vrot.slane %v1079_v24, 2 }
 0x2b2   :  { %v1328_v43 = vrot.slane %v1178_v3, %v7772_v56  ;;  %v1332_v49 = vrot.slane %v1178_v3, %v7773_v29 }
 0x2b3   :  { %v1873_v45 = vpop.permute.xlu1 %1872  ;;  %v1136_v2 = vsel %vm1108_vm5, %v1079_v24, %v1107_v9 }
 0x2b4   :  { %v1878_v27 = vrot.slane %v1873_v45, 4  ;;  %v5088_v0 = vpack.c.bf16 %v1332_v49, %v1328_v43  ;;  %v1192_v16 = vmax.f32 %v7774_v51, %v1136_v2 }
 0x2b6   :  { %v1882_v53 = vsel %vm1881_vm0, %v1878_v27, %v1873_v45  ;;  %v2135_v5 = vunpack.c.l.b16 %v5088_v0  ;;  %v2136_v54 = vunpack.c.h.b16 %v5088_v0  ;;  %v1440_v1 = vrot.slane %v1192_v16, %v7772_v56 }
 0x2b7   :  { %1891 = vst.msk [vmem:[#allocation3 + $0x4] sm:$0xff] %vm6922_vm1, %v1882_v53  ;;  %v1444_v42 = vrot.slane %v1192_v16, %v7773_v29  ;;  %vm6986_vm1 = vmor %vm1894_vm3, %vm1893_vm2  ;;  %vm2112_vm2 = vcmask 1047556  }
 0x2b8   :  { %v2167_v17 = vrot.slane %v2135_v5, 7  ;;  %v2181_v59 = vrot.slane %v2136_v54, 7  ;;  %vm7007_vm3 = vmor %vm1999_vm15, %vm1998_vm14  ;;  %vm2226_vm15 = vcmask 1043520   ;;  %vm2227_vm14 = vcmask 343044  }
 0x2b9   :  { %v6964_v7 = vpack.c.bf16 %v1444_v42, %v1440_v1 }
 0x2ba   :  { %v5296_v6 = vpop.permute.xlu1 %5295  ;;  %v2168_v13 = vsel %vm1698_vm6, %v2167_v17, %v7776_v32  ;;  %v2182_v10 = vsel %vm1698_vm6, %v2181_v59, %v7777_v48  ;;  %v5439_v17 = vld [vmem:[%s7673_s3 + $0x110] ss:$8 sps:$4 sm:$0xff]  }
 0x2bb   :  { %v5298_v52 = vunpack.i.h.bf16 %v5296_v6  ;;  %v5297_v39 = vunpack.i.l.bf16 %v5296_v6  ;;  %v2170_v57 = vsel %vm1701_vm7, %v2169_v38, %v2168_v13  ;;  %v2184_v3 = vsel %vm1701_vm7, %v2183_v60, %v2182_v10 }
 0x2bc   :  { %v2137_v30 = vunpack.c.l.b16 %v6964_v7  ;;  %v2193_v38 = vrot.slane %v6499_v50, 1  ;;  %v2138_v9 = vunpack.c.h.b16 %v6964_v7  ;;  %v2186_v60 = vsel %vm1704_vm9, %v2185_v4, %v2184_v3  ;;  %v5441_v50 = vld [vmem:[%s7673_s3 + $0x114] ss:$8 sps:$4 sm:$0xff]   ;;  %v5445_v4 = vld [vmem:[%s7673_s3 + $0x124] ss:$8 sps:$4 sm:$0xff]  }
 0x2bd   :  { %v1106_v14 = vrot.slane %v5298_v52, 2  ;;  %v1105_v26 = vrot.slane %v5297_v39, 2  ;;  %v2188_v5 = vsel %vm1707_vm8, %v2187_v21, %v2186_v60 }
 0x2be   :  { %v1877_v63 = vpop.permute.xlu1 %1876  ;;  %v5438_v45 = vld [vmem:[#allocation3 + $0x4] ss:$28 sps:$4 sm:$0xff]   ;;  %v2190_v42 = vsel %vm1710_vm10, %v2189_v11, %v2188_v5  ;;  %v2205_v46 = vrot.slane %v2138_v9, 5 }
 0x2bf   :  { %v1135_v55 = vsel %vm1108_vm5, %v5298_v52, %v1106_v14  ;;  %v1134_v18 = vsel %vm1108_vm5, %v5297_v39, %v1105_v26  ;;  %v1880_v37 = vrot.slane %v1877_v63, 4  ;;  %vm2111_vm5 = vcmask 1044272   ;;  %2974 = vmatprep.mubr.bf16.mxu1 %v5438_v45  ;;  %v5458_v5 = vld [vmem:[%s7673_s3 + $0x154] ss:$8 sps:$4 sm:$0xff]  }
 0x2c0   :  { %v1191_v24 = vmax.f32 %v7750_v47, %v1135_v55  ;;  %v1190_v23 = vmax.f32 %v7751_v8, %v1134_v18  ;;  %v5436_v47 = vld [vmem:[#allocation3] ss:$28 sps:$4 sm:$0xff]   ;;  %v2172_v8 = vsel %vm1704_vm9, %v2171_v28, %v2170_v57  ;;  %v7019_v52 = vrot.slane %v2137_v30, 5 }
 0x2c1   :  { %v1884_v51 = vsel %vm1881_vm0, %v1880_v37, %v1877_v63  ;;  %v2174_v28 = vsel %vm1707_vm8, %v2173_v12, %v2172_v8  ;;  %2975 = vmatmul.mubr.bf16.vlgmr.msra.gmra.mrb[0].mxu1 %v5436_v47  ;;  %vm2101_vm0 = vcmask 834560   ;;  %v2192_v7 = vsel %vm1713_vm11, %v2191_v33, %v2190_v42  ;;  %v5443_v33 = vld [vmem:[%s7673_s3 + $0x120] ss:$8 sps:$4 sm:$0xff]   ;;  %vm7061_vm8 = vmor %vm2112_vm2, %vm2111_vm5  ;;  %v5464_v42 = vld [vmem:[%s7673_s3 + $0x174] ss:$8 sps:$4 sm:$0xff]  }
 0x2c2   :  { %v1432_v43 = vrot.slane %v1191_v24, %v7772_v56  ;;  %v1436_v49 = vrot.slane %v1191_v24, %v7773_v29  ;;  %v1424_v27 = vrot.slane %v1190_v23, %v7772_v56  ;;  %v1428_v2 = vrot.slane %v1190_v23, %v7773_v29  ;;  %v1983_v0 = vpop.permute.xlu1 %1982  ;;  %1896 = vst.msk [vmem:[#allocation3 + $0x3c] sm:$0x33] %vm6986_vm1, %v1884_v51  ;;  %v5449_v23 = vld [vmem:[%s7673_s3 + $0x134] ss:$8 sps:$4 sm:$0xff]   ;;  %v5521_v8 = vld [vmem:[%s7673_s3 + $0x2a4] ss:$8 sps:$4 sm:$0xff]   ;;  %vm2228_vm2 = vmor %vm2227_vm14, %vm2226_vm15 }
 0x2c3   :  { %v1988_v53 = vrot.slane %v1983_v0, 4  ;;  %v2176_v1 = vsel %vm1710_vm10, %v2175_v22, %v2174_v28  ;;  %2994 = vmatpush1.bf16.msra.mxu1 %v5433_v15  ;;  %v2194_v13 = vsel %vm1716_vm12, %v2193_v38, %v2192_v7  ;;  %v5468_v7 = vld [vmem:[%s7673_s3 + $0x190] ss:$8 sps:$4 sm:$0xff]   ;;  %vm2120_vm10 = vcmask 1045508  }
 0x2c4   :  { %v7013_v54 = vpack.c.bf16 %v1436_v49, %v1432_v43  ;;  %v5085_v6 = vpack.c.bf16 %v1428_v2, %v1424_v27  ;;  %v1985_v12 = vpop.permute.xlu0 %1984  ;;  %v2178_v59 = vsel %vm1713_vm11, %v2177_v19, %v2176_v1  ;;  %2995 = vmatprep.subr.bf16.mxu1 %v5441_v50  ;;  %v5447_v43 = vld [vmem:[%s7673_s3 + $0x130] ss:$8 sps:$4 sm:$0xff]   ;;  %vm2219_vm5 = vcmask 64512  }
 0x2c5   :  { %v1992_v39 = vsel %vm1991_vm13, %v1988_v53, %v1983_v0  ;;  %v1989_v22 = vrot.slane %v1985_v12, 4  ;;  %v2180_v19 = vsel %vm1716_vm12, %v2179_v40, %v2178_v59  ;;  %v5450_v53 = vld [vmem:[%s7673_s3 + $0x140] ss:$8 sps:$4 sm:$0xff]   ;;  %v5470_v59 = vld [vmem:[%s7673_s3 + $0x194] ss:$8 sps:$4 sm:$0xff]   ;;  %vm2123_vm12 = vcmask 58368  }
 0x2c6   :  { %v1909_v14 = vunpack.c.l.b16 %v5085_v6  ;;  %v1910_v26 = vunpack.c.h.b16 %v5085_v6  ;;  %2001 = vst.msk [vmem:[#allocation3 + $0x8] sm:$0xff] %vm7007_vm3, %v1992_v39  ;;  %v2019_v21 = vunpack.c.l.b16 %v7013_v54  ;;  %v2020_v32 = vunpack.c.h.b16 %v7013_v54  ;;  %v5462_v39 = vld [vmem:[%s7673_s3 + $0x170] ss:$8 sps:$4 sm:$0xff]  }
 0x2c7   :  { %v1993_v48 = vsel %vm1991_vm13, %v1989_v22, %v1985_v12  ;;  %2996 = vmatpush1.bf16.msra.mxu1 %v5439_v17  ;;  %v2208_v55 = vpack.c.b16 %v2194_v13, %v2180_v19  ;;  %v5467_v12 = vld [vmem:[%s7673_s3 + $0x184] ss:$8 sps:$4 sm:$0xff]   ;;  %v5465_v17 = vld [vmem:[%s7673_s3 + $0x180] ss:$8 sps:$4 sm:$0xff]   ;;  %v5476_v22 = vld [vmem:[%s7673_s3 + $0x1b4] ss:$8 sps:$4 sm:$0xff]  }
 0x2c8   :  { %v1971_v10 = vrot.slane %v1909_v14, 5  ;;  %v1977_v63 = vrot.slane %v1910_v26, 5  ;;  %v2079_v11 = vrot.slane %v1909_v14, 6  ;;  %2002 = vst.msk [vmem:[#allocation3 + $0x24] sm:$0xff] %vm7007_vm3, %v1993_v48  ;;  %v2081_v57 = vrot.slane %v2019_v21, 5  ;;  %2997 = vmatprep.subr.bf16.mxu1 %v5445_v4 }
 0x2c9   :  { %v2085_v3 = vrot.slane %v1910_v26, 6  ;;  %v2087_v41 = vrot.slane %v2020_v32, 5  ;;  %v2195_v30 = vrot.slane %v1909_v14, 7  ;;  %v2243_v61 = vld [vmem:[#allocation3 + $0x38] sm:$0x33]  ;;  %v2197_v37 = vrot.slane %v2019_v21, 6 }
 0x2ca   :  { %v1972_v40 = vsel %vm1704_vm9, %v1971_v10, %v6941_v58  ;;  %v1978_v18 = vsel %vm1704_vm9, %v1977_v63, %v6945_v35  ;;  %v2080_v24 = vsel %vm1701_vm7, %v2079_v11, %v6949_v31  ;;  %v4831_v47 = vcombine.high %v2243_v61, %v2243_v61  ;;  %v5473_v14 = vld [vmem:[%s7673_s3 + $0x1a4] ss:$8 sps:$4 sm:$0xff]   ;;  %v5474_v4 = vld [vmem:[%s7673_s3 + $0x1b0] ss:$8 sps:$4 sm:$0xff]   ;;  %v5483_v48 = vld [vmem:[%s7673_s3 + $0x1e0] ss:$8 sps:$4 sm:$0xff]  }
 0x2cb   :  { %v1981_v15 = vpack.c.b16 %v1978_v18, %v1972_v40  ;;  %v2082_v38 = vsel %vm1704_vm9, %v2081_v57, %v2080_v24  ;;  %v2086_v9 = vsel %vm1701_vm7, %v2085_v3, %v6954_v62  ;;  %v2093_v58 = vpop.permute.xlu1 %2092  ;;  %v4830_v45 = vcombine.low %v2243_v61, %v2243_v61  ;;  %2998 = vmatpush1.bf16.msra.mxu1 %v5443_v33  ;;  %v5479_v21 = vld [vmem:[%s7673_s3 + $0x1c4] ss:$8 sps:$4 sm:$0xff]   ;;  %v5480_v19 = vld [vmem:[%s7673_s3 + $0x1d0] ss:$8 sps:$4 sm:$0xff]   ;;  %v5488_v10 = vld [vmem:[%s7673_s3 + $0x1f4] ss:$8 sps:$4 sm:$0xff]  }
 0x2cc   :  { %v2088_v35 = vsel %vm1704_vm9, %v2087_v41, %v2086_v9  ;;  %v2196_v31 = vsel %vm1698_vm6, %v2195_v30, %v6524_v25  ;;  %v2098_v60 = vrot.slane %v2093_v58, 4  ;;  %v2201_v27 = vrot.slane %v1910_v26, 7  ;;  %2984 = vmatprep.mubr.bf16.mxu1 %v4831_v47  ;;  %2999 = vmatprep.subr.bf16.mxu1 %v5449_v23  ;;  %v5452_v25 = vld [vmem:[%s7673_s3 + $0x144] ss:$8 sps:$4 sm:$0xff]   ;;  %v5471_v26 = vld [vmem:[%s7673_s3 + $0x1a0] ss:$8 sps:$4 sm:$0xff]  }
 0x2cd   :  { %1986 = vrot.lane.b32.xlu1 %v1981_v15, %s5645_s24  ;;  %v2091_v62 = vpack.c.b16 %v2088_v35, %v2082_v38  ;;  %v2198_v49 = vsel %vm1701_vm7, %v2197_v37, %v2196_v31  ;;  %v2203_v2 = vrot.slane %v2020_v32, 6  ;;  %2985 = vmatmul.mubr.bf16.gmra.mrb[4].mxu1 %v4830_v45  ;;  %v5482_v32 = vld [vmem:[%s7673_s3 + $0x1d4] ss:$8 sps:$4 sm:$0xff]   ;;  %v5485_v13 = vld [vmem:[%s7673_s3 + $0x1e4] ss:$8 sps:$4 sm:$0xff]   ;;  %vm2231_vm3 = vcmask 1041472  }
 0x2ce   :  { %v2102_v0 = vsel %vm2101_vm0, %v2098_v60, %v2093_v58  ;;  %2116 = vst.msk [vmem:[#allocation3 + $0x14] sm:$0xf] %vm2115_vm4, %v2098_v60  ;;  %v2202_v50 = vsel %vm1698_vm6, %v2201_v27, %v7771_v20  ;;  %v2200_v51 = vsel %vm1704_vm9, %v7019_v52, %v2198_v49  ;;  %v5486_v63 = vld [vmem:[%s7673_s3 + $0x1f0] ss:$8 sps:$4 sm:$0xff]   ;;  %v5491_v11 = vld [vmem:[%s7673_s3 + $0x204] ss:$8 sps:$4 sm:$0xff]  }
 0x2cf   :  { %2096 = vrot.lane.b32.xlu0 %v2091_v62, %s5646_s25  ;;  %2114 = vst.msk [vmem:[#allocation3 + $0xc] sm:$0xff] %vm7061_vm8, %v2102_v0  ;;  %v2204_v16 = vsel %vm1701_vm7, %v2203_v2, %v2202_v50  ;;  %3000 = vmatpush1.bf16.msra.mxu1 %v5447_v43  ;;  %v5489_v33 = vld [vmem:[%s7673_s3 + $0x200] ss:$8 sps:$4 sm:$0xff]   ;;  %v5494_v3 = vld [vmem:[%s7673_s3 + $0x214] ss:$8 sps:$4 sm:$0xff]   ;;  %vm2004_vm7 = vcmask 832516  }
 0x2d0   :  { %v2206_v20 = vsel %vm1704_vm9, %v2205_v46, %v2204_v16  ;;  %3001 = vmatprep.subr.bf16.mxu1 %v5452_v25  ;;  %v5477_v46 = vld [vmem:[%s7673_s3 + $0x1c0] ss:$8 sps:$4 sm:$0xff]   ;;  %v5492_v41 = vld [vmem:[%s7673_s3 + $0x210] ss:$8 sps:$4 sm:$0xff]   ;;  %v5500_v18 = vld [vmem:[%s7673_s3 + $0x234] ss:$8 sps:$4 sm:$0xff]  }
 0x2d1   :  { %2210 = vrot.lane.b32.xlu1 %v2207_v34, %s5647_s22  ;;  %v2095_v28 = vpop.permute.xlu0 %2094  ;;  %v2209_v6 = vpack.c.b16 %v2206_v20, %v2200_v51  ;;  %v5459_v34 = vld [vmem:[%s7673_s3 + $0x160] ss:$8 sps:$4 sm:$0xff]   ;;  %v5498_v24 = vld [vmem:[%s7673_s3 + $0x230] ss:$8 sps:$4 sm:$0xff]   ;;  %v5503_v23 = vld [vmem:[%s7673_s3 + $0x244] ss:$8 sps:$4 sm:$0xff]  }
 0x2d2   :  { %v2099_v54 = vrot.slane %v2095_v28, 4  ;;  %v5453_v57 = vld [vmem:[#allocation3 + $0x8] ss:$28 sps:$4 sm:$0xff]   ;;  %v5504_v15 = vld [vmem:[%s7673_s3 + $0x250] ss:$8 sps:$4 sm:$0xff]   ;;  %vm2119_vm9 = vcmask 1042224  }
 0x2d3   :  { %2212 = vrot.lane.b32.xlu0 %v2208_v55, %s5647_s22  ;;  %3002 = vmatpush1.bf16.msra.mxu1 %v5450_v53  ;;  %v5497_v55 = vld [vmem:[%s7673_s3 + $0x224] ss:$8 sps:$4 sm:$0xff]   ;;  %v5495_v40 = vld [vmem:[%s7673_s3 + $0x220] ss:$8 sps:$4 sm:$0xff]   ;;  %v5506_v61 = vld [vmem:[%s7673_s3 + $0x254] ss:$8 sps:$4 sm:$0xff]  }
 0x2d4   :  { %v2103_v1 = vsel %vm2101_vm0, %v2099_v54, %v2095_v28  ;;  %2118 = vst.msk [vmem:[#allocation3 + $0x30] sm:$0xf] %vm2115_vm4, %v2099_v54  ;;  %3003 = vmatprep.subr.bf16.mxu1 %v5458_v5  ;;  %v5501_v30 = vld [vmem:[%s7673_s3 + $0x240] ss:$8 sps:$4 sm:$0xff]   ;;  %v5509_v38 = vld [vmem:[%s7673_s3 + $0x264] ss:$8 sps:$4 sm:$0xff]   ;;  %vm2121_vm1 = vmor %vm2120_vm10, %vm2119_vm9 }
 0x2d5   :  { %2214 = vrot.lane.b32.xlu1 %v2209_v6, %s5647_s22  ;;  %2117 = vst.msk [vmem:[#allocation3 + $0x28] sm:$0xff] %vm7061_vm8, %v2103_v1  ;;  %v5507_v9 = vld [vmem:[%s7673_s3 + $0x260] ss:$8 sps:$4 sm:$0xff]   ;;  %v5512_v37 = vld [vmem:[%s7673_s3 + $0x274] ss:$8 sps:$4 sm:$0xff]   ;;  %vm2003_vm4 = vcmask 1041952  }
 0x2d6   :  { %v5510_v58 = vld [vmem:[%s7673_s3 + $0x270] ss:$8 sps:$4 sm:$0xff]   ;;  %v5515_v47 = vld [vmem:[%s7673_s3 + $0x284] ss:$8 sps:$4 sm:$0xff]   ;;  %v5513_v45 = vld [vmem:[%s7673_s3 + $0x280] ss:$8 sps:$4 sm:$0xff]  }
 0x2d7   :  { %3004 = vmatpush1.bf16.msra.mxu1 %v5456_v36  ;;  %v5518_v35 = vld [vmem:[%s7673_s3 + $0x294] ss:$8 sps:$4 sm:$0xff]   ;;  %v5516_v31 = vld [vmem:[%s7673_s3 + $0x290] ss:$8 sps:$4 sm:$0xff]   ;;  %v5519_v60 = vld [vmem:[%s7673_s3 + $0x2a0] ss:$8 sps:$4 sm:$0xff]  }
 0x2d8   :  { %3005 = vmatprep.subr.bf16.mxu1 %v5461_v44  ;;  %v5524_v62 = vld [vmem:[%s7673_s3 + $0x2b4] ss:$8 sps:$4 sm:$0xff]   ;;  %v5522_v43 = vld [vmem:[%s7673_s3 + $0x2b0] ss:$8 sps:$4 sm:$0xff]   ;;  %v5527_v49 = vld [vmem:[%s7673_s3 + $0x2c4] ss:$8 sps:$4 sm:$0xff]  }
 0x2d9   :  { %v5525_v27 = vld [vmem:[%s7673_s3 + $0x2c0] ss:$8 sps:$4 sm:$0xff]   ;;  %v5530_v25 = vld [vmem:[%s7673_s3 + $0x2d4] ss:$8 sps:$4 sm:$0xff]   ;;  %v5528_v2 = vld [vmem:[%s7673_s3 + $0x2d0] ss:$8 sps:$4 sm:$0xff]  }
 0x2da   :  { %v5534_v0 = vld [vmem:[%s7673_s3 + $0x2e4] ss:$8 sps:$4 sm:$0xff]   ;;  %v5532_v50 = vld [vmem:[%s7673_s3 + $0x2e0] ss:$8 sps:$4 sm:$0xff]   ;;  %v5538_v51 = vld [vmem:[%s7673_s3 + $0x2f4] ss:$8 sps:$4 sm:$0xff]  }
 0x2db   :  { %3006 = vmatpush1.bf16.msra.mxu1 %v5459_v34  ;;  %v5536_v16 = vld [vmem:[%s7673_s3 + $0x2f0] ss:$8 sps:$4 sm:$0xff]   ;;  %v5544_v53 = vld [vmem:[%s7673_s3 + $0x304] ss:$8 sps:$4 sm:$0xff]   ;;  %vm2005_vm11 = vmor %vm2004_vm7, %vm2003_vm4  ;;  %vm2232_vm8 = vcmask 340996   ;;  %vm2928_vm4 = vcmask 343040  }
 0x2dc   :  { %v5455_v52 = vld [vmem:[#allocation3 + $0xc] ss:$28 sps:$4 sm:$0xff]   ;;  %3007 = vmatprep.subr.bf16.mxu1 %v5464_v42  ;;  %vm3293_vm7 = vcmask 916480   ;;  %s5652_s22 = smov 16   ;;  %vm3540_vm9 = vcmask 1040384   ;;  %vm3541_vm10 = vcmask 123905  }
 0x2dd   :  { %3025 = vmatprep.mubr.bf16.mxu1 %v5455_v52  ;;  %vm3632_vm15 = vcmask 130048  }
 0x2df   :  { %3008 = vmatpush1.bf16.msra.mxu1 %v5462_v39 }
 0x2e0   :  { %3009 = vmatprep.subr.bf16.mxu1 %v5467_v12 }
 0x2e3   :  { %3010 = vmatpush1.bf16.msra.mxu1 %v5465_v17 }
 0x2e4   :  { %3011 = vmatprep.subr.bf16.mxu1 %v5470_v59 }
 0x2e7   :  { %3012 = vmatpush1.bf16.msra.mxu1 %v5468_v7 }
 0x2e8   :  { %3013 = vmatprep.subr.bf16.mxu1 %v5473_v14 }
 0x2eb   :  { %3014 = vmatpush1.bf16.msra.mxu1 %v5471_v26 }
 0x2ec   :  { %3015 = vmatprep.subr.bf16.mxu1 %v5476_v22 }
 0x2ef   :  { %3016 = vmatpush1.bf16.msra.mxu1 %v5474_v4 }
 0x2f0   :  { %3017 = vmatprep.subr.bf16.mxu1 %v5479_v21  ;;  %v5542_v21 = vld [vmem:[%s7673_s3 + $0x300] ss:$8 sps:$4 sm:$0xff]  }
 0x2f3   :  { %3018 = vmatpush1.bf16.msra.mxu1 %v5477_v46  ;;  %v5539_v46 = vld [vmem:[#allocation3 + $0x10] ss:$28 sps:$4 sm:$0xff]  }
 0x2f4   :  { %3019 = vmatprep.subr.bf16.mxu1 %v5482_v32  ;;  %v5548_v32 = vld [vmem:[%s7673_s3 + $0x314] ss:$8 sps:$4 sm:$0xff]  }
 0x2f7   :  { %3020 = vmatpush1.bf16.msra.mxu1 %v5480_v19 }
 0x2f8   :  { %3021 = vmatprep.subr.bf16.mxu1 %v5485_v13  ;;  %v5546_v13 = vld [vmem:[%s7673_s3 + $0x310] ss:$8 sps:$4 sm:$0xff]  }
 0x2fb   :  { %3022 = vmatpush1.bf16.msra.mxu1 %v5483_v48  ;;  %v5550_v48 = vld [vmem:[%s7673_s3 + $0x324] ss:$8 sps:$4 sm:$0x1f]  }
 0x2fc   :  { %3023 = vmatprep.subr.bf16.mxu1 %v5488_v10  ;;  %v5552_v10 = vld [vmem:[%s7673_s3 + $0x320] ss:$8 sps:$4 sm:$0x1f]   ;;  %s5649_s3 = smov 112  }
 0x2ff   :  { %3024 = vmatpush1.bf16.msra.mxu1 %v5486_v63 }
 0x300   :  { %3044 = vmatprep.subr.bf16.mxu1 %v5491_v11 }
 0x302   :  { %3026 = vmatmul.mubr.bf16.vlgmr.msra.gmra.mrb[0].mxu1 %v5453_v57 }
 0x303   :  { %3045 = vmatpush1.bf16.msra.mxu1 %v5489_v33  ;;  %v5648_v33 = vmov 0  }
 0x304   :  { %3046 = vmatprep.subr.bf16.mxu1 %v5494_v3 }
 0x307   :  { %3047 = vmatpush1.bf16.msra.mxu1 %v5492_v41  ;;  %v2349_v41 = vld [vmem:[%s7674_s4] sm:$0x3] }
 0x308   :  { %3048 = vmatprep.subr.bf16.mxu1 %v5497_v55  ;;  %v2354_v55 = vrot.slane %v2349_v41, %v7772_v56 }
 0x30b   :  { %3049 = vmatpush1.bf16.msra.mxu1 %v5495_v40  ;;  %v7784_v40 = vld [vmem:[#allocation8_spill] sm:$0xff] }
 0x30c   :  { %3050 = vmatprep.subr.bf16.mxu1 %v5500_v18  ;;  %v7785_v18 = vsub.s32 1, %v7784_v40 }
 0x30f   :  { %3051 = vmatpush1.bf16.msra.mxu1 %v5498_v24  ;;  %v2358_v24 = vrot.slane %v2349_v41, %v7785_v18 }
 0x310   :  { %3052 = vmatprep.subr.bf16.mxu1 %v5503_v23 }
 0x313   :  { %3053 = vmatpush1.bf16.msra.mxu1 %v5501_v30 }
 0x314   :  { %3054 = vmatprep.subr.bf16.mxu1 %v5506_v61 }
 0x317   :  { %3055 = vmatpush1.bf16.msra.mxu1 %v5504_v15 }
 0x318   :  { %3056 = vmatprep.subr.bf16.mxu1 %v5509_v38 }
 0x31b   :  { %3057 = vmatpush1.bf16.msra.mxu1 %v5507_v9 }
 0x31c   :  { %3058 = vmatprep.subr.bf16.mxu1 %v5512_v37 }
 0x31f   :  { %3059 = vmatpush1.bf16.msra.mxu1 %v5510_v58 }
 0x320   :  { %3060 = vmatprep.subr.bf16.mxu1 %v5515_v47 }
 0x323   :  { %3061 = vmatpush1.bf16.msra.mxu1 %v5513_v45 }
 0x324   :  { %3062 = vmatprep.subr.bf16.mxu1 %v5518_v35 }
 0x327   :  { %3063 = vmatpush1.bf16.msra.mxu1 %v5516_v31 }
 0x328   :  { %3064 = vmatprep.subr.bf16.mxu1 %v5521_v8 }
 0x32b   :  { %3065 = vmatpush1.bf16.msra.mxu1 %v5519_v60 }
 0x32c   :  { %3066 = vmatprep.subr.bf16.mxu1 %v5524_v62  ;;  %v7786_v62 = vld [vmem:[#allocation10_spill] sm:$0xff] }
 0x32f   :  { %3067 = vmatpush1.bf16.msra.mxu1 %v5522_v43 }
 0x330   :  { %3068 = vmatprep.subr.bf16.mxu1 %v5527_v49 }
 0x333   :  { %3069 = vmatpush1.bf16.msra.mxu1 %v5525_v27 }
 0x334   :  { %3070 = vmatprep.subr.bf16.mxu1 %v5530_v25 }
 0x337   :  { %3071 = vmatpush1.bf16.msra.mxu1 %v5528_v2 }
 0x338   :  { %3072 = vmatprep.subr.bf16.mxu1 %v5534_v0 }
 0x33b   :  { %3073 = vmatpush1.bf16.msra.mxu1 %v5532_v50 }
 0x33c   :  { %3074 = vmatprep.subr.bf16.mxu1 %v5538_v51 }
 0x33f   :  { %v1987_v20 = vpop.permute.xlu1 %1986  ;;  %3075 = vmatpush1.bf16.msra.mxu1 %v5536_v16 }
 0x340   :  { %v1990_v28 = vrot.slane %v1987_v20, 4  ;;  %3095 = vmatprep.subr.bf16.mxu1 %v5544_v53 }
 0x341   :  { %v2097_v5 = vpop.permute.xlu0 %2096 }
 0x342   :  { %v1994_v54 = vsel %vm1991_vm13, %v1990_v28, %v1987_v20  ;;  %v2100_v6 = vrot.slane %v2097_v5, 4  ;;  %vm2233_vm13 = vmor %vm2232_vm8, %vm2231_vm3  ;;  %vm7787_vm3 = vcmask 261120   ;;  %vm3825_vm8 = vcmask 1040768  }
 0x343   :  { %2006 = vst.msk [vmem:[#allocation3 + $0x40] sm:$0x33] %vm2005_vm11, %v1994_v54  ;;  %v2211_v1 = vpop.permute.xlu1 %2210  ;;  %vm3542_vm11 = vmor %vm3541_vm10, %vm3540_vm9  ;;  %vm3921_vm9 = vcmask 648193   ;;  %vm3917_vm10 = vcmask 523264  }
 0x344   :  { %v2104_v36 = vsel %vm2101_vm0, %v2100_v6, %v2097_v5  ;;  %2124 = vst.msk [vmem:[#allocation3 + $0x4c] sm:$0x3] %vm2123_vm12, %v2100_v6  ;;  %v2216_v44 = vrot.slane %v2211_v1, 4  ;;  %vm2935_vm0 = vcmask 1044480   ;;  %vm3636_vm12 = vcmask 254977  }
 0x345   :  { %2122 = vst.msk [vmem:[#allocation3 + $0x44] sm:$0x33] %vm2121_vm1, %v2104_v36  ;;  %v2213_v34 = vpop.permute.xlu0 %2212  ;;  %v2937_v11 = vsel %vm2935_vm0, %v5552_v10, 0  ;;  %vm3730_vm1 = vcmask 1040640  }
 0x346   :  { %v2220_v42 = vsel %vm2219_vm5, %v2216_v44, %v2211_v1  ;;  %v2217_v52 = vrot.slane %v2213_v34, 4 }
 0x347   :  { %2229 = vst.msk [vmem:[#allocation3 + $0x14] sm:$0xff] %vm2228_vm2, %v2220_v42  ;;  %v2215_v39 = vpop.permute.xlu1 %2214 }
 0x348   :  { %v2221_v12 = vsel %vm2219_vm5, %v2217_v52, %v2213_v34  ;;  %v2218_v17 = vrot.slane %v2215_v39, 4 }
 0x349   :  { %2230 = vst.msk [vmem:[#allocation3 + $0x30] sm:$0xff] %vm2228_vm2, %v2221_v12 }
 0x34a   :  { %v2222_v59 = vsel %vm2219_vm5, %v2218_v17, %v2215_v39  ;;  %vm3731_vm5 = vcmask 386049  }
 0x34b   :  { %2234 = vst.msk [vmem:[#allocation3 + $0x4c] sm:$0x33] %vm2233_vm13, %v2222_v59  ;;  %vm3732_vm2 = vmor %vm3731_vm5, %vm3730_vm1  ;;  %vm3826_vm13 = vcmask 517121   ;;  %vm7789_vm1 = vcmask 1041408   ;;  %vm4638_vm5 = vcmask 687104  }
 0x34c   :  { %v2244_v7 = vld [vmem:[#allocation3 + $0x40] sm:$0x33] }
 0x34d   :  { %v4833_v14 = vcombine.high %v2244_v7, %v2244_v7  ;;  %v4832_v26 = vcombine.low %v2244_v7, %v2244_v7 }
 0x34f   :  { %3035 = vmatprep.mubr.bf16.mxu1 %v4833_v14 }
 0x350   :  { %3036 = vmatmul.mubr.bf16.gmra.mrb[4].mxu1 %v4832_v26  ;;  %v5541_v22 = vld [vmem:[#allocation3 + $0x14] ss:$28 sps:$4 sm:$0xff]  }
 0x351   :  { %3076 = vmatprep.mubr.bf16.mxu1 %v5541_v22  ;;  %v5553_v57 = vld [vmem:[#allocation3 + $0x18] ss:$28 sps:$4 sm:$0xff]  }
 0x352   :  { %v2245_v4 = vld [vmem:[#allocation3 + $0x48] sm:$0x33]  ;;  %v5554_v3 = vld [vmem:[#allocation3 + $0x50] ss:$0 sps:$4 sm:$0x33]  }
 0x353   :  { %v4835_v19 = vcombine.high %v2245_v4, %v2245_v4  ;;  %v4834_v63 = vcombine.low %v2245_v4, %v2245_v4 }
 0x358   :  { %3077 = vmatmul.mubr.bf16.vlgmr.msra.gmra.mrb[0].mxu1 %v5539_v46 }
 0x359   :  { %3096 = vmatpush1.bf16.msra.mxu1 %v5542_v21  ;;  %3086 = vmatprep.mubr.bf16.mxu1 %v4835_v19 }
 0x35a   :  { %3097 = vmatprep.subr.bf16.mxu1 %v5548_v32 }
 0x35d   :  { %3098 = vmatpush1.bf16.msra.mxu1 %v5546_v13 }
 0x35e   :  { %4939 = vmatprep.subr.msk.bf16.mxu1 %vm2935_vm0, %v5550_v48  ;;  %vm3822_vm0 = vcmask 392192  }
 0x360   :  { %3087 = vmatmul.mubr.bf16.gmra.mrb[4].mxu1 %v4834_v63 }
 0x361   :  { %3100 = vmatpush1.bf16.msra.mxu1 %v2937_v11  ;;  %3127 = vmatprep.mubr.bf16.mxu1 %v5648_v33 }
 0x368   :  { %4940 = vmatmul.mubr.msk.bf16.vlgmr.msra.gmra.mrb[0].mxu1 %vm2928_vm4, %v5553_v57 }
 0x369   :  { %3137 = vmatprep.mubr.bf16.mxu1 %v5648_v33 }
 0x370   :  { %4941 = vmatmul.mubr.msk.bf16.gmra.mrb[4].mxu1 %vm2928_vm4, %v5554_v3  ;;  %vm3827_vm4 = vmor %vm3826_vm13, %vm3825_vm8 }
 0x43b   :  { %v3129_v23 = vpop.f32.mrb[0].mxu1 }
 0x43c   :  { %v5186_v30 = vadd.f32 %v3129_v23, %v2354_v55  ;;  %v3131_v61 = vpop.f32.mrb[1].mxu1  ;;  %v5555_v23 = vld [vmem:[%s7675_s5 + $0x40] sm:$0xff]  }
 0x43d   :  { %v5187_v15 = vadd.f32 %v3131_v61, %v2358_v24  ;;  %v3133_v38 = vpop.f32.mrb[2].mxu1  ;;  %v5557_v61 = vld [vmem:[%s7675_s5 + $0x48] sm:$0xff]   ;;  %5090 = vmatprep.subr.bf16.mxu0 %v5555_v23 }
 0x43e   :  { %v3146_v9 = vmax.f32 %v5186_v30, 0.0  ;;  %v5188_v37 = vadd.f32 %v3133_v38, %v2354_v55  ;;  %v3135_v58 = vpop.f32.mrb[3].mxu1  ;;  %v5556_v30 = vld [vmem:[%s7675_s5] sm:$0xff]   ;;  %v5559_v38 = vld [vmem:[%s7675_s5 + $0x50] sm:$0xff]  }
 0x43f   :  { %v3147_v47 = vmax.f32 %v5187_v15, 0.0  ;;  %v5189_v45 = vadd.f32 %v3135_v58, %v2358_v24  ;;  %5091 = vmatpush3.bf16.msra.mxu0 %v5556_v30  ;;  %v5558_v15 = vld [vmem:[%s7675_s5 + $0x8] sm:$0xff]   ;;  %v5651_v58 = vmov 1935823168  }
 0x440   :  { %v3148_v35 = vmax.f32 %v5188_v37, 0.0  ;;  %5092 = vmatprep.subr.bf16.mxu0 %v5557_v61 }
 0x441   :  { %v3158_v31 = vcombine.low %v3146_v9, %v3147_v47  ;;  %v3159_v8 = vcombine.high %v3146_v9, %v3147_v47  ;;  %v3149_v60 = vmax.f32 %v5189_v45, 0.0  ;;  %v5650_v9 = vmov 1966171168  }
 0x442   :  { %v3460_v37 = vunpack.c.l.s4 %v5650_v9  ;;  %v3489_v47 = vunpack.c.l.s4 %v5651_v58 }
 0x443   :  { %v3166_v43 = vrot.slane %v3158_v31, %v7786_v62  ;;  %v3176_v49 = vcombine.low %v3148_v35, %v3149_v60  ;;  %v3177_v27 = vcombine.high %v3148_v35, %v3149_v60  ;;  %v3139_v25 = vpop.f32.mrb[4].mxu1  ;;  %v3173_v2 = vrot.slane %v3159_v8, %v7786_v62  ;;  %5093 = vmatpush3.bf16.msra.mxu0 %v5558_v15 }
 0x444   :  { %v5190_v0 = vadd.f32 %v3139_v25, %v2354_v55  ;;  %v3141_v50 = vpop.f32.mrb[5].mxu1  ;;  %5094 = vmatprep.subr.bf16.mxu0 %v5559_v38  ;;  %v3461_v8 = vunpack.c.0.s8 %v3460_v37  ;;  %v3490_v60 = vunpack.c.0.s8 %v3489_v47 }
 0x445   :  { %v3191_v51 = vrot.slane %v3177_v27, %v7786_v62  ;;  %v5191_v16 = vadd.f32 %v3141_v50, %v2358_v24  ;;  %v3143_v53 = vpop.f32.mrb[6].mxu1  ;;  %v3174_v1 = vcombine.high %v3166_v43, %v3166_v43  ;;  %v3175_v36 = vcombine.high %v3173_v2, %v3173_v2 }
 0x446   :  { %v3150_v20 = vmax.f32 %v5190_v0, 0.0  ;;  %v3144_v28 = vpop.f32.mrb[7].mxu1  ;;  %v3184_v44 = vrot.slane %v3176_v49, %v7786_v62  ;;  %v4944_v59 = vrot.slane %v3173_v2, 9  ;;  %v4942_v55 = vrot.slane %v3166_v43, 9 }
 0x447   :  { %v3151_v5 = vmax.f32 %v5191_v16, 0.0  ;;  %v3193_v54 = vcombine.high %v3191_v51, %v3191_v51  ;;  %v4948_v6 = vrot.slane %v3191_v51, 9  ;;  %v4943_v17 = vrot.slane %v3174_v1, 9 }
 0x448   :  { %v4945_v7 = vrot.slane %v3175_v36, 9  ;;  %v4946_v4 = vrot.slane %v3184_v44, 9  ;;  %v3192_v19 = vcombine.high %v3184_v44, %v3184_v44  ;;  %v7296_v13 = vmax.f32 %v3173_v2, %v4944_v59 }
 0x449   :  { %v3194_v34 = vcombine.low %v3150_v20, %v3151_v5  ;;  %v4949_v42 = vrot.slane %v3193_v54, 9  ;;  %v3249_v39 = vmax.f32 %v3191_v51, %v4948_v6  ;;  %v7292_v21 = vmax.f32 %v3174_v1, %v4943_v17 }
 0x44a   :  { %v7302_v63 = vmax.f32 %v3175_v36, %v4945_v7  ;;  %v7304_v11 = vmax.f32 %v3184_v44, %v4946_v4  ;;  %v4947_v3 = vrot.slane %v3192_v19, 9  ;;  %v7313_v24 = vmax.f32 %v3166_v43, %v4942_v55 }
 0x44b   :  { %v3201_v52 = vrot.slane %v3194_v34, %v7786_v62  ;;  %v3250_v12 = vmax.f32 %v3193_v54, %v4949_v42  ;;  %v7334_v50 = vsub.s32 %v3461_v8, %v7784_v40  ;;  %v7337_v51 = vsub.s32 %v3490_v60, %v7784_v40 }
 0x44c   :  { %v5314_v41 = vpack.i.bf16 %v7304_v11, %v7302_v63  ;;  %v7310_v18 = vmax.f32 %v3192_v19, %v4947_v3 }
 0x44d   :  { %v5299_v14 = vpack.i.bf16 %v3250_v12, %v3249_v39  ;;  %v4950_v26 = vrot.slane %v3201_v52, 9  ;;  %v3202_v22 = vcombine.high %v3201_v52, %v3201_v52 }
 0x44f   :  { %5300 = vrot.lane.b32.xlu0 %v5299_v14, %s5649_s3  ;;  %v7294_v46 = vmax.f32 %v3201_v52, %v4950_v26  ;;  %v4951_v32 = vrot.slane %v3202_v22, 9 }
 0x451   :  { %v5304_v48 = vpack.i.bf16 %v7294_v46, %v7292_v21  ;;  %v7300_v10 = vmax.f32 %v3202_v22, %v4951_v32 }
 0x453   :  { %5305 = vrot.lane.b32.xlu1 %v5304_v48, %s5649_s3  ;;  %v5309_v57 = vpack.i.bf16 %v7300_v10, %v7296_v13 }
 0x455   :  { %5310 = vrot.lane.b32.xlu0 %v5309_v57, %s5649_s3 }
 0x457   :  { %5315 = vrot.lane.b32.xlu1 %v5314_v41, %s5649_s3 }
 0x459   :  { %3273 = vrot.lane.b32.xlu0 %v7310_v18, %s5649_s3 }
 0x45b   :  { %3263 = vrot.lane.b32.xlu1 %v7313_v24, %s5649_s3 }
 0x4c1   :  { %v5301_v45 = vpop.permute.xlu0 %5300 }
 0x4c2   :  { %v5303_v35 = vunpack.i.h.bf16 %v5301_v45  ;;  %v5302_v31 = vunpack.i.l.bf16 %v5301_v45 }
 0x4c4   :  { %v3290_v62 = vrot.slane %v5303_v35, 2  ;;  %v3289_v43 = vrot.slane %v5302_v31, 2 }
 0x4c5   :  { %v5306_v49 = vpop.permute.xlu1 %5305 }
 0x4c6   :  { %v3301_v27 = vsel %vm3293_vm7, %v5303_v35, %v3290_v62  ;;  %v3300_v25 = vsel %vm3293_vm7, %v5302_v31, %v3289_v43  ;;  %v5308_v2 = vunpack.i.h.bf16 %v5306_v49  ;;  %v5307_v0 = vunpack.i.l.bf16 %v5306_v49 }
 0x4c7   :  { %v3321_v16 = vmax.f32 %v3250_v12, %v3301_v27  ;;  %v3320_v53 = vmax.f32 %v3249_v39, %v3300_v25  ;;  %v5311_v20 = vpop.permute.xlu0 %5310 }
 0x4c8   :  { %v3291_v28 = vrot.slane %v5308_v2, 2  ;;  %v3284_v5 = vrot.slane %v5307_v0, 2  ;;  %v5313_v54 = vunpack.i.h.bf16 %v5311_v20  ;;  %v5312_v6 = vunpack.i.l.bf16 %v5311_v20 }
 0x4c9   :  { %v3393_v1 = vrot.slane %v3321_v16, %v7772_v56  ;;  %v3397_v36 = vrot.slane %v3321_v16, %v7773_v29  ;;  %v3385_v44 = vrot.slane %v3320_v53, %v7772_v56  ;;  %v3389_v34 = vrot.slane %v3320_v53, %v7773_v29  ;;  %v5316_v42 = vpop.permute.xlu1 %5315 }
 0x4ca   :  { %v3302_v52 = vsel %vm3293_vm7, %v5308_v2, %v3291_v28  ;;  %v3295_v40 = vsel %vm3293_vm7, %v5307_v0, %v3284_v5  ;;  %v3292_v12 = vrot.slane %v5313_v54, 2  ;;  %v3285_v39 = vrot.slane %v5312_v6, 2 }
 0x4cb   :  { %v4957_v17 = vpack.c.bf16 %v3397_v36, %v3393_v1  ;;  %v4955_v59 = vpack.c.bf16 %v3389_v34, %v3385_v44  ;;  %v3322_v7 = vmax.f32 %v7294_v46, %v3302_v52  ;;  %v3315_v14 = vmax.f32 %v7292_v21, %v3295_v40  ;;  %v3274_v47 = vpop.permute.xlu0 %3273 }
 0x4cc   :  { %v3303_v26 = vsel %vm3293_vm7, %v5313_v54, %v3292_v12  ;;  %v3296_v22 = vsel %vm3293_vm7, %v5312_v6, %v3285_v39  ;;  %v5318_v4 = vunpack.i.h.bf16 %v5316_v42  ;;  %v5317_v32 = vunpack.i.l.bf16 %v5316_v42 }
 0x4cd   :  { %v3665_v19 = vrot.slane %v4957_v17, %v7334_v50  ;;  %v3570_v48 = vrot.slane %v4955_v59, %v7334_v50  ;;  %v3401_v57 = vrot.slane %v3322_v7, %v7772_v56  ;;  %v3405_v3 = vrot.slane %v3322_v7, %v7773_v29  ;;  %v3264_v31 = vpop.permute.xlu1 %3263 }
 0x4ce   :  { %v3345_v41 = vrot.slane %v3315_v14, %v7772_v56  ;;  %v3349_v46 = vrot.slane %v3315_v14, %v7773_v29  ;;  %v3323_v21 = vmax.f32 %v7300_v10, %v3303_v26  ;;  %v3316_v55 = vmax.f32 %v7296_v13, %v3296_v22 }
 0x4cf   :  { %v7358_v23 = vrot.slane %v3665_v19, %v7334_v50  ;;  %v3577_v30 = vrot.slane %v3570_v48, %v7334_v50  ;;  %v4959_v61 = vpack.c.bf16 %v3405_v3, %v3401_v57  ;;  %v3287_v15 = vrot.slane %v5318_v4, 2 }
 0x4d0   :  { %v4954_v38 = vpack.c.bf16 %v3349_v46, %v3345_v41  ;;  %v3409_v9 = vrot.slane %v3323_v21, %v7772_v56  ;;  %v3413_v37 = vrot.slane %v3323_v21, %v7773_v29  ;;  %v3353_v58 = vrot.slane %v3316_v55, %v7772_v56 }
 0x4d1   :  { %v3693_v10 = vrot.slane %v7358_v23, %v7337_v51  ;;  %v3598_v13 = vrot.slane %v3577_v30, %v7337_v51  ;;  %v3760_v45 = vrot.slane %v4959_v61, %v7334_v50  ;;  %v3357_v35 = vrot.slane %v3316_v55, %v7773_v29 }
 0x4d2   :  { %v3555_v8 = vrot.slane %v4954_v38, %v7334_v50  ;;  %v4961_v60 = vpack.c.bf16 %v3413_v37, %v3409_v9  ;;  %v3298_v62 = vsel %vm3293_vm7, %v5318_v4, %v3287_v15  ;;  %v3286_v43 = vrot.slane %v5317_v32, 2  ;;  %v5560_v9 = vld [vmem:[%s7675_s5 + $0x10] sm:$0xff]  }
 0x4d3   :  { %v3767_v49 = vrot.slane %v3760_v45, %v7334_v50  ;;  %v4956_v27 = vpack.c.bf16 %v3357_v35, %v3353_v58  ;;  %v3318_v25 = vmax.f32 %v7304_v11, %v3298_v62  ;;  %v3288_v2 = vrot.slane %v3274_v47, 2  ;;  %5095 = vmatpush3.bf16.msra.mxu0 %v5560_v9 }
 0x4d4   :  { %v3562_v0 = vrot.slane %v3555_v8, %v7334_v50  ;;  %v3855_v16 = vrot.slane %v4961_v60, %v7334_v50  ;;  %v3297_v53 = vsel %vm3293_vm7, %v5317_v32, %v3286_v43  ;;  %v3283_v20 = vrot.slane %v3264_v31, 2 }
 0x4d5   :  { %v3788_v28 = vrot.slane %v3767_v49, %v7337_v51  ;;  %v3650_v5 = vrot.slane %v4956_v27, %v7334_v50  ;;  %v3369_v54 = vrot.slane %v3318_v25, %v7772_v56  ;;  %v3373_v6 = vrot.slane %v3318_v25, %v7773_v29  ;;  %v5561_v49 = vld [vmem:[%s7675_s5 + $0x58] sm:$0xff]  }
 0x4d6   :  { %v3584_v1 = vrot.slane %v3562_v0, %v7337_v51  ;;  %v7382_v11 = vrot.slane %v3855_v16, %v7334_v50  ;;  %v3317_v36 = vmax.f32 %v7302_v63, %v3297_v53  ;;  %v3299_v44 = vsel %vm3293_vm7, %v3274_v47, %v3288_v2  ;;  %5096 = vmatprep.subr.bf16.mxu0 %v5561_v49 }
 0x4d7   :  { %v3657_v34 = vrot.slane %v3650_v5, %v7334_v50  ;;  %v4960_v42 = vpack.c.bf16 %v3373_v6, %v3369_v54  ;;  %v3319_v52 = vmax.f32 %v7310_v18, %v3299_v44  ;;  %v3294_v40 = vsel %vm3293_vm7, %v3264_v31, %v3283_v20 }
 0x4d8   :  { %v3883_v12 = vrot.slane %v7382_v11, %v7337_v51  ;;  %v3361_v39 = vrot.slane %v3317_v36, %v7772_v56  ;;  %v3365_v17 = vrot.slane %v3317_v36, %v7773_v29  ;;  %v3314_v59 = vmax.f32 %v7313_v24, %v3294_v40 }
 0x4d9   :  { %v3679_v63 = vrot.slane %v3657_v34, %v7337_v51  ;;  %v3840_v7 = vrot.slane %v4960_v42, %v7334_v50  ;;  %v3377_v14 = vrot.slane %v3319_v52, %v7772_v56  ;;  %v3381_v26 = vrot.slane %v3319_v52, %v7773_v29 }
 0x4da   :  { %v4958_v18 = vpack.c.bf16 %v3365_v17, %v3361_v39  ;;  %v3337_v22 = vrot.slane %v3314_v59, %v7772_v56  ;;  %v3341_v4 = vrot.slane %v3314_v59, %v7773_v29  ;;  %v3591_v32 = vrot.slane %v3584_v1, %v7337_v51 }
 0x4db   :  { %v3847_v19 = vrot.slane %v3840_v7, %v7334_v50  ;;  %v4953_v48 = vpack.c.bf16 %v3381_v26, %v3377_v14  ;;  %v3605_v24 = vrot.slane %v3598_v13, %v7337_v51  ;;  %v3686_v57 = vrot.slane %v3679_v63, %v7337_v51  ;;  %v5562_v26 = vld [vmem:[%s7675_s5 + $0x18] sm:$0xff]  }
 0x4dc   :  { %v3745_v3 = vrot.slane %v4958_v18, %v7334_v50  ;;  %v4952_v41 = vpack.c.bf16 %v3341_v4, %v3337_v22  ;;  %v3606_v46 = vunpack.c.l.b16 %v3591_v32  ;;  %v3607_v21 = vunpack.c.h.b16 %v3591_v32  ;;  %5097 = vmatpush3.bf16.msra.mxu0 %v5562_v26  ;;  %v5582_v26 = vld [vmem:[%s7675_s5 + $0xe8] sm:$0xff]  }
 0x4dd   :  { %v3869_v55 = vrot.slane %v3847_v19, %v7337_v51  ;;  %v3480_v56 = vrot.slane %v4953_v48, %v7334_v50  ;;  %v3608_v23 = vunpack.c.l.b16 %v3605_v24  ;;  %v3609_v29 = vunpack.c.h.b16 %v3605_v24 }
 0x4de   :  { %v3752_v30 = vrot.slane %v3745_v3, %v7334_v50  ;;  %v3465_v61 = vrot.slane %v4952_v41, %v7334_v50  ;;  %v3700_v15 = vrot.slane %v3693_v10, %v7337_v51  ;;  %v3701_v38 = vunpack.c.l.b16 %v3686_v57 }
 0x4df   :  { %v3487_v37 = vrot.slane %v3480_v56, %v7334_v50  ;;  %v3610_v58 = vrot.slane %v3608_v23, 7  ;;  %v3612_v47 = vrot.slane %v3609_v29, 7  ;;  %v3702_v13 = vunpack.c.h.b16 %v3686_v57  ;;  %v5564_v56 = vld [vmem:[%s7675_s5 + $0x20] sm:$0xff]  }
 0x4e0   :  { %v3774_v45 = vrot.slane %v3752_v30, %v7337_v51  ;;  %v3472_v35 = vrot.slane %v3465_v61, %v7334_v50  ;;  %v3703_v31 = vunpack.c.l.b16 %v3700_v15  ;;  %v3704_v8 = vunpack.c.h.b16 %v3700_v15  ;;  %v5565_v61 = vld [vmem:[%s7675_s5 + $0x68] sm:$0xff]  }
 0x4e1   :  { %v3508_v60 = vrot.slane %v3487_v37, %v7337_v51  ;;  %v3611_v10 = vsel %vm1698_vm6, %v3610_v58, %v3606_v46  ;;  %v3613_v62 = vsel %vm1698_vm6, %v3612_v47, %v3607_v21  ;;  %v3795_v43 = vrot.slane %v3788_v28, %v7337_v51  ;;  %v5566_v58 = vld [vmem:[%s7675_s5 + $0x28] sm:$0xff]  }
 0x4e2   :  { %v3494_v27 = vrot.slane %v3472_v35, %v7337_v51  ;;  %v3614_v25 = vpack.c.b16 %v3613_v62, %v3611_v10  ;;  %v3705_v2 = vrot.slane %v3703_v31, 7  ;;  %v3707_v0 = vrot.slane %v3704_v8, 7  ;;  %v5568_v35 = vld [vmem:[%s7675_s5 + $0x30] sm:$0xff]   ;;  %v5569_v8 = vld [vmem:[%s7675_s5 + $0x78] sm:$0xff]   ;;  %v5572_v10 = vld [vmem:[%s7675_s5 + $0xc0] sm:$0xff]  }
 0x4e3   :  { %v3515_v16 = vrot.slane %v3508_v60, %v7337_v51  ;;  %v3781_v53 = vrot.slane %v3774_v45, %v7337_v51  ;;  %v3798_v20 = vunpack.c.l.b16 %v3795_v43  ;;  %v3799_v5 = vunpack.c.h.b16 %v3795_v43  ;;  %v5570_v60 = vld [vmem:[%s7675_s5 + $0x38] sm:$0xff]  }
 0x4e4   :  { %v3501_v54 = vrot.slane %v3494_v27, %v7337_v51  ;;  %v3621_v28 = vrot.slane %v3614_v25, %v7334_v50  ;;  %v3706_v6 = vsel %vm1698_vm6, %v3705_v2, %v3701_v38  ;;  %v3708_v1 = vsel %vm1698_vm6, %v3707_v0, %v3702_v13  ;;  %v5567_v13 = vld [vmem:[%s7675_s5 + $0x70] sm:$0xff]  }
 0x4e5   :  { %v3518_v36 = vunpack.c.l.b16 %v3515_v16  ;;  %v3519_v44 = vunpack.c.h.b16 %v3515_v16  ;;  %v3709_v34 = vpack.c.b16 %v3708_v1, %v3706_v6  ;;  %v3796_v42 = vunpack.c.l.b16 %v3781_v53 }
 0x4e6   :  { %v3516_v52 = vunpack.c.l.b16 %v3501_v54  ;;  %v3517_v40 = vunpack.c.h.b16 %v3501_v54  ;;  %v3628_v39 = vrot.slane %v3621_v28, %v7334_v50  ;;  %v3797_v17 = vunpack.c.h.b16 %v3781_v53 }
 0x4e7   :  { %v3520_v59 = vrot.slane %v3518_v36, 7  ;;  %v3522_v63 = vrot.slane %v3519_v44, 7  ;;  %v3716_v7 = vrot.slane %v3709_v34, %v7334_v50  ;;  %v3800_v14 = vrot.slane %v3798_v20, 7  ;;  %v5573_v44 = vld [vmem:[%s7675_s5 + $0x80] sm:$0xff]  }
 0x4e8   :  { %3629 = vrot.lane.b32.xlu0 %v3628_v39, %s5652_s22  ;;  %v3802_v18 = vrot.slane %v3799_v5, 7  ;;  %v3876_v22 = vrot.slane %v3869_v55, %v7337_v51  ;;  %v3890_v4 = vrot.slane %v3883_v12, %v7337_v51  ;;  %v5563_v55 = vld [vmem:[%s7675_s5 + $0x60] sm:$0xff]   ;;  %vm3920_vm7 = vcmask 1040896   ;;  %v5576_v39 = vld [vmem:[%s7675_s5 + $0xd0] sm:$0xff]  }
 0x4e9   :  { %v3723_v32 = vrot.slane %v3716_v7, %v7334_v50  ;;  %v3801_v19 = vsel %vm1698_vm6, %v3800_v14, %v3796_v42  ;;  %v3521_v48 = vsel %vm1698_vm6, %v3520_v59, %v3516_v52  ;;  %v3523_v24 = vsel %vm1698_vm6, %v3522_v63, %v3517_v40  ;;  %5098 = vmatprep.subr.bf16.mxu0 %v5563_v55  ;;  %v5574_v42 = vld [vmem:[%s7675_s5 + $0xc8] sm:$0xff]   ;;  %v5578_v59 = vld [vmem:[%s7675_s5 + $0xd8] sm:$0xff]   ;;  %v5580_v7 = vld [vmem:[%s7675_s5 + $0xe0] sm:$0xff]  }
 0x4ea   :  { %v3803_v57 = vsel %vm1698_vm6, %v3802_v18, %v3797_v17  ;;  %v3891_v3 = vunpack.c.l.b16 %v3876_v22  ;;  %v3893_v41 = vunpack.c.l.b16 %v3890_v4  ;;  %v3892_v11 = vunpack.c.h.b16 %v3876_v22  ;;  %5099 = vmatpush3.bf16.msra.mxu0 %v5564_v56  ;;  %v5575_v40 = vld [vmem:[%s7675_s5 + $0x88] sm:$0xff]   ;;  %v5577_v17 = vld [vmem:[%s7675_s5 + $0x90] sm:$0xff]   ;;  %v5579_v63 = vld [vmem:[%s7675_s5 + $0x98] sm:$0xff]  }
 0x4eb   :  { %3724 = vrot.lane.b32.xlu1 %v3723_v32, %s5640_s17  ;;  %v3804_v46 = vpack.c.b16 %v3803_v57, %v3801_v19  ;;  %v3894_v51 = vunpack.c.h.b16 %v3890_v4  ;;  %v3524_v12 = vpack.c.b16 %v3523_v24, %v3521_v48  ;;  %5100 = vmatprep.subr.bf16.mxu0 %v5565_v61  ;;  %v5581_v14 = vld [vmem:[%s7675_s5 + $0xa0] sm:$0xff]   ;;  %v5583_v18 = vld [vmem:[%s7675_s5 + $0xa8] sm:$0xff]   ;;  %v5584_v22 = vld [vmem:[%s7675_s5 + $0xf0] sm:$0xff]  }
 0x4ec   :  { %v3895_v21 = vrot.slane %v3893_v41, 7  ;;  %v5585_v32 = vld [vmem:[%s7675_s5 + $0xb0] sm:$0xff]   ;;  %v5586_v19 = vld [vmem:[%s7675_s5 + $0xf8] sm:$0xff]   ;;  %v5593_v55 = vld [vmem:[%s7675_s5 + $0x128] sm:$0xff]  }
 0x4ed   :  { %v3811_v23 = vrot.slane %v3804_v46, %v7334_v50  ;;  %v3897_v29 = vrot.slane %v3894_v51, 7  ;;  %v3531_v30 = vrot.slane %v3524_v12, %v7334_v50  ;;  %v5587_v24 = vld [vmem:[%s7675_s5 + $0xb8] sm:$0xff]   ;;  %v5590_v51 = vld [vmem:[%s7675_s5 + $0x110] sm:$0xff]  }
 0x4ee   :  { %v3896_v15 = vsel %vm1698_vm6, %v3895_v21, %v3891_v3  ;;  %5101 = vmatpush3.bf16.msra.mxu0 %v5566_v58  ;;  %v5588_v3 = vld [vmem:[%s7675_s5 + $0x100] sm:$0xff]   ;;  %v5591_v12 = vld [vmem:[%s7675_s5 + $0x118] sm:$0xff]   ;;  %v5594_v56 = vld [vmem:[%s7675_s5 + $0x130] sm:$0xff]   ;;  %v5654_v58 = vmov 0.0  }
 0x4ef   :  { %v3818_v38 = vrot.slane %v3811_v23, %v7334_v50  ;;  %v3898_v9 = vsel %vm1698_vm6, %v3897_v29, %v3892_v11  ;;  %v3538_v37 = vrot.slane %v3531_v30, %v7334_v50  ;;  %5102 = vmatprep.subr.bf16.mxu0 %v5567_v13  ;;  %vm3635_vm6 = vcmask 1040512   ;;  %v5589_v11 = vld [vmem:[%s7675_s5 + $0x108] sm:$0xff]   ;;  %v5592_v21 = vld [vmem:[%s7675_s5 + $0x120] sm:$0xff]   ;;  %v5595_v23 = vld [vmem:[%s7675_s5 + $0x138] sm:$0xff]  }
 0x4f0   :  { %v3899_v47 = vpack.c.b16 %v3898_v9, %v3896_v15  ;;  %vm3637_vm14 = vmor %vm3636_vm12, %vm3635_vm6  ;;  %vm4345_vm6 = vcmask 654336   ;;  %v5596_v29 = vld [vmem:[%s7675_s5 + $0x140] sm:$0xff]   ;;  %v5597_v30 = vld [vmem:[%s7675_s5 + $0x148] sm:$0xff]   ;;  %vm5655_vm12 = vmmov 0  }
 0x4f1   :  { %3819 = vrot.lane.b32.xlu0 %v3818_v38, %s5653_s30  ;;  %3543 = vst.msk [vmem:[#allocation4] sm:$0x3] %vm3542_vm11, %v3538_v37  ;;  %vm3922_vm11 = vmor %vm3921_vm9, %vm3920_vm7  ;;  %v5598_v61 = vld [vmem:[%s7675_s5 + $0x150] sm:$0xff]   ;;  %v5599_v15 = vld [vmem:[%s7675_s5 + $0x158] sm:$0xff]  }
 0x4f2   :  { %v3906_v45 = vrot.slane %v3899_v47, %v7334_v50  ;;  %5103 = vmatpush3.bf16.msra.mxu0 %v5568_v35  ;;  %v5600_v38 = vld [vmem:[%s7675_s5 + $0x160] sm:$0xff]   ;;  %v5602_v47 = vld [vmem:[%s7677_s7 + $0x8] sm:$0xff]   ;;  %v5607_v35 = vld [vmem:[%s7677_s7 + $0x30] sm:$0xff]  }
 0x4f3   :  { %5104 = vmatprep.subr.bf16.mxu0 %v5569_v8  ;;  %v5601_v37 = vld [vmem:[%s7677_s7] sm:$0xff]  }
 0x4f4   :  { %v3913_v31 = vrot.slane %v3906_v45, %v7334_v50  ;;  %v5605_v13 = vld [vmem:[%s7677_s7 + $0x20] sm:$0xff]   ;;  %v5606_v45 = vld [vmem:[%s7677_s7 + $0x28] sm:$0xff]  }
 0x4f6   :  { %3914 = vrot.lane.b32.xlu1 %v3913_v31, %s5639_s16  ;;  %5105 = vmatpush3.bf16.msra.mxu0 %v5570_v60  ;;  %v5608_v31 = vld [vmem:[%s7677_s7 + $0x38] ss:$0 sps:$4 sm:$0xff]  }
 0x4f7   :  { %5112 = vmatprep.subr.bf16.mxu0 %v5572_v10 }
 0x55a   :  { %v3630_v62 = vpop.permute.xlu0 %3629 }
 0x55b   :  { %v3631_v43 = vrot.slane %v3630_v62, 7 }
 0x55d   :  { %v3633_v49 = vsel %vm3632_vm15, %v3631_v43, %v3630_v62  ;;  %v3725_v27 = vpop.permute.xlu1 %3724  ;;  %vm7788_vm15 = vcmask 1043456  }
 0x55e   :  { %3638 = vst.msk [vmem:[#allocation4 + $0x1] sm:$0x3] %vm3637_vm14, %v3633_v49  ;;  %v3726_v25 = vrot.slane %v3725_v27, 7  ;;  %v4543_v8 = vsel %vm7788_vm15, %v5608_v31, 0  ;;  %vm4538_vm14 = vcmask 982016  }
 0x560   :  { %v3728_v2 = vsel %vm7787_vm3, %v3726_v25, %v3725_v27  ;;  %v4962_v27 = vld [vmem:[%s7676_s6] ss:$0 sm:$0xff] }
 0x561   :  { %3733 = vst.msk [vmem:[#allocation4 + $0x2] sm:$0x3] %vm3732_vm2, %v3728_v2 }
 0x563   :  { %v3820_v0 = vpop.permute.xlu0 %3819 }
 0x564   :  { %v3821_v16 = vrot.slane %v3820_v0, 7 }
 0x566   :  { %v3823_v53 = vsel %vm3822_vm0, %v3821_v16, %v3820_v0 }
 0x567   :  { %3828 = vst.msk [vmem:[#allocation4 + $0x3] sm:$0x3] %vm3827_vm4, %v3823_v53 }
 0x568   :  { %v3915_v20 = vpop.permute.xlu1 %3914 }
 0x569   :  { %v3916_v5 = vrot.slane %v3915_v20, 7 }
 0x56b   :  { %v3918_v54 = vsel %vm3917_vm10, %v3916_v5, %v3915_v20 }
 0x56c   :  { %3923 = vst.msk [vmem:[#allocation4 + $0x4] sm:$0x3] %vm3922_vm11, %v3918_v54 }
 0x573   :  { %v3924_v28 = vld [vmem:[#allocation4] sm:$0x3f] }
 0x574   :  { %v4030_v6 = vrot.slane %v3924_v28, %v7334_v50  ;;  %v4023_v4 = vcombine.high %v3924_v28, %v3924_v28 }
 0x576   :  { %v4038_v1 = vcombine.high %v4030_v6, %v4030_v6  ;;  %v4046_v34 = vrot.slane %v4030_v6, %v7334_v50  ;;  %v4037_v48 = vrot.slane %v4023_v4, %v7334_v50 }
 0x578   :  { %v4060_v36 = vrot.slane %v4038_v1, %v7334_v50  ;;  %v4039_v57 = vcombine.high %v4037_v48, %v4037_v48  ;;  %v4068_v41 = vcombine.high %v4046_v34, %v4046_v34  ;;  %v4053_v9 = vrot.slane %v4037_v48, %v7334_v50  ;;  %v5019_v48 = vld [vmem:[%s7680_s10] ss:$0 sm:$0xff] }
 0x57a   :  { %4381 = vmatprep.mubr.bf16.mxu0 %v4060_v36  ;;  %v4069_v52 = vcombine.high %v4060_v36, %v4060_v36  ;;  %v4067_v46 = vrot.slane %v4039_v57, %v7334_v50  ;;  %v5604_v50 = vld [vmem:[%s7677_s7 + $0x18] sm:$0xff]  }
 0x57b   :  { %4382 = vmatmul.mubr.bf16.vlgmr.msra.gmra.mrb[16].mxu0 %v4046_v34  ;;  %v5609_v34 = vld [vmem:[%s7679_s9] sm:$0xff]  }
 0x57c   :  { %5113 = vmatpush3.bf16.msra.mxu0 %v5573_v44  ;;  %4421 = vmatprep.mubr.bf16.mxu0 %v4069_v52  ;;  %v5610_v52 = vld [vmem:[%s7679_s9 + $0x8] sm:$0xff]  }
 0x57d   :  { %5114 = vmatprep.subr.bf16.mxu0 %v5574_v42 }
 0x580   :  { %5115 = vmatpush3.bf16.msra.mxu0 %v5575_v40  ;;  %v5611_v40 = vld [vmem:[%s7679_s9 + $0x10] sm:$0xff]  }
 0x581   :  { %5116 = vmatprep.subr.bf16.mxu0 %v5576_v39  ;;  %v5612_v39 = vld [vmem:[%s7679_s9 + $0x18] sm:$0xff]  }
 0x584   :  { %5117 = vmatpush3.bf16.msra.mxu0 %v5577_v17  ;;  %v5613_v17 = vld [vmem:[%s7679_s9 + $0x20] sm:$0xff]  }
 0x585   :  { %5118 = vmatprep.subr.bf16.mxu0 %v5578_v59  ;;  %v5614_v59 = vld [vmem:[%s7679_s9 + $0x28] ss:$0 sps:$4 sm:$0x33]  }
 0x588   :  { %5119 = vmatpush3.bf16.msra.mxu0 %v5579_v63  ;;  %v4643_v63 = vsel %vm7789_vm1, %v5614_v59, 0 }
 0x589   :  { %5120 = vmatprep.subr.bf16.mxu0 %v5580_v7  ;;  %v5009_v7 = vld [vmem:[%s7678_s8] ss:$0 sm:$0xff]  ;;  %s5615_s8 = scalar_lea.vmem %s4693_s29, 32 }
 0x58a   :  { %p5616_p0 = scmp.ne.s32.totalorder %s4693_s29, %s5615_s8  ;;  %p5621_p2 = scmp.lt.s32.totalorder %s5615_s8, %s5615_s8 }
 0x58c   :  { %5121 = vmatpush3.bf16.msra.mxu0 %v5581_v14  ;;  %p5622_p3 = por %p5621_p2, %p5620_p1 }
 0x58d   :  { %5122 = vmatprep.subr.bf16.mxu0 %v5582_v26 }
 0x58e   :  { %p5623_p4 = pnand %p5622_p3, %p5616_p0 }
 0x590   :  { %5123 = vmatpush3.bf16.msra.mxu0 %v5583_v18 }
 0x591   :  { %5124 = vmatprep.subr.bf16.mxu0 %v5584_v22 }
 0x594   :  { %5125 = vmatpush3.bf16.msra.mxu0 %v5585_v32 }
 0x595   :  { %5126 = vmatprep.subr.bf16.mxu0 %v5586_v19 }
 0x598   :  { %5127 = vmatpush3.bf16.msra.mxu0 %v5587_v24 }
 0x599   :  { %4429 = vmatprep.subr.bf16.mxu0 %v5648_v33 }
 0x59b   :  { %4422 = vmatmul.mubr.bf16.vlgmr.msra.gmra.mrb[20].mxu0 %v4068_v41 }
 0x59c   :  { %4430 = vmatpush1.bf16.msra.mxu0 %v5588_v3  ;;  %5008 = vmatprep.mubr.msk.bf16.mxu0 %vm4345_vm6, %v4067_v46 }
 0x59d   :  { %4431 = vmatprep.subr.bf16.mxu0 %v5648_v33 }
 0x5a0   :  { %4432 = vmatpush1.bf16.msra.mxu0 %v5589_v11 }
 0x5a1   :  { %4433 = vmatprep.subr.bf16.mxu0 %v5648_v33 }
 0x5a4   :  { %4434 = vmatpush1.bf16.msra.mxu0 %v5590_v51 }
 0x5a5   :  { %4435 = vmatprep.subr.bf16.mxu0 %v5648_v33 }
 0x5a8   :  { %4436 = vmatpush1.bf16.msra.mxu0 %v5591_v12 }
 0x5a9   :  { %4437 = vmatprep.subr.bf16.mxu0 %v5648_v33 }
 0x5ac   :  { %4438 = vmatpush1.bf16.msra.mxu0 %v5592_v21 }
 0x5ad   :  { %4439 = vmatprep.subr.bf16.mxu0 %v5648_v33 }
 0x5b0   :  { %4440 = vmatpush1.bf16.msra.mxu0 %v5593_v55 }
 0x5b1   :  { %4441 = vmatprep.subr.bf16.mxu0 %v5648_v33 }
 0x5b4   :  { %4442 = vmatpush1.bf16.msra.mxu0 %v5594_v56 }
 0x5b5   :  { %4443 = vmatprep.subr.bf16.mxu0 %v5648_v33 }
 0x5b8   :  { %4444 = vmatpush1.bf16.msra.mxu0 %v5595_v23 }
 0x5b9   :  { %4445 = vmatprep.subr.bf16.mxu0 %v5648_v33 }
 0x5bc   :  { %4446 = vmatpush1.bf16.msra.mxu0 %v5596_v29 }
 0x5bd   :  { %4447 = vmatprep.subr.bf16.mxu0 %v5648_v33 }
 0x5c0   :  { %4448 = vmatpush1.bf16.msra.mxu0 %v5597_v30 }
 0x5c1   :  { %4449 = vmatprep.subr.bf16.mxu0 %v5648_v33 }
 0x5c4   :  { %4450 = vmatpush1.bf16.msra.mxu0 %v5598_v61 }
 0x5c5   :  { %4451 = vmatprep.subr.bf16.mxu0 %v5648_v33 }
 0x5c8   :  { %4452 = vmatpush1.bf16.msra.mxu0 %v5599_v15 }
 0x5c9   :  { %4453 = vmatprep.subr.bf16.mxu0 %v5648_v33  ;;  %v5603_v33 = vld [vmem:[%s7677_s7 + $0x10] sm:$0xff]  }
 0x5cc   :  { %4454 = vmatpush1.bf16.msra.mxu0 %v5600_v38 }
 0x5cd   :  { %5150 = vmatprep.subr.bf16.mxu0 %v5654_v58 }
 0x5cf   :  { %4462 = vmatmul.mubr.bf16.vlgmr.msra.gmra.mrb[24].mxu0 %v4053_v9 }
 0x5d0   :  { %5151 = vmatpush3.bf16.msra.mxu0 %v5601_v37  ;;  %5166 = vmatprep.mubr.msk.bf16.mxu0 %vm5655_vm12, %v5654_v58 }
 0x5d1   :  { %5152 = vmatprep.subr.bf16.mxu0 %v5654_v58 }
 0x5d4   :  { %5153 = vmatpush3.bf16.msra.mxu0 %v5602_v47 }
 0x5d5   :  { %5154 = vmatprep.subr.bf16.mxu0 %v5654_v58 }
 0x5d8   :  { %5155 = vmatpush3.bf16.msra.mxu0 %v5603_v33 }
 0x5d9   :  { %5156 = vmatprep.subr.bf16.mxu0 %v5654_v58 }
 0x5dc   :  { %5157 = vmatpush3.bf16.msra.mxu0 %v5604_v50 }
 0x5dd   :  { %5158 = vmatprep.subr.bf16.mxu0 %v5654_v58 }
 0x5e0   :  { %5159 = vmatpush3.bf16.msra.mxu0 %v5605_v13 }
 0x5e1   :  { %5160 = vmatprep.subr.bf16.mxu0 %v5654_v58 }
 0x5e4   :  { %5161 = vmatpush3.bf16.msra.mxu0 %v5606_v45 }
 0x5e5   :  { %5162 = vmatprep.subr.bf16.mxu0 %v5654_v58 }
 0x5e8   :  { %5163 = vmatpush3.bf16.msra.mxu0 %v5607_v35 }
 0x5e9   :  { %5164 = vmatprep.subr.bf16.mxu0 %v5654_v58 }
 0x5ec   :  { %5165 = vmatpush3.bf16.msra.mxu0 %v4543_v8 }
 0x5ed   :  { %5170 = vmatprep.subr.bf16.mxu0 %v5654_v58 }
 0x64e   :  { %v5106_v60 = vpop.f32.mrb[16].mxu0 }
 0x64f   :  { %v5107_v10 = vpop.f32.mrb[17].mxu0 }
 0x650   :  { %v5108_v62 = vadd.f32 %v5107_v10, %v5106_v60  ;;  %v5109_v43 = vpop.f32.mrb[18].mxu0 }
 0x651   :  { %v5110_v49 = vpop.f32.mrb[19].mxu0 }
 0x652   :  { %v4384_v0 = vadd.f32 %v5108_v62, %v4962_v27 }
 0x66e   :  { %v5128_v25 = vpop.f32.mrb[20].mxu0 }
 0x66f   :  { %v5129_v2 = vpop.f32.mrb[21].mxu0 }
 0x670   :  { %v5130_v16 = vadd.f32 %v5129_v2, %v5128_v25  ;;  %v5131_v53 = vpop.f32.mrb[22].mxu0 }
 0x671   :  { %v5132_v20 = vpop.f32.mrb[23].mxu0 }
 0x672   :  { %v4424_v5 = vadd.f32 %v5130_v16, %v4384_v0 }
 0x6a2   :  { %v4463_v54 = vpop.f32.mrb[24].mxu0 }
 0x6a3   :  { %v4464_v28 = vadd.f32 %v4463_v54, %v4424_v5  ;;  %v4465_v6 = vpop.f32.mrb[25].mxu0 }
 0x6a4   :  { %v4466_v1 = vpop.f32.mrb[26].mxu0 }
 0x6a5   :  { %v4469_v36 = vmax.f32 %v4464_v28, 0.0  ;;  %v4467_v44 = vpop.f32.mrb[27].mxu0 }
 0x6a7   :  { %v4470_v42 = vpack.c.bf16 %v4469_v36, %v4469_v36 }
 0x6a9   :  { %5167 = vmatmul.mubr.msk.bf16.vlgmr.msra.gmra.mrb[28].mxu0 %vm4538_vm14, %v4470_v42 }
 0x6aa   :  { %5171 = vmatpush3.bf16.msra.mxu0 %v5609_v34  ;;  %5182 = vmatprep.mubr.msk.bf16.mxu0 %vm5655_vm12, %v5654_v58 }
 0x6ab   :  { %5172 = vmatprep.subr.bf16.mxu0 %v5654_v58 }
 0x6ae   :  { %5173 = vmatpush3.bf16.msra.mxu0 %v5610_v52 }
 0x6af   :  { %5174 = vmatprep.subr.bf16.mxu0 %v5654_v58 }
 0x6b2   :  { %5175 = vmatpush3.bf16.msra.mxu0 %v5611_v40 }
 0x6b3   :  { %5176 = vmatprep.subr.bf16.mxu0 %v5654_v58 }
 0x6b6   :  { %5177 = vmatpush3.bf16.msra.mxu0 %v5612_v39 }
 0x6b7   :  { %5178 = vmatprep.subr.bf16.mxu0 %v5654_v58 }
 0x6ba   :  { %5179 = vmatpush3.bf16.msra.mxu0 %v5613_v17 }
 0x6bb   :  { %5180 = vmatprep.subr.bf16.mxu0 %v5654_v58 }
 0x6be   :  { %5181 = vmatpush3.bf16.msra.mxu0 %v4643_v63 }
 0x77c   :  { %v4579_v14 = vpop.f32.mrb[28].mxu0 }
 0x77d   :  { %v4580_v26 = vadd.f32 %v5009_v7, %v4579_v14  ;;  %v5168_v18 = vpop.f32.mrb[29].mxu0 }
 0x77e   :  { %v4582_v22 = vpop.f32.mrb[30].mxu0 }
 0x77f   :  { %v4585_v4 = vmax.f32 %v4580_v26, 0.0  ;;  %v5169_v32 = vpop.f32.mrb[31].mxu0 }
 0x781   :  { %v4586_v19 = vpack.c.bf16 %v4585_v4, %v4585_v4 }
 0x783   :  { %5183 = vmatmul.mubr.msk.bf16.vlgmr.msra.gmra.mrb[32].mxu0 %vm4638_vm5, %v4586_v19 }
 0x856   :  { %v4679_v24 = vpop.f32.mrb[32].mxu0 }
 0x857   :  { %v4680_v57 = vadd.f32 %v5019_v48, %v4679_v24  ;;  %v5184_v3 = vpop.f32.mrb[33].mxu0 }
 0x858   :  { %v4682_v41 = vpop.f32.mrb[34].mxu0 }
 0x859   :  { %4685 = vst [vmem:[#allocation5] sm:$0x3] %v4680_v57  ;;  %v5185_v46 = vpop.f32.mrb[35].mxu0 }
 0x85a   :  { %5626 = shalt.err (!%p5623_p4)
}
 0x85b   :  { %s5627_s10 = scalar_lea.hbm %s7681_s11, 32 }
 0x85c   :  { %p5628_p5 = scmp.ne.s32.totalorder %s7681_s11, %s5627_s10  ;;  %p5631_p6 = scmp.lt.u32.totalorder %s5627_s10, %s7681_s11 }
 0x85e   :  { %p5633_p7 = pnand %p5631_p6, %p5628_p5 }
 0x860   :  { %5636 = shalt.err (!%p5633_p7)
}
 0x861   :  { %4695 = dma.vmem_to_hbm [thread:$0]  %s4693_s29, 32, %s7681_s11, [#allocation6]  }
 0x862   :  { %5637 = dma.done.wait [#allocation6], 32  }
 0x863   :  { %5638 = vsyncadd [#allocation6], 4294967264 }
 0x864   :  { %4699 = vsyncpa [#allocation6], 1 }

</bundles_post_ra>
